<compile_context>
chip_gen: v6e
topology: v6e:2x2x1
jax: 0.10.0
libtpu: 0.0.40
codegen_flags: <defaults>
</compile_context>

<pallas_src>
import functools

import numpy as np
import jax
import jax.numpy as jnp
from jax import lax
from jax.experimental import pallas as pl
from jax.experimental.pallas import tpu as pltpu


def _round_up(a, b):
    return (a + b - 1) // b * b


def _physical_vmem_bytes():
    """Per-core VMEM capacity; conservative 64 MiB fallback (v7x) if the query fails."""
    try:
        return int(pltpu.get_tpu_info().vmem_capacity_bytes)
    except Exception:
        return 64 * 1024 * 1024


def _aspp_sum_kernel(x_ref, w_ref, b_ref, o_ref, *scratch,
                     tap_offsets, m_rows, tile_c, num_c_blocks, w_resident):
    """Grid = (batch, cin_blocks); one batch element x one Cin block per step.

    x_ref  : (Hp1*Wp, Ct)            flattened zero-padded input slab (one Cin block)
    w_ref  : (n_taps, Cpad, Lp)      if w_resident else (n_taps, Ct, Lp)
    b_ref  : (1, Lp) f32             summed branch biases
    o_ref  : (m_rows, Lp)            flat lane-dense output, m_rows = OH * Wp
    scratch: ()                      if num_c_blocks == 1
             (acc_ref (m_rows,Lp) f32,) otherwise

    Every dilated 3x3 tap is a static flat-row offset into x_ref; all taps of all
    branches are summed in ONE chained-dot expression, so the accumulator is
    read-modified-written only once per Cin block (not once per tap).
    """
    c_blk = pl.program_id(1)

    block_sum = None
    for t, off in enumerate(tap_offsets):
        # Static major-dim offset slice: layout-preserving, no reshape/relayout.
        patch = x_ref[pl.ds(off, m_rows), :]
        if w_resident:
            c0 = pl.multiple_of(c_blk * tile_c, 128)
            wt = w_ref[t, pl.ds(c0, tile_c), :]
        else:
            wt = w_ref[t]
        contrib = jnp.dot(patch, wt, preferred_element_type=jnp.float32)
        # Serial add chain: bounds live temporaries to {running sum, current dot}.
        block_sum = contrib if block_sum is None else block_sum + contrib

    if num_c_blocks == 1:
        # No reduction axis: skip the scratch round trip entirely.
        o_ref[...] = (block_sum + b_ref[...]).astype(o_ref.dtype)
    else:
        acc_ref = scratch[0]

        @pl.when(c_blk == 0)
        def _first():
            acc_ref[...] = block_sum

        @pl.when(c_blk > 0)
        def _rest():
            acc_ref[...] += block_sum

        @pl.when(c_blk == num_c_blocks - 1)
        def _finalize():
            o_ref[...] = (acc_ref[...] + b_ref[...]).astype(o_ref.dtype)


def classifier_module_forward(x_nchw, weights, biases, dilation_series,
                              padding_series, *, compute_dtype=jnp.bfloat16,
                              max_cin_tile=None):
    """weights: list of (NoLabels, Cin, 3, 3) PyTorch-layout arrays
       biases : list of (NoLabels,) arrays
       x_nchw : (N, Cin, H, W)  ->  returns (N, NoLabels, OH, OW)"""
    n, c_in, h, w = x_nchw.shape
    n_labels = weights[0].shape[0]
    n_taps = len(weights) * 9

    # all branches must produce identical spatial sizes (required for the sum)
    out_sizes = {(h + 2 * p - 2 * d, w + 2 * p - 2 * d)
                 for d, p in zip(dilation_series, padding_series)}
    assert len(out_sizes) == 1, "branches must have matching output sizes"
    out_h, out_w = out_sizes.pop()
    assert out_h > 0 and out_w > 0

    pmax = max(padding_series)
    hp, wp = h + 2 * pmax, w + 2 * pmax
    hp1 = hp + 1                 # one extra zero row keeps every tap window in-bounds
    m_rows = out_h * wp          # flat matmul/accumulator rows (wrap cols stripped later)

    l_pad = _round_up(n_labels, 128)        # lane-dense stores / full MXU N
    out_dtype = x_nchw.dtype
    isz = np.dtype(compute_dtype).itemsize
    out_isz = np.dtype(out_dtype).itemsize

    # Generation-aware VMEM budget (v5e/v6e: 128 MiB phys, v7x: 64 MiB).
    vmem_phys = _physical_vmem_bytes()
    vmem_budget = max(32 * 1024 * 1024,
                      min(100 * 1024 * 1024, vmem_phys - 8 * 1024 * 1024))
    if max_cin_tile is None:
        max_cin_tile = 512 if vmem_phys >= 96 * 1024 * 1024 else 256

    def vmem_est(tile_c_, resident):
        c_pad_ = c_in if c_in <= tile_c_ else _round_up(c_in, tile_c_)
        lane_c = _round_up(tile_c_, 128)
        bytes_x = _round_up(hp1 * wp, 16) * lane_c * isz
        w_rows = c_pad_ if resident else tile_c_
        bytes_w = n_taps * _round_up(w_rows, 16) * l_pad * isz
        bytes_b = 8 * l_pad * 4
        bytes_o = _round_up(m_rows, 8) * l_pad * out_isz
        bytes_acc = _round_up(m_rows, 8) * l_pad * 4
        bytes_tmp = (2 * _round_up(m_rows, 8) * l_pad * 4
                     + _round_up(m_rows, 16) * lane_c * isz)
        return 2 * (bytes_x + bytes_w + bytes_b + bytes_o) + bytes_acc + bytes_tmp

    # Cin tiling: trailing "arbitrary" reduction axis; partial tiles are 128-multiples.
    if c_in <= max_cin_tile:
        tile_c = c_in
    else:
        tile_c = max(128, (max_cin_tile // 128) * 128)
        while tile_c > 128 and vmem_est(tile_c, resident=False) > vmem_budget:
            tile_c -= 128
    c_pad = c_in if c_in <= tile_c else _round_up(c_in, tile_c)
    num_c_blocks = c_pad // tile_c

    # Keep the full packed weight tensor resident in VMEM when it fits the budget
    # (no per-batch / per-Cin-block weight re-DMA).
    w_resident = num_c_blocks > 1 and vmem_est(tile_c, resident=True) <= vmem_budget

    est = vmem_est(tile_c, w_resident)
    vmem_limit = int(min(vmem_budget, max(32 * 1024 * 1024, est + est // 4)))

    # ---- pack x: cast FIRST (halves the pad/transpose HBM traffic), NCHW->NHWC,
    #      spatial pad by pmax (+1 zero bottom row), channel pad, flatten rows.
    x_nhwc = jnp.transpose(x_nchw.astype(compute_dtype), (0, 2, 3, 1))
    x_pad = jnp.pad(x_nhwc, ((0, 0), (pmax, pmax + 1), (pmax, pmax),
                             (0, c_pad - c_in)))
    x_flat = x_pad.reshape(n, hp1 * wp, c_pad)

    # ---- pack weights: (L, Cin, 3, 3) -> (9, c_pad, l_pad) per branch, tap-major.
    w_taps = []
    for wt in weights:
        wt_hwio = jnp.transpose(wt, (2, 3, 1, 0))            # (3, 3, Cin, L)
        wt_hwio = jnp.pad(wt_hwio, ((0, 0), (0, 0),
                                    (0, c_pad - c_in), (0, l_pad - n_labels)))
        w_taps.append(wt_hwio.reshape(9, c_pad, l_pad))
    w_pack = jnp.concatenate(w_taps, axis=0).astype(compute_dtype)

    # ---- summed bias (padded to l_pad, f32), added once at finalize.
    bias_total = jnp.zeros((1, l_pad), jnp.float32).at[0, :n_labels].set(
        sum(b.astype(jnp.float32) for b in biases))

    # ---- static flat-row offsets, one per (branch, kh, kw) tap.
    tap_offsets = []
    for d, p in zip(dilation_series, padding_series):
        for kh in range(3):
            for kw in range(3):
                tap_offsets.append((pmax - p + kh * d) * wp + (pmax - p + kw * d))

    if w_resident:
        w_spec = pl.BlockSpec((n_taps, c_pad, l_pad), lambda b, c: (0, 0, 0))
    else:
        w_spec = pl.BlockSpec((n_taps, tile_c, l_pad), lambda b, c: (0, c, 0))

    kernel = functools.partial(
        _aspp_sum_kernel,
        tap_offsets=tuple(tap_offsets), m_rows=m_rows, tile_c=tile_c,
        num_c_blocks=num_c_blocks, w_resident=w_resident)

    scratch_shapes = ([] if num_c_blocks == 1
                      else [pltpu.VMEM((m_rows, l_pad), jnp.float32)])

    out_flat = pl.pallas_call(
        kernel,
        out_shape=jax.ShapeDtypeStruct((n, m_rows, l_pad), out_dtype),
        grid_spec=pltpu.PrefetchScalarGridSpec(
            num_scalar_prefetch=0,
            grid=(n, num_c_blocks),
            in_specs=[
                pl.BlockSpec((None, hp1 * wp, tile_c), lambda b, c: (b, 0, c)),
                w_spec,
                pl.BlockSpec((1, l_pad), lambda b, c: (0, 0)),
            ],
            out_specs=pl.BlockSpec((None, m_rows, l_pad), lambda b, c: (b, 0, 0)),
            scratch_shapes=scratch_shapes,
        ),
        compiler_params=pltpu.CompilerParams(
            dimension_semantics=("parallel", "arbitrary"),
            vmem_limit_bytes=vmem_limit),
    )(x_flat, w_pack, bias_total)

    # flat rows are (out_h, wp)-major/minor; strip wrap columns & label padding.
    out_nhwc = out_flat.reshape(n, out_h, wp, l_pad)[:, :, :out_w, :n_labels]
    return jnp.transpose(out_nhwc, (0, 3, 1, 2))   # back to NCHW


def _reference_forward(x_nchw, weights, biases, dilation_series, padding_series):
    """Pure-JAX f32 reference using lax.conv_general_dilated (NCHW, OIHW)."""
    out = None
    for wt, bt, d, p in zip(weights, biases, dilation_series, padding_series):
        y = lax.conv_general_dilated(
            x_nchw, wt,
            window_strides=(1, 1),
            padding=[(p, p), (p, p)],
            rhs_dilation=(d, d),
            dimension_numbers=("NCHW", "OIHW", "NCHW"),
            precision=lax.Precision.HIGHEST,
        ) + bt[None, :, None, None]
        out = y if out is None else out + y
    return out


def _make_params(key, c_in, n_labels, n_branches):
    ks = jax.random.split(key, 2 * n_branches)
    weights, biases = [], []
    for i in range(n_branches):
        # weight.data.normal_(0, 0.01); bias values deterministic (not checkpointed)
        weights.append(0.01 * jax.random.normal(ks[2 * i], (n_labels, c_in, 3, 3),
                                                dtype=jnp.float32))
        biases.append(0.1 * jax.random.normal(ks[2 * i + 1], (n_labels,),
                                              dtype=jnp.float32))
    return weights, biases


if __name__ == "__main__":
    key = jax.random.PRNGKey(0)
    k1, k2, k3 = jax.random.split(key, 3)

    # ---- config 1: small shapes, single Cin block, default bf16 compute ----------
    N, C_IN, H, W = 2, 4, 16, 16
    NO_LABELS = 8
    DILATIONS, PADDINGS = [1, 2], [1, 2]   # padding == dilation -> "same" spatial size

    x = jax.random.normal(k1, (N, C_IN, H, W), dtype=jnp.float32)
    weights, biases = _make_params(k2, C_IN, NO_LABELS, len(DILATIONS))

    ref = _reference_forward(x, weights, biases, DILATIONS, PADDINGS)

    out = jax.block_until_ready(
        classifier_module_forward(x, weights, biases, DILATIONS, PADDINGS))
    assert out.shape == ref.shape == (N, NO_LABELS, H, W), (out.shape, ref.shape)
    err_bf16 = float(jnp.max(jnp.abs(out - ref)))
    assert jnp.allclose(out, ref, atol=5e-3, rtol=5e-2), err_bf16

    # same config, full-precision compute path (exposed compute_dtype knob)
    out_f32 = jax.block_until_ready(
        classifier_module_forward(x, weights, biases, DILATIONS, PADDINGS,
                                  compute_dtype=jnp.float32))
    err_f32 = float(jnp.max(jnp.abs(out_f32 - ref)))
    assert jnp.allclose(out_f32, ref, atol=1e-3, rtol=1e-2), err_f32

    # ---- config 2: forces the Cin-reduction + resident-weight kernel path --------
    N2, C2, H2, W2 = 1, 256, 8, 8
    x2 = jax.random.normal(k3, (N2, C2, H2, W2), dtype=jnp.float32)
    weights2, biases2 = _make_params(jax.random.fold_in(k3, 1), C2, NO_LABELS,
                                     len(DILATIONS))
    ref2 = _reference_forward(x2, weights2, biases2, DILATIONS, PADDINGS)
    out2 = jax.block_until_ready(
        classifier_module_forward(x2, weights2, biases2, DILATIONS, PADDINGS,
                                  compute_dtype=jnp.float32, max_cin_tile=128))
    assert out2.shape == ref2.shape == (N2, NO_LABELS, H2, W2), (out2.shape, ref2.shape)
    err2 = float(jnp.max(jnp.abs(out2 - ref2)))
    assert jnp.allclose(out2, ref2, atol=1e-2, rtol=1e-2), err2

    print("KERNEL_OK")
</pallas_src>

<mosaic_0001>
module attributes {stable_mosaic.version = 11 : i64} {
  func.func @_aspp_sum_kernel(%arg0: i32, %arg1: i32, %arg2: memref<1x420x4xbf16, #tpu.memory_space<vmem>>, %arg3: memref<18x4x128xbf16, #tpu.memory_space<vmem>>, %arg4: memref<1x128xf32, #tpu.memory_space<vmem>>, %arg5: memref<1x320x128xf32, #tpu.memory_space<vmem>>) attributes {dimension_semantics = [#tpu.dimension_semantics<parallel>, #tpu.dimension_semantics<arbitrary>], iteration_bounds = array<i64: 2, 1>, scalar_prefetch = 0 : i64, scratch_operands = 0 : i64, tpu.core_type = #tpu.core_type<tc>, window_params = [{transform_indices = @transform_0, window_bounds = array<i64: 1, 420, 4>}, {transform_indices = @transform_1, window_bounds = array<i64: 18, 4, 128>}, {pipeline_mode = #tpu.pipeline_mode<synchronous>, transform_indices = @transform_2, window_bounds = array<i64: 1, 128>}, {transform_indices = @transform_3, window_bounds = array<i64: 1, 320, 128>}]} {
    %c0 = arith.constant 0 : index
    %c21 = arith.constant 21 : index
    %c0_0 = arith.constant 0 : index
    %0 = vector.load %arg2[%c0, %c21, %c0_0] : memref<1x420x4xbf16, #tpu.memory_space<vmem>>, vector<1x320x4xbf16>
    %1 = vector.shape_cast %0 : vector<1x320x4xbf16> to vector<320x4xbf16>
    %c0_1 = arith.constant 0 : index
    %c0_2 = arith.constant 0 : index
    %c0_3 = arith.constant 0 : index
    %2 = vector.load %arg3[%c0_1, %c0_2, %c0_3] : memref<18x4x128xbf16, #tpu.memory_space<vmem>>, vector<1x4x128xbf16>
    %3 = vector.shape_cast %2 : vector<1x4x128xbf16> to vector<4x128xbf16>
    %cst = arith.constant dense<0.000000e+00> : vector<320x128xf32>
    %4 = tpu.matmul %1, %3, %cst {dimension_numbers = #tpu.dot_dimension_numbers<[1], [0], [0], [1], [0, 0, 1, 1], [], []>} : vector<320x4xbf16>, vector<4x128xbf16>, vector<320x128xf32> -> vector<320x128xf32>
    %c0_4 = arith.constant 0 : index
    %c22 = arith.constant 22 : index
    %c0_5 = arith.constant 0 : index
    %5 = vector.load %arg2[%c0_4, %c22, %c0_5] : memref<1x420x4xbf16, #tpu.memory_space<vmem>>, vector<1x320x4xbf16>
    %6 = vector.shape_cast %5 : vector<1x320x4xbf16> to vector<320x4xbf16>
    %c1 = arith.constant 1 : index
    %c0_6 = arith.constant 0 : index
    %c0_7 = arith.constant 0 : index
    %7 = vector.load %arg3[%c1, %c0_6, %c0_7] : memref<18x4x128xbf16, #tpu.memory_space<vmem>>, vector<1x4x128xbf16>
    %8 = vector.shape_cast %7 : vector<1x4x128xbf16> to vector<4x128xbf16>
    %cst_8 = arith.constant dense<0.000000e+00> : vector<320x128xf32>
    %9 = tpu.matmul %6, %8, %cst_8 {dimension_numbers = #tpu.dot_dimension_numbers<[1], [0], [0], [1], [0, 0, 1, 1], [], []>} : vector<320x4xbf16>, vector<4x128xbf16>, vector<320x128xf32> -> vector<320x128xf32>
    %10 = arith.addf %4, %9 : vector<320x128xf32>
    %c0_9 = arith.constant 0 : index
    %c23 = arith.constant 23 : index
    %c0_10 = arith.constant 0 : index
    %11 = vector.load %arg2[%c0_9, %c23, %c0_10] : memref<1x420x4xbf16, #tpu.memory_space<vmem>>, vector<1x320x4xbf16>
    %12 = vector.shape_cast %11 : vector<1x320x4xbf16> to vector<320x4xbf16>
    %c2 = arith.constant 2 : index
    %c0_11 = arith.constant 0 : index
    %c0_12 = arith.constant 0 : index
    %13 = vector.load %arg3[%c2, %c0_11, %c0_12] : memref<18x4x128xbf16, #tpu.memory_space<vmem>>, vector<1x4x128xbf16>
    %14 = vector.shape_cast %13 : vector<1x4x128xbf16> to vector<4x128xbf16>
    %cst_13 = arith.constant dense<0.000000e+00> : vector<320x128xf32>
    %15 = tpu.matmul %12, %14, %cst_13 {dimension_numbers = #tpu.dot_dimension_numbers<[1], [0], [0], [1], [0, 0, 1, 1], [], []>} : vector<320x4xbf16>, vector<4x128xbf16>, vector<320x128xf32> -> vector<320x128xf32>
    %16 = arith.addf %10, %15 : vector<320x128xf32>
    %c0_14 = arith.constant 0 : index
    %c41 = arith.constant 41 : index
    %c0_15 = arith.constant 0 : index
    %17 = vector.load %arg2[%c0_14, %c41, %c0_15] : memref<1x420x4xbf16, #tpu.memory_space<vmem>>, vector<1x320x4xbf16>
    %18 = vector.shape_cast %17 : vector<1x320x4xbf16> to vector<320x4xbf16>
    %c3 = arith.constant 3 : index
    %c0_16 = arith.constant 0 : index
    %c0_17 = arith.constant 0 : index
    %19 = vector.load %arg3[%c3, %c0_16, %c0_17] : memref<18x4x128xbf16, #tpu.memory_space<vmem>>, vector<1x4x128xbf16>
    %20 = vector.shape_cast %19 : vector<1x4x128xbf16> to vector<4x128xbf16>
    %cst_18 = arith.constant dense<0.000000e+00> : vector<320x128xf32>
    %21 = tpu.matmul %18, %20, %cst_18 {dimension_numbers = #tpu.dot_dimension_numbers<[1], [0], [0], [1], [0, 0, 1, 1], [], []>} : vector<320x4xbf16>, vector<4x128xbf16>, vector<320x128xf32> -> vector<320x128xf32>
    %22 = arith.addf %16, %21 : vector<320x128xf32>
    %c0_19 = arith.constant 0 : index
    %c42 = arith.constant 42 : index
    %c0_20 = arith.constant 0 : index
    %23 = vector.load %arg2[%c0_19, %c42, %c0_20] : memref<1x420x4xbf16, #tpu.memory_space<vmem>>, vector<1x320x4xbf16>
    %24 = vector.shape_cast %23 : vector<1x320x4xbf16> to vector<320x4xbf16>
    %c4 = arith.constant 4 : index
    %c0_21 = arith.constant 0 : index
    %c0_22 = arith.constant 0 : index
    %25 = vector.load %arg3[%c4, %c0_21, %c0_22] : memref<18x4x128xbf16, #tpu.memory_space<vmem>>, vector<1x4x128xbf16>
    %26 = vector.shape_cast %25 : vector<1x4x128xbf16> to vector<4x128xbf16>
    %cst_23 = arith.constant dense<0.000000e+00> : vector<320x128xf32>
    %27 = tpu.matmul %24, %26, %cst_23 {dimension_numbers = #tpu.dot_dimension_numbers<[1], [0], [0], [1], [0, 0, 1, 1], [], []>} : vector<320x4xbf16>, vector<4x128xbf16>, vector<320x128xf32> -> vector<320x128xf32>
    %28 = arith.addf %22, %27 : vector<320x128xf32>
    %c0_24 = arith.constant 0 : index
    %c43 = arith.constant 43 : index
    %c0_25 = arith.constant 0 : index
    %29 = vector.load %arg2[%c0_24, %c43, %c0_25] : memref<1x420x4xbf16, #tpu.memory_space<vmem>>, vector<1x320x4xbf16>
    %30 = vector.shape_cast %29 : vector<1x320x4xbf16> to vector<320x4xbf16>
    %c5 = arith.constant 5 : index
    %c0_26 = arith.constant 0 : index
    %c0_27 = arith.constant 0 : index
    %31 = vector.load %arg3[%c5, %c0_26, %c0_27] : memref<18x4x128xbf16, #tpu.memory_space<vmem>>, vector<1x4x128xbf16>
    %32 = vector.shape_cast %31 : vector<1x4x128xbf16> to vector<4x128xbf16>
    %cst_28 = arith.constant dense<0.000000e+00> : vector<320x128xf32>
    %33 = tpu.matmul %30, %32, %cst_28 {dimension_numbers = #tpu.dot_dimension_numbers<[1], [0], [0], [1], [0, 0, 1, 1], [], []>} : vector<320x4xbf16>, vector<4x128xbf16>, vector<320x128xf32> -> vector<320x128xf32>
    %34 = arith.addf %28, %33 : vector<320x128xf32>
    %c0_29 = arith.constant 0 : index
    %c61 = arith.constant 61 : index
    %c0_30 = arith.constant 0 : index
    %35 = vector.load %arg2[%c0_29, %c61, %c0_30] : memref<1x420x4xbf16, #tpu.memory_space<vmem>>, vector<1x320x4xbf16>
    %36 = vector.shape_cast %35 : vector<1x320x4xbf16> to vector<320x4xbf16>
    %c6 = arith.constant 6 : index
    %c0_31 = arith.constant 0 : index
    %c0_32 = arith.constant 0 : index
    %37 = vector.load %arg3[%c6, %c0_31, %c0_32] : memref<18x4x128xbf16, #tpu.memory_space<vmem>>, vector<1x4x128xbf16>
    %38 = vector.shape_cast %37 : vector<1x4x128xbf16> to vector<4x128xbf16>
    %cst_33 = arith.constant dense<0.000000e+00> : vector<320x128xf32>
    %39 = tpu.matmul %36, %38, %cst_33 {dimension_numbers = #tpu.dot_dimension_numbers<[1], [0], [0], [1], [0, 0, 1, 1], [], []>} : vector<320x4xbf16>, vector<4x128xbf16>, vector<320x128xf32> -> vector<320x128xf32>
    %40 = arith.addf %34, %39 : vector<320x128xf32>
    %c0_34 = arith.constant 0 : index
    %c62 = arith.constant 62 : index
    %c0_35 = arith.constant 0 : index
    %41 = vector.load %arg2[%c0_34, %c62, %c0_35] : memref<1x420x4xbf16, #tpu.memory_space<vmem>>, vector<1x320x4xbf16>
    %42 = vector.shape_cast %41 : vector<1x320x4xbf16> to vector<320x4xbf16>
    %c7 = arith.constant 7 : index
    %c0_36 = arith.constant 0 : index
    %c0_37 = arith.constant 0 : index
    %43 = vector.load %arg3[%c7, %c0_36, %c0_37] : memref<18x4x128xbf16, #tpu.memory_space<vmem>>, vector<1x4x128xbf16>
    %44 = vector.shape_cast %43 : vector<1x4x128xbf16> to vector<4x128xbf16>
    %cst_38 = arith.constant dense<0.000000e+00> : vector<320x128xf32>
    %45 = tpu.matmul %42, %44, %cst_38 {dimension_numbers = #tpu.dot_dimension_numbers<[1], [0], [0], [1], [0, 0, 1, 1], [], []>} : vector<320x4xbf16>, vector<4x128xbf16>, vector<320x128xf32> -> vector<320x128xf32>
    %46 = arith.addf %40, %45 : vector<320x128xf32>
    %c0_39 = arith.constant 0 : index
    %c63 = arith.constant 63 : index
    %c0_40 = arith.constant 0 : index
    %47 = vector.load %arg2[%c0_39, %c63, %c0_40] : memref<1x420x4xbf16, #tpu.memory_space<vmem>>, vector<1x320x4xbf16>
    %48 = vector.shape_cast %47 : vector<1x320x4xbf16> to vector<320x4xbf16>
    %c8 = arith.constant 8 : index
    %c0_41 = arith.constant 0 : index
    %c0_42 = arith.constant 0 : index
    %49 = vector.load %arg3[%c8, %c0_41, %c0_42] : memref<18x4x128xbf16, #tpu.memory_space<vmem>>, vector<1x4x128xbf16>
    %50 = vector.shape_cast %49 : vector<1x4x128xbf16> to vector<4x128xbf16>
    %cst_43 = arith.constant dense<0.000000e+00> : vector<320x128xf32>
    %51 = tpu.matmul %48, %50, %cst_43 {dimension_numbers = #tpu.dot_dimension_numbers<[1], [0], [0], [1], [0, 0, 1, 1], [], []>} : vector<320x4xbf16>, vector<4x128xbf16>, vector<320x128xf32> -> vector<320x128xf32>
    %52 = arith.addf %46, %51 : vector<320x128xf32>
    %c0_44 = arith.constant 0 : index
    %c0_45 = arith.constant 0 : index
    %c0_46 = arith.constant 0 : index
    %53 = vector.load %arg2[%c0_44, %c0_45, %c0_46] : memref<1x420x4xbf16, #tpu.memory_space<vmem>>, vector<1x320x4xbf16>
    %54 = vector.shape_cast %53 : vector<1x320x4xbf16> to vector<320x4xbf16>
    %c9 = arith.constant 9 : index
    %c0_47 = arith.constant 0 : index
    %c0_48 = arith.constant 0 : index
    %55 = vector.load %arg3[%c9, %c0_47, %c0_48] : memref<18x4x128xbf16, #tpu.memory_space<vmem>>, vector<1x4x128xbf16>
    %56 = vector.shape_cast %55 : vector<1x4x128xbf16> to vector<4x128xbf16>
    %cst_49 = arith.constant dense<0.000000e+00> : vector<320x128xf32>
    %57 = tpu.matmul %54, %56, %cst_49 {dimension_numbers = #tpu.dot_dimension_numbers<[1], [0], [0], [1], [0, 0, 1, 1], [], []>} : vector<320x4xbf16>, vector<4x128xbf16>, vector<320x128xf32> -> vector<320x128xf32>
    %58 = arith.addf %52, %57 : vector<320x128xf32>
    %c0_50 = arith.constant 0 : index
    %c2_51 = arith.constant 2 : index
    %c0_52 = arith.constant 0 : index
    %59 = vector.load %arg2[%c0_50, %c2_51, %c0_52] : memref<1x420x4xbf16, #tpu.memory_space<vmem>>, vector<1x320x4xbf16>
    %60 = vector.shape_cast %59 : vector<1x320x4xbf16> to vector<320x4xbf16>
    %c10 = arith.constant 10 : index
    %c0_53 = arith.constant 0 : index
    %c0_54 = arith.constant 0 : index
    %61 = vector.load %arg3[%c10, %c0_53, %c0_54] : memref<18x4x128xbf16, #tpu.memory_space<vmem>>, vector<1x4x128xbf16>
    %62 = vector.shape_cast %61 : vector<1x4x128xbf16> to vector<4x128xbf16>
    %cst_55 = arith.constant dense<0.000000e+00> : vector<320x128xf32>
    %63 = tpu.matmul %60, %62, %cst_55 {dimension_numbers = #tpu.dot_dimension_numbers<[1], [0], [0], [1], [0, 0, 1, 1], [], []>} : vector<320x4xbf16>, vector<4x128xbf16>, vector<320x128xf32> -> vector<320x128xf32>
    %64 = arith.addf %58, %63 : vector<320x128xf32>
    %c0_56 = arith.constant 0 : index
    %c4_57 = arith.constant 4 : index
    %c0_58 = arith.constant 0 : index
    %65 = vector.load %arg2[%c0_56, %c4_57, %c0_58] : memref<1x420x4xbf16, #tpu.memory_space<vmem>>, vector<1x320x4xbf16>
    %66 = vector.shape_cast %65 : vector<1x320x4xbf16> to vector<320x4xbf16>
    %c11 = arith.constant 11 : index
    %c0_59 = arith.constant 0 : index
    %c0_60 = arith.constant 0 : index
    %67 = vector.load %arg3[%c11, %c0_59, %c0_60] : memref<18x4x128xbf16, #tpu.memory_space<vmem>>, vector<1x4x128xbf16>
    %68 = vector.shape_cast %67 : vector<1x4x128xbf16> to vector<4x128xbf16>
    %cst_61 = arith.constant dense<0.000000e+00> : vector<320x128xf32>
    %69 = tpu.matmul %66, %68, %cst_61 {dimension_numbers = #tpu.dot_dimension_numbers<[1], [0], [0], [1], [0, 0, 1, 1], [], []>} : vector<320x4xbf16>, vector<4x128xbf16>, vector<320x128xf32> -> vector<320x128xf32>
    %70 = arith.addf %64, %69 : vector<320x128xf32>
    %c0_62 = arith.constant 0 : index
    %c40 = arith.constant 40 : index
    %c0_63 = arith.constant 0 : index
    %71 = vector.load %arg2[%c0_62, %c40, %c0_63] : memref<1x420x4xbf16, #tpu.memory_space<vmem>>, vector<1x320x4xbf16>
    %72 = vector.shape_cast %71 : vector<1x320x4xbf16> to vector<320x4xbf16>
    %c12 = arith.constant 12 : index
    %c0_64 = arith.constant 0 : index
    %c0_65 = arith.constant 0 : index
    %73 = vector.load %arg3[%c12, %c0_64, %c0_65] : memref<18x4x128xbf16, #tpu.memory_space<vmem>>, vector<1x4x128xbf16>
    %74 = vector.shape_cast %73 : vector<1x4x128xbf16> to vector<4x128xbf16>
    %cst_66 = arith.constant dense<0.000000e+00> : vector<320x128xf32>
    %75 = tpu.matmul %72, %74, %cst_66 {dimension_numbers = #tpu.dot_dimension_numbers<[1], [0], [0], [1], [0, 0, 1, 1], [], []>} : vector<320x4xbf16>, vector<4x128xbf16>, vector<320x128xf32> -> vector<320x128xf32>
    %76 = arith.addf %70, %75 : vector<320x128xf32>
    %c0_67 = arith.constant 0 : index
    %c42_68 = arith.constant 42 : index
    %c0_69 = arith.constant 0 : index
    %77 = vector.load %arg2[%c0_67, %c42_68, %c0_69] : memref<1x420x4xbf16, #tpu.memory_space<vmem>>, vector<1x320x4xbf16>
    %78 = vector.shape_cast %77 : vector<1x320x4xbf16> to vector<320x4xbf16>
    %c13 = arith.constant 13 : index
    %c0_70 = arith.constant 0 : index
    %c0_71 = arith.constant 0 : index
    %79 = vector.load %arg3[%c13, %c0_70, %c0_71] : memref<18x4x128xbf16, #tpu.memory_space<vmem>>, vector<1x4x128xbf16>
    %80 = vector.shape_cast %79 : vector<1x4x128xbf16> to vector<4x128xbf16>
    %cst_72 = arith.constant dense<0.000000e+00> : vector<320x128xf32>
    %81 = tpu.matmul %78, %80, %cst_72 {dimension_numbers = #tpu.dot_dimension_numbers<[1], [0], [0], [1], [0, 0, 1, 1], [], []>} : vector<320x4xbf16>, vector<4x128xbf16>, vector<320x128xf32> -> vector<320x128xf32>
    %82 = arith.addf %76, %81 : vector<320x128xf32>
    %c0_73 = arith.constant 0 : index
    %c44 = arith.constant 44 : index
    %c0_74 = arith.constant 0 : index
    %83 = vector.load %arg2[%c0_73, %c44, %c0_74] : memref<1x420x4xbf16, #tpu.memory_space<vmem>>, vector<1x320x4xbf16>
    %84 = vector.shape_cast %83 : vector<1x320x4xbf16> to vector<320x4xbf16>
    %c14 = arith.constant 14 : index
    %c0_75 = arith.constant 0 : index
    %c0_76 = arith.constant 0 : index
    %85 = vector.load %arg3[%c14, %c0_75, %c0_76] : memref<18x4x128xbf16, #tpu.memory_space<vmem>>, vector<1x4x128xbf16>
    %86 = vector.shape_cast %85 : vector<1x4x128xbf16> to vector<4x128xbf16>
    %cst_77 = arith.constant dense<0.000000e+00> : vector<320x128xf32>
    %87 = tpu.matmul %84, %86, %cst_77 {dimension_numbers = #tpu.dot_dimension_numbers<[1], [0], [0], [1], [0, 0, 1, 1], [], []>} : vector<320x4xbf16>, vector<4x128xbf16>, vector<320x128xf32> -> vector<320x128xf32>
    %88 = arith.addf %82, %87 : vector<320x128xf32>
    %c0_78 = arith.constant 0 : index
    %c80 = arith.constant 80 : index
    %c0_79 = arith.constant 0 : index
    %89 = vector.load %arg2[%c0_78, %c80, %c0_79] : memref<1x420x4xbf16, #tpu.memory_space<vmem>>, vector<1x320x4xbf16>
    %90 = vector.shape_cast %89 : vector<1x320x4xbf16> to vector<320x4xbf16>
    %c15 = arith.constant 15 : index
    %c0_80 = arith.constant 0 : index
    %c0_81 = arith.constant 0 : index
    %91 = vector.load %arg3[%c15, %c0_80, %c0_81] : memref<18x4x128xbf16, #tpu.memory_space<vmem>>, vector<1x4x128xbf16>
    %92 = vector.shape_cast %91 : vector<1x4x128xbf16> to vector<4x128xbf16>
    %cst_82 = arith.constant dense<0.000000e+00> : vector<320x128xf32>
    %93 = tpu.matmul %90, %92, %cst_82 {dimension_numbers = #tpu.dot_dimension_numbers<[1], [0], [0], [1], [0, 0, 1, 1], [], []>} : vector<320x4xbf16>, vector<4x128xbf16>, vector<320x128xf32> -> vector<320x128xf32>
    %94 = arith.addf %88, %93 : vector<320x128xf32>
    %c0_83 = arith.constant 0 : index
    %c82 = arith.constant 82 : index
    %c0_84 = arith.constant 0 : index
    %95 = vector.load %arg2[%c0_83, %c82, %c0_84] : memref<1x420x4xbf16, #tpu.memory_space<vmem>>, vector<1x320x4xbf16>
    %96 = vector.shape_cast %95 : vector<1x320x4xbf16> to vector<320x4xbf16>
    %c16 = arith.constant 16 : index
    %c0_85 = arith.constant 0 : index
    %c0_86 = arith.constant 0 : index
    %97 = vector.load %arg3[%c16, %c0_85, %c0_86] : memref<18x4x128xbf16, #tpu.memory_space<vmem>>, vector<1x4x128xbf16>
    %98 = vector.shape_cast %97 : vector<1x4x128xbf16> to vector<4x128xbf16>
    %cst_87 = arith.constant dense<0.000000e+00> : vector<320x128xf32>
    %99 = tpu.matmul %96, %98, %cst_87 {dimension_numbers = #tpu.dot_dimension_numbers<[1], [0], [0], [1], [0, 0, 1, 1], [], []>} : vector<320x4xbf16>, vector<4x128xbf16>, vector<320x128xf32> -> vector<320x128xf32>
    %100 = arith.addf %94, %99 : vector<320x128xf32>
    %c0_88 = arith.constant 0 : index
    %c84 = arith.constant 84 : index
    %c0_89 = arith.constant 0 : index
    %101 = vector.load %arg2[%c0_88, %c84, %c0_89] : memref<1x420x4xbf16, #tpu.memory_space<vmem>>, vector<1x320x4xbf16>
    %102 = vector.shape_cast %101 : vector<1x320x4xbf16> to vector<320x4xbf16>
    %c17 = arith.constant 17 : index
    %c0_90 = arith.constant 0 : index
    %c0_91 = arith.constant 0 : index
    %103 = vector.load %arg3[%c17, %c0_90, %c0_91] : memref<18x4x128xbf16, #tpu.memory_space<vmem>>, vector<1x4x128xbf16>
    %104 = vector.shape_cast %103 : vector<1x4x128xbf16> to vector<4x128xbf16>
    %cst_92 = arith.constant dense<0.000000e+00> : vector<320x128xf32>
    %105 = tpu.matmul %102, %104, %cst_92 {dimension_numbers = #tpu.dot_dimension_numbers<[1], [0], [0], [1], [0, 0, 1, 1], [], []>} : vector<320x4xbf16>, vector<4x128xbf16>, vector<320x128xf32> -> vector<320x128xf32>
    %106 = arith.addf %100, %105 : vector<320x128xf32>
    %c0_93 = arith.constant 0 : index
    %c0_94 = arith.constant 0 : index
    %107 = vector.load %arg4[%c0_93, %c0_94] : memref<1x128xf32, #tpu.memory_space<vmem>>, vector<1x128xf32>
    %108 = vector.broadcast %107 : vector<1x128xf32> to vector<320x128xf32>
    %109 = arith.addf %106, %108 : vector<320x128xf32>
    %c0_95 = arith.constant 0 : index
    %c0_96 = arith.constant 0 : index
    %c0_97 = arith.constant 0 : index
    %110 = vector.load %arg5[%c0_95, %c0_96, %c0_97] : memref<1x320x128xf32, #tpu.memory_space<vmem>>, vector<1x320x128xf32>
    %111 = vector.shape_cast %110 : vector<1x320x128xf32> to vector<320x128xf32>
    %112 = vector.shape_cast %109 : vector<320x128xf32> to vector<1x320x128xf32>
    tpu.vector_store %arg5[%c0_95, %c0_96, %c0_97], %112 {strides = array<i32>} : memref<1x320x128xf32, #tpu.memory_space<vmem>>, vector<1x320x128xf32>,
    return
  }
  func.func @transform_0(%arg0: i32, %arg1: i32) -> (i32, i32, i32) {
    %c0_i32 = arith.constant 0 : i32
    %c0_i32_0 = arith.constant 0 : i32
    return %arg0, %c0_i32, %arg1 : i32, i32, i32
  }
  func.func @transform_1(%arg0: i32, %arg1: i32) -> (i32, i32, i32) {
    %c0_i32 = arith.constant 0 : i32
    %c0_i32_0 = arith.constant 0 : i32
    %c0_i32_1 = arith.constant 0 : i32
    return %c0_i32, %arg1, %c0_i32_0 : i32, i32, i32
  }
  func.func @transform_2(%arg0: i32, %arg1: i32) -> (i32, i32) {
    %c0_i32 = arith.constant 0 : i32
    %c0_i32_0 = arith.constant 0 : i32
    %c0_i32_1 = arith.constant 0 : i32
    return %c0_i32, %c0_i32_0 : i32, i32
  }
  func.func @transform_3(%arg0: i32, %arg1: i32) -> (i32, i32, i32) {
    %c0_i32 = arith.constant 0 : i32
    %c0_i32_0 = arith.constant 0 : i32
    %c0_i32_1 = arith.constant 0 : i32
    return %arg0, %c0_i32, %c0_i32_0 : i32, i32, i32
  }
}

</mosaic_0001>

<bundles_post_ra>
// kernel: tpu_custom_call.1
= control target key start
LH: loop header
LB: loop body
LE: loop exit
PB: predicated region body
PF: predicated region fallthrough
CT: control target
= control target key end

     0   :  { %8 = vsyncpa [#allocation3], 0  ;;  %s13229_s0 = inlined_call_operand.vmem [shape: bf16[2,420,4], index: 0, kind: input, shape index: {}]   ;;  %s13230_s1 = inlined_call_operand.vmem [shape: bf16[18,4,128], index: 1, kind: input, shape index: {}]   ;;  %s13231_s2 = inlined_call_operand.vmem [shape: f32[1,128], index: 2, kind: input, shape index: {}]   ;;  %s13232_s3 = inlined_call_operand.hbm [shape: f32[2,320,128], index: 3, kind: output, shape index: {}]  }
   0x1   :  { %10 = vsyncpa [#allocation3 + $0x1], 0  ;;  %s10039_s12 = smov 0   ;;  %s10041_s13 = smov 0  }
   0x2   :  { %s10043_s14 = smov 0   ;;  %s10045_s15 = smov 0  }
   0x3   :  { %s10047_s16 = smov 0   ;;  %s10049_s17 = smov 0  }
   0x4 LB: > { %s7965_s18 = sadd.s32 4294967295, %s10014_s17   ;;  %s7966_s19 = sadd.s32 4294967294, %s10014_s17   ;;  %s10014_s17 = sphi %s10049_s17, %s16_s17   ;;  %s10010_s16 = sphi %s10047_s16, %s13491_s16   ;;  %s10006_s15 = sphi %s10045_s15, %s13490_s15   ;;  %s10002_s14 = sphi %s10043_s14, %s13489_s14   ;;  %s9998_s13 = sphi %s10041_s13, %s13488_s13   ;;  %s9994_s12 = sphi %s10039_s12, %s13487_s12  }
   0x5   : > { %s28_s20 = sadd.s32 1, %s10010_s16  ;;  %s110_s21 = sadd.s32 1, %s10002_s14 }
   0x6   : > { %p30_p0 = scmp.ge.s32.totalorder %s28_s20, 2  ;;  %p120_p1 = scmp.ne.s32.totalorder %s10002_s14, %s9998_s13 }
   0x7   : > { %p121_p2 = scmp.eq.s32.totalorder %s7965_s18, 1  ;;  %p126_p3 = scmp.ne.s32.totalorder %s9998_s13, %s9994_s12 }
   0x8   : > { %s13493_s20 = smov (%p30_p0, %s28_s20), 0  ;;  %p127_p5 = scmp.eq.s32.totalorder %s7966_s19, 1 }
   0x9   : > { %p10079_p4 = por %p121_p2, %p120_p1  ;;  %s107_s23 = ssub.s32 %s10010_s16, %s13493_s20 }
   0xa   : > { %p7970_p6 = scmp.ge.s32.totalorder %s10014_s17, 1  ;;  %p108_p7 = scmp.eq.s32.totalorder %s107_s23, 0 }
   0xb   : > { %p10086_p8 = por %p127_p5, %p126_p3  ;;  %p166_p9 = scmp.lt.s32.totalorder %s10014_s17, 3 }
   0xc   : > { %s10092_s25 = scalar_select %p108_p7, %s10002_s14, %s110_s21  }
   0xd   : > { %p167_p10 = pnand %p7970_p6, %p166_p9 }
   0xf   : > { %170 = sbr.rel (%p167_p10) target bundleno = 968 (0x3c8), region = 32 }
  0x14   : > { %v7972_v0 = vld [vmem:[%s13230_s1 + $0x2] sm:$0x3]  ;;  %vm461_vm0 = vcmask 1041408   ;;  %p197_p11 = scmp.lt.s32.totalorder %s10006_s15, 1  ;;  %v251_v2 = vld [vmem:[%s13230_s1] sm:$0x3] }
  0x15   : > { %9663 = vmatprep.subr.msk.bf16.mxu0 %vm461_vm0, %v7972_v0  ;;  %v463_v1 = vsel %vm461_vm0, %v7972_v0, 0  ;;  %v8035_v3 = vld [vmem:[%s13230_s1 + $0x4] sm:$0x3]  ;;  %9664 = vmatprep.subr.msk.bf16.mxu1 %vm461_vm0, %v251_v2  ;;  %v911_v4 = vsel %vm461_vm0, %v251_v2, 0  ;;  %v8057_v5 = vld [vmem:[%s13230_s1 + $0x6] sm:$0x3] }
  0x16   : > { %8908 = vmatpush3.bf16.msra.mxu0 %v463_v1  ;;  %s198_s5 = scalar_select %p197_p11, %s10006_s15, 1  ;;  %8950 = vmatpush3.bf16.msra.mxu1 %v911_v4  ;;  %vm358_vm1 = vcmask 1044480   ;;  %vm661_vm2 = vsmask.f32 5376  ;;  %vm400_vm3 = vcmask 31744   ;;  %v1267_v11 = vsel %vm461_vm0, %v8035_v3, 0 }
  0x17   : > { %9665 = vmatprep.subr.msk.bf16.mxu0 %vm461_vm0, %v8035_v3  ;;  %9666 = vmatprep.subr.msk.bf16.mxu1 %vm461_vm0, %v8057_v5  ;;  %v10158_v34 = vld [vmem:[%s13230_s1 + $0x8] sm:$0x3]  ;;  %v1874_v45 = vsel %vm461_vm0, %v8057_v5, 0  ;;  %v10181_v48 = vld [vmem:[%s13230_s1 + $0xa] sm:$0x3]  ;;  %vm2115_vm7 = vcmask 1046528  }
  0x18   : > { %s9682_s8 = smul.u32 212, %s198_s5  ;;  %vm1112_vm4 = vsmask.f32 4352  ;;  %vm1648_vm5 = vsmask.f32 7424  ;;  %vm5148_vm8 = vcmask 1045504  }
  0x19   : > { %vm2459_vm6 = vsmask.f32 6400  ;;  %s9683_s18 = smul.u32 5120, %s10006_s15  ;;  %s10016_s28 = smov [#allocation2]  }
  0x1a   : > { %s10117_s11 = scalar_lea.vmem %s13229_s0, %s9682_s8  ;;  %s9942_s29 = sshll.u32 %s10016_s28, 4  ;;  %s9943_s29 = int_to_ptr.vmem [resolvable:$false] %s9942_s29 }
  0x1b   : > { %v211_v6 = vld [vmem:[%s10117_s11 + $0xc] sm:$0xf]  ;;  %v252_v7 = vld [vmem:[%s10117_s11 + $0x8] sm:$0x8]  ;;  %v10122_v8 = vld [vmem:[%s10117_s11 + $0x10] sm:$0xff]   ;;  %s13175_s26 = scalar_lea.hbm %s13232_s3, %s9683_s18  ;;  %s9944_s30 = scalar_lea.vmem %s9943_s29, 10240 }
  0x1c   : > { %v10124_v9 = vcombine.low %v252_v7, %v211_v6  ;;  %v10127_v10 = vld [vmem:[%s10117_s11 + $0x18] sm:$0xff]   ;;  %v210_v12 = vld [vmem:[%s10117_s11 + $0x8] sm:$0xc]  ;;  %v360_v13 = vrot.slane %v10122_v8, 3  ;;  %v671_v15 = vshrl.u32 %v10122_v8, 16  ;;  %v674_v16 = vshll.u32 %v10122_v8, 16 }
  0x1d   : > { %v8014_v14 = vcombine.low %v210_v12, %v211_v6  ;;  %v10135_v17 = vld [vmem:[%s10117_s11 + $0x20] sm:$0xff]   ;;  %v362_v19 = vrot.slane %v10127_v10, 3  ;;  %v680_v20 = vshrl.u32 %v10127_v10, 16  ;;  %v683_v21 = vshll.u32 %v10127_v10, 16  ;;  %v10152_v30 = vld [vmem:[%s10117_s11 + $0x28] sm:$0xff]   ;;  %v10164_v38 = vld [vmem:[%s10117_s11 + $0x30] sm:$0xff]  }
  0x1e   : > { %v359_v18 = vrot.slane %v10124_v9, 3  ;;  %v673_v24 = vrot.slane %v671_v15, 2  ;;  %v676_v25 = vrot.slane %v674_v16, 3  ;;  %v364_v36 = vrot.slane %v10135_v17, 3  ;;  %v10170_v43 = vld [vmem:[%s10117_s11 + $0x38] sm:$0xff]   ;;  %v10197_v56 = vld [vmem:[%s10117_s11 + $0x40] sm:$0xff]  }
  0x1f   : > { %v663_v22 = vshrl.u32 %v8014_v14, 16  ;;  %v666_v23 = vshll.u32 %v8014_v14, 16  ;;  %v363_v27 = vsel %vm358_vm1, %v360_v13, %v362_v19  ;;  %v682_v28 = vrot.slane %v680_v20, 2  ;;  %v10216_v4 = vld [vmem:[%s10117_s11 + $0x48] sm:$0xff]   ;;  %v10224_v12 = vld [vmem:[%s10117_s11 + $0x50] sm:$0xff]  }
  0x20   : > { %v361_v26 = vsel %vm358_vm1, %v359_v18, %v360_v13  ;;  %v685_v29 = vrot.slane %v683_v21, 3  ;;  %v677_v33 = vor.u32 %v676_v25, %v673_v24  ;;  %v366_v37 = vrot.slane %v10152_v30, 3 }
  0x21   : > { %8909 = vmatprep.mubr.msk.bf16.mxu0 %vm400_vm3, %v361_v26  ;;  %v665_v31 = vrot.slane %v663_v22, 2  ;;  %v668_v32 = vrot.slane %v666_v23, 3  ;;  %v689_v40 = vshrl.u32 %v10135_v17, 16  ;;  %v692_v41 = vshll.u32 %v10135_v17, 16 }
  0x22   : > { %8910 = vmatmul.mubr.msk.bf16.vlgmr.msra.gmra.mxu0 %vm400_vm3, %v363_v27  ;;  %v686_v35 = vor.u32 %v685_v29, %v682_v28  ;;  %v698_v42 = vshrl.u32 %v10152_v30, 16  ;;  %v365_v46 = vsel %vm358_vm1, %v362_v19, %v364_v36  ;;  %v701_v47 = vshll.u32 %v10152_v30, 16 }
  0x23   : > { %8992 = vmatpush3.bf16.msra.mxu0 %v1267_v11  ;;  %v669_v39 = vor.u32 %v668_v32, %v665_v31  ;;  %8913 = vmatprep.mubr.msk.bf16.mxu0 %vm400_vm3, %v365_v46  ;;  %v691_v50 = vrot.slane %v689_v40, 2  ;;  %v694_v51 = vrot.slane %v692_v41, 3  ;;  %v368_v54 = vrot.slane %v10164_v38, 3 }
  0x24   : > { %v687_v44 = vsel %vm661_vm2, %v677_v33, %v686_v35  ;;  %9667 = vmatprep.subr.msk.bf16.mxu0 %vm461_vm0, %v10158_v34  ;;  %v700_v52 = vrot.slane %v698_v42, 2  ;;  %v703_v53 = vrot.slane %v701_v47, 3  ;;  %v707_v55 = vshrl.u32 %v10164_v38, 16 }
  0x25   : > { %v678_v49 = vsel %vm661_vm2, %v669_v39, %v677_v33  ;;  %v367_v57 = vsel %vm358_vm1, %v364_v36, %v366_v37  ;;  %v695_v58 = vor.u32 %v694_v51, %v691_v50  ;;  %v710_v59 = vshll.u32 %v10164_v38, 16  ;;  %v10245_v33 = vld [vmem:[%s10117_s11 + $0x58] sm:$0xff]  }
  0x26   : > { %8951 = vmatprep.mubr.msk.bf16.mxu1 %vm400_vm3, %v678_v49  ;;  %v716_v60 = vshrl.u32 %v10170_v43, 16  ;;  %v704_v61 = vor.u32 %v703_v53, %v700_v52  ;;  %v369_v62 = vsel %vm358_vm1, %v366_v37, %v368_v54  ;;  %v709_v63 = vrot.slane %v707_v55, 2  ;;  %v10252_v37 = vld [vmem:[%s10117_s11 + $0x60] sm:$0xff]  }
  0x27   : > { %8952 = vmatmul.mubr.msk.bf16.vlgmr.msra.gmra.mxu1 %vm400_vm3, %v687_v44  ;;  %v719_v0 = vshll.u32 %v10170_v43, 16  ;;  %v696_v1 = vsel %vm661_vm2, %v686_v35, %v695_v58  ;;  %v712_v2 = vrot.slane %v710_v59, 3  ;;  %v370_v3 = vrot.slane %v10170_v43, 3 }
  0x28   : > { %9034 = vmatpush3.bf16.msra.mxu1 %v1874_v45  ;;  %8955 = vmatprep.mubr.msk.bf16.mxu1 %vm400_vm3, %v696_v1  ;;  %v725_v5 = vshrl.u32 %v10197_v56, 16  ;;  %v718_v7 = vrot.slane %v716_v60, 2  ;;  %v728_v11 = vshll.u32 %v10197_v56, 16  ;;  %v705_v13 = vsel %vm661_vm2, %v695_v58, %v704_v61 }
  0x29   : > { %9668 = vmatprep.subr.msk.bf16.mxu1 %vm461_vm0, %v10181_v48  ;;  %v713_v6 = vor.u32 %v712_v2, %v709_v63  ;;  %v721_v14 = vrot.slane %v719_v0, 3  ;;  %v372_v18 = vrot.slane %v10197_v56, 3  ;;  %v371_v24 = vsel %vm358_vm1, %v368_v54, %v370_v3  ;;  %v10273_v63 = vld [vmem:[%s10117_s11 + $0x68] sm:$0xff]  }
  0x2a   : > { %8914 = vmatmul.mubr.msk.bf16.gmra.mxu0 %vm400_vm3, %v367_v57  ;;  %v727_v22 = vrot.slane %v725_v5, 2  ;;  %v730_v23 = vrot.slane %v728_v11, 3  ;;  %v734_v25 = vshrl.u32 %v10216_v4, 16  ;;  %v737_v28 = vshll.u32 %v10216_v4, 16 }
  0x2b   : > { %8917 = vmatprep.mubr.msk.bf16.mxu0 %vm400_vm3, %v369_v62  ;;  %v714_v19 = vsel %vm661_vm2, %v704_v61, %v713_v6  ;;  %v722_v26 = vor.u32 %v721_v14, %v718_v7  ;;  %v373_v27 = vsel %vm358_vm1, %v370_v3, %v372_v18  ;;  %v743_v31 = vshrl.u32 %v10224_v12, 16  ;;  %v10280_v3 = vld [vmem:[%s10117_s11 + $0x70] sm:$0xff]  }
  0x2c   : > { %v731_v29 = vor.u32 %v730_v23, %v727_v22  ;;  %v746_v32 = vshll.u32 %v10224_v12, 16  ;;  %v374_v35 = vrot.slane %v10216_v4, 3  ;;  %v736_v36 = vrot.slane %v734_v25, 2  ;;  %v10440_v4 = vld [vmem:[%s10117_s11 + $0x18] sm:$0xf] }
  0x2d   : > { %v723_v39 = vsel %vm661_vm2, %v713_v6, %v722_v26  ;;  %v739_v44 = vrot.slane %v737_v28, 3  ;;  %v376_v45 = vrot.slane %v10224_v12, 3  ;;  %v745_v49 = vrot.slane %v743_v31, 2 }
  0x2e   : > { %v732_v46 = vsel %vm661_vm2, %v722_v26, %v731_v29  ;;  %v748_v50 = vrot.slane %v746_v32, 3  ;;  %v375_v51 = vsel %vm358_vm1, %v372_v18, %v374_v35  ;;  %v752_v52 = vshrl.u32 %v10245_v33, 16 }
  0x2f   : > { %8956 = vmatmul.mubr.msk.bf16.gmra.mxu1 %vm400_vm3, %v705_v13  ;;  %v740_v53 = vor.u32 %v739_v44, %v736_v36  ;;  %v377_v54 = vsel %vm358_vm1, %v374_v35, %v376_v45  ;;  %v755_v57 = vshll.u32 %v10245_v33, 16  ;;  %v761_v61 = vshrl.u32 %v10252_v37, 16 }
  0x30   : > { %8959 = vmatprep.mubr.msk.bf16.mxu1 %vm400_vm3, %v714_v19  ;;  %v749_v58 = vor.u32 %v748_v50, %v745_v49  ;;  %v764_v62 = vshll.u32 %v10252_v37, 16  ;;  %v378_v1 = vrot.slane %v10245_v33, 3  ;;  %v754_v2 = vrot.slane %v752_v52, 2 }
  0x31   : > { %v741_v6 = vsel %vm661_vm2, %v731_v29, %v740_v53  ;;  %v757_v7 = vrot.slane %v755_v57, 3  ;;  %v380_v13 = vrot.slane %v10252_v37, 3  ;;  %v763_v18 = vrot.slane %v761_v61, 2  ;;  %v10298_v29 = vld [vmem:[%s10117_s11 + $0x78] sm:$0xff]  }
  0x32   : > { %8918 = vmatmul.mubr.msk.bf16.gmra.mxu0 %vm400_vm3, %v371_v24  ;;  %v750_v14 = vsel %vm661_vm2, %v740_v53, %v749_v58  ;;  %v766_v19 = vrot.slane %v764_v62, 3  ;;  %v770_v22 = vshrl.u32 %v10273_v63, 16  ;;  %v773_v23 = vshll.u32 %v10273_v63, 16  ;;  %v10492_v37 = vld [vmem:[%s10117_s11 + $0x1c] sm:$0xff]  }
  0x33   : > { %8921 = vmatprep.mubr.msk.bf16.mxu0 %vm400_vm3, %v373_v27  ;;  %v379_v24 = vsel %vm358_vm1, %v376_v45, %v378_v1  ;;  %v758_v26 = vor.u32 %v757_v7, %v754_v2  ;;  %v381_v27 = vsel %vm358_vm1, %v378_v1, %v380_v13  ;;  %v13234_v36 = vshrl.u32 %v10280_v3, 16 }
  0x34   : > { %v767_v35 = vor.u32 %v766_v19, %v763_v18  ;;  %v1125_v44 = vrot.slane %v680_v20, 3  ;;  %v1126_v45 = vrot.slane %v683_v21, 4  ;;  %v775_v49 = vrot.slane %v773_v23, 3 }
  0x35   : > { %v382_v50 = vrot.slane %v10273_v63, 3  ;;  %v759_v53 = vsel %vm661_vm2, %v749_v58, %v758_v26  ;;  %v384_v20 = vrot.slane %v10280_v3, 3  ;;  %v788_v10 = vshrl.u32 %v10298_v29, 16 }
  0x36   : > { %v768_v21 = vsel %vm661_vm2, %v758_v26, %v767_v35  ;;  %v791_v2 = vshll.u32 %v10298_v29, 16  ;;  %v1114_v7 = vshrl.u32 %v10124_v9, 16  ;;  %v1117_v58 = vshll.u32 %v10124_v9, 16 }
  0x37   : > { %8960 = vmatmul.mubr.msk.bf16.gmra.mxu1 %vm400_vm3, %v723_v39  ;;  %v13233_v39 = vshll.u32 %v10280_v3, 16  ;;  %v383_v18 = vsel %vm358_vm1, %v380_v13, %v382_v50  ;;  %v1127_v26 = vor.u32 %v1126_v45, %v1125_v44  ;;  %v10342_v13 = vld [vmem:[%s10117_s11 + $0x90] sm:$0xff]  }
  0x38   : > { %8963 = vmatprep.mubr.msk.bf16.mxu1 %vm400_vm3, %v732_v46  ;;  %v772_v46 = vrot.slane %v770_v22, 2  ;;  %v793_v44 = vrot.slane %v791_v2, 3 }
  0x39   : > { %v784_v1 = vrot.slane %v13233_v39, 3 }
  0x3a   : > { %8922 = vmatmul.mubr.msk.bf16.gmra.mxu0 %vm400_vm3, %v375_v51  ;;  %v10314_v51 = vld [vmem:[%s10117_s11 + $0x80] sm:$0xff]  }
  0x3b   : > { %8925 = vmatprep.mubr.msk.bf16.mxu0 %vm400_vm3, %v377_v54  ;;  %v781_v54 = vrot.slane %v13234_v36, 2  ;;  %v797_v19 = vshrl.u32 %v10314_v51, 16  ;;  %v13235_v9 = vshll.u32 %v10314_v51, 16 }
  0x3d   : > { %v785_v39 = vor.u32 %v784_v1, %v781_v54  ;;  %v802_v1 = vrot.slane %v13235_v9, 3  ;;  %v10384_v9 = vld [vmem:[%s10117_s11 + $0x98] sm:$0xff]  }
  0x3e   : > { %v827_v56 = vshll.u32 %v10384_v9, 16 }
  0x3f   : > { %8964 = vmatmul.mubr.msk.bf16.gmra.mxu1 %vm400_vm3, %v741_v6  ;;  %v776_v6 = vor.u32 %v775_v49, %v772_v46  ;;  %v10337_v46 = vld [vmem:[%s10117_s11 + $0x88] sm:$0xff]   ;;  %v1116_v49 = vrot.slane %v1114_v7, 3 }
  0x40   : > { %8967 = vmatprep.mubr.msk.bf16.mxu1 %vm400_vm3, %v750_v14  ;;  %v1121_v14 = vrot.slane %v671_v15, 3  ;;  %v1119_v15 = vrot.slane %v1117_v58, 4  ;;  %v1130_v58 = vrot.slane %v692_v41, 4 }
  0x41   : > { %v777_v8 = vsel %vm661_vm2, %v767_v35, %v776_v6  ;;  %v1129_v35 = vrot.slane %v689_v40, 3  ;;  %v1134_v40 = vrot.slane %v701_v47, 4  ;;  %v818_v47 = vshll.u32 %v10342_v13, 16 }
  0x42   : > { %8926 = vmatmul.mubr.msk.bf16.gmra.mxu0 %vm400_vm3, %v379_v24  ;;  %v1122_v24 = vrot.slane %v674_v16, 4  ;;  %v790_v16 = vrot.slane %v788_v10, 2  ;;  %v1120_v45 = vor.u32 %v1119_v15, %v1116_v49  ;;  %v809_v49 = vshll.u32 %v10337_v46, 16 }
  0x43   : > { %8929 = vmatprep.mubr.msk.bf16.mxu0 %vm400_vm3, %v381_v27  ;;  %v385_v27 = vsel %vm358_vm1, %v382_v50, %v384_v20  ;;  %v388_v50 = vrot.slane %v10314_v51, 3  ;;  %v1131_v15 = vor.u32 %v1130_v58, %v1129_v35 }
  0x44   : > { %v1123_v36 = vor.u32 %v1122_v24, %v1121_v14  ;;  %v1133_v14 = vrot.slane %v698_v42, 3  ;;  %v390_v24 = vrot.slane %v10337_v46, 3  ;;  %v794_v41 = vor.u32 %v793_v44, %v790_v16 }
  0x45   : > { %v1142_v16 = vrot.slane %v719_v0, 4  ;;  %v811_v44 = vrot.slane %v809_v49, 3  ;;  %v1145_v0 = vrot.slane %v725_v5, 3  ;;  %v1149_v5 = vrot.slane %v734_v25, 3 }
  0x46   : > { %v10355_v54 = vsel %vm1112_vm4, %v1123_v36, %v1127_v26  ;;  %v10362_v7 = vsel %vm1112_vm4, %v1120_v45, %v1123_v36  ;;  %v815_v36 = vshrl.u32 %v10342_v13, 16  ;;  %v1135_v42 = vor.u32 %v1134_v40, %v1133_v14 }
  0x47   : > { %8968 = vmatmul.mubr.msk.bf16.gmra.mxu1 %vm400_vm3, %v759_v53  ;;  %v386_v53 = vrot.slane %v10298_v29, 3  ;;  %v10381_v45 = vsel %vm1112_vm4, %v1127_v26, %v1131_v15  ;;  %v391_v58 = vsel %vm358_vm1, %v388_v50, %v390_v24  ;;  %v1146_v40 = vrot.slane %v728_v11, 4 }
  0x48   : > { %8971 = vmatprep.mubr.msk.bf16.mxu1 %vm400_vm3, %v768_v21  ;;  %v799_v21 = vrot.slane %v797_v19, 2  ;;  %v10387_v35 = vsel %vm1112_vm4, %v1131_v15, %v1135_v42  ;;  %v817_v38 = vrot.slane %v815_v36, 2 }
  0x49   : > { %v387_v17 = vsel %vm358_vm1, %v384_v20, %v386_v53  ;;  %v1137_v20 = vrot.slane %v707_v55, 3  ;;  %v392_v55 = vrot.slane %v10342_v13, 3  ;;  %v1147_v11 = vor.u32 %v1146_v40, %v1145_v0  ;;  %v10577_v13 = vld [vmem:[%s10117_s11 + $0x4c] sm:$0xff]  }
  0x4a   : > { %8930 = vmatmul.mubr.msk.bf16.gmra.mxu0 %vm400_vm3, %v383_v18  ;;  %v786_v18 = vsel %vm661_vm2, %v776_v6, %v785_v39  ;;  %v389_v6 = vsel %vm358_vm1, %v386_v53, %v388_v50  ;;  %v803_v30 = vor.u32 %v802_v1, %v799_v21  ;;  %v1141_v53 = vrot.slane %v716_v60, 3 }
  0x4b   : > { %8933 = vmatprep.mubr.msk.bf16.mxu0 %vm400_vm3, %v385_v27  ;;  %v806_v27 = vshrl.u32 %v10337_v46, 16  ;;  %v795_v21 = vsel %vm661_vm2, %v785_v39, %v794_v41  ;;  %v820_v1 = vrot.slane %v818_v47, 3  ;;  %v824_v39 = vshrl.u32 %v10384_v9, 16 }
  0x4c   : > { %v1143_v43 = vor.u32 %v1142_v16, %v1141_v53  ;;  %v804_v14 = vsel %vm661_vm2, %v794_v41, %v803_v30  ;;  %v1150_v50 = vrot.slane %v737_v28, 4  ;;  %v394_v41 = vrot.slane %v10384_v9, 3 }
  0x4d   : > { %v808_v26 = vrot.slane %v806_v27, 2  ;;  %v1153_v16 = vrot.slane %v743_v31, 3  ;;  %v829_v31 = vrot.slane %v827_v56, 3 }
  0x4e   : > { %v1151_v28 = vor.u32 %v1150_v50, %v1149_v5  ;;  %v395_v33 = vsel %vm358_vm1, %v392_v55, %v394_v41  ;;  %v1162_v5 = vrot.slane %v764_v62, 4 }
  0x4f   : > { %8972 = vmatmul.mubr.msk.bf16.gmra.mxu1 %vm400_vm3, %v777_v8  ;;  %v1138_v8 = vrot.slane %v710_v59, 4  ;;  %v10407_v59 = vld [vmem:[%s10117_s11 + $0xa0] sm:$0xff]  }
  0x50   : > { %8975 = vmatprep.mubr.msk.bf16.mxu1 %vm400_vm3, %v786_v18  ;;  %v833_v25 = vshrl.u32 %v10407_v59, 16  ;;  %v836_v53 = vshll.u32 %v10407_v59, 16  ;;  %v396_v0 = vrot.slane %v10407_v59, 3 }
  0x51   : > { %v1139_v60 = vor.u32 %v1138_v8, %v1137_v20  ;;  %v10435_v20 = vld [vmem:[%s10117_s11 + $0xa8] ss:$0 sps:$4 sm:$0x77]   ;;  %v1502_v8 = vld [vmem:[%s10117_s11 + $0x14] sm:$0xf] }
  0x52   : > { %8934 = vmatmul.mubr.msk.bf16.gmra.mxu0 %vm400_vm3, %v387_v17  ;;  %v812_v17 = vor.u32 %v811_v44, %v808_v26  ;;  %v10444_v26 = vsel %vm1112_vm4, %v1143_v43, %v1147_v11  ;;  %v10452_v44 = vsel %vm1112_vm4, %v1147_v11, %v1151_v28  ;;  %v835_v12 = vrot.slane %v833_v25, 2 }
  0x53   : > { %8937 = vmatprep.mubr.msk.bf16.mxu0 %vm400_vm3, %v389_v6  ;;  %v10417_v18 = vsel %vm1112_vm4, %v1135_v42, %v1139_v60  ;;  %v10423_v15 = vsel %vm1112_vm4, %v1139_v60, %v1143_v43  ;;  %v393_v42 = vsel %vm358_vm1, %v390_v24, %v392_v55  ;;  %v821_v6 = vor.u32 %v820_v1, %v817_v38 }
  0x54   : > { %v826_v24 = vrot.slane %v824_v39, 2  ;;  %v1154_v38 = vrot.slane %v746_v32, 4  ;;  %v1157_v60 = vrot.slane %v752_v52, 3  ;;  %v1158_v1 = vrot.slane %v755_v57, 4 }
  0x55   : > { %v822_v43 = vsel %vm661_vm2, %v812_v17, %v821_v6  ;;  %v838_v52 = vrot.slane %v836_v53, 3  ;;  %v842_v57 = vshrl.u32 %v10435_v20, 16  ;;  %v845_v50 = vshll.u32 %v10435_v20, 16 }
  0x56   : > { %v1155_v32 = vor.u32 %v1154_v38, %v1153_v16  ;;  %v1166_v55 = vrot.slane %v773_v23, 4  ;;  %v830_v11 = vor.u32 %v829_v31, %v826_v24  ;;  %v1173_v31 = vrot.slane %v788_v10, 3 }
  0x57   : > { %8976 = vmatmul.mubr.msk.bf16.gmra.mxu1 %vm400_vm3, %v795_v21  ;;  %v813_v21 = vsel %vm661_vm2, %v803_v30, %v812_v17  ;;  %v8058_v30 = vcombine.low %v1502_v8, %v10440_v4  ;;  %v398_v8 = vrot.slane %v10435_v20, 3  ;;  %v13309_v20 = vshll.u32 %v10280_v3, 16 }
  0x58   : > { %8979 = vmatprep.mubr.msk.bf16.mxu1 %vm400_vm3, %v804_v14  ;;  %v1161_v14 = vrot.slane %v761_v61, 3  ;;  %v10476_v40 = vsel %vm1112_vm4, %v1151_v28, %v1155_v32  ;;  %v1165_v61 = vrot.slane %v770_v22, 3  ;;  %v839_v28 = vor.u32 %v838_v52, %v835_v12 }
  0x59   : > { %v1652_v16 = vshll.u32 %v8058_v30, 16  ;;  %v13308_v22 = vshrl.u32 %v10280_v3, 16  ;;  %v1174_v12 = vrot.slane %v791_v2, 4  ;;  %v1650_v52 = vshrl.u32 %v8058_v30, 16 }
  0x5a   : > { %8938 = vmatmul.mubr.msk.bf16.gmra.mxu0 %vm400_vm3, %v391_v58  ;;  %v1159_v58 = vor.u32 %v1158_v1, %v1157_v60  ;;  %v1163_v62 = vor.u32 %v1162_v5, %v1161_v14  ;;  %v1167_v38 = vor.u32 %v1166_v55, %v1165_v61  ;;  %v844_v60 = vrot.slane %v842_v57, 2  ;;  %v10528_v5 = vld [vmem:[%s10117_s11 + $0x2c] sm:$0xff]  }
  0x5b   : > { %8941 = vmatprep.mubr.msk.bf16.mxu0 %vm400_vm3, %v393_v42  ;;  %v397_v42 = vsel %vm358_vm1, %v394_v41, %v396_v0  ;;  %v1169_v23 = vrot.slane %v13308_v22, 3  ;;  %v847_v41 = vrot.slane %v845_v50, 3  ;;  %v831_v1 = vsel %vm661_vm2, %v821_v6, %v830_v11 }
  0x5c   : > { %v10483_v17 = vsel %vm1112_vm4, %v1155_v32, %v1159_v58  ;;  %v10497_v63 = vsel %vm1112_vm4, %v1159_v58, %v1163_v62  ;;  %v10503_v24 = vsel %vm1112_vm4, %v1163_v62, %v1167_v38  ;;  %v840_v32 = vsel %vm661_vm2, %v830_v11, %v839_v28  ;;  %v10544_v62 = vld [vmem:[%s10117_s11 + $0x34] sm:$0xff]  }
  0x5d   : > { %v1654_v58 = vrot.slane %v1652_v16, 1  ;;  %v1175_v3 = vor.u32 %v1174_v12, %v1173_v31  ;;  %v1177_v57 = vrot.slane %v797_v19, 3  ;;  %v399_v10 = vsel %vm358_vm1, %v396_v0, %v398_v8 }
  0x5e   : > { %v848_v6 = vor.u32 %v847_v41, %v844_v60  ;;  %v13310_v2 = vshll.u32 %v10314_v51, 16  ;;  %v1181_v19 = vrot.slane %v806_v27, 3  ;;  %v1182_v0 = vrot.slane %v809_v49, 4 }
  0x5f   : > { %8980 = vmatmul.mubr.msk.bf16.gmra.mxu1 %vm400_vm3, %v813_v21  ;;  %v1170_v21 = vrot.slane %v13309_v20, 4  ;;  %v2218_v61 = vsel %vm461_vm0, %v10158_v34, 0  ;;  %v1655_v55 = vor.u32 %v1654_v58, %v1650_v52  ;;  %v1661_v34 = vshrl.u32 %v10492_v37, 16 }
  0x60   : > { %8983 = vmatprep.mubr.msk.bf16.mxu1 %vm400_vm3, %v822_v43  ;;  %v1657_v43 = vshll.u32 %v10492_v37, 16  ;;  %v1178_v30 = vrot.slane %v13310_v2, 4  ;;  %v1183_v8 = vor.u32 %v1182_v0, %v1181_v19  ;;  %v849_v46 = vsel %vm661_vm2, %v839_v28, %v848_v6 }
  0x61   : > { %v1171_v14 = vor.u32 %v1170_v21, %v1169_v23  ;;  %v1185_v49 = vrot.slane %v815_v36, 3  ;;  %v1673_v16 = vshll.u32 %v10528_v5, 16  ;;  %v1186_v28 = vrot.slane %v818_v47, 4  ;;  %v10574_v21 = vld [vmem:[%s10117_s11 + $0x44] sm:$0xff]  }
  0x62   : > { %8942 = vmatmul.mubr.msk.bf16.gmra.mxu0 %vm400_vm3, %v395_v33  ;;  %v10515_v33 = vld [vmem:[%s10117_s11 + $0x24] sm:$0xff]   ;;  %v1659_v51 = vrot.slane %v1657_v43, 1  ;;  %v1179_v11 = vor.u32 %v1178_v30, %v1177_v57  ;;  %v1190_v36 = vrot.slane %v827_v56, 4  ;;  %v1681_v20 = vshll.u32 %v10544_v62, 16  ;;  %v10604_v57 = vld [vmem:[%s13230_s1 + $0xc] sm:$0x3] }
  0x63   : > { %8945 = vmatprep.mubr.msk.bf16.mxu0 %vm400_vm3, %v397_v42  ;;  %v10522_v29 = vsel %vm1112_vm4, %v1167_v38, %v1171_v14  ;;  %v10531_v50 = vsel %vm1112_vm4, %v1171_v14, %v1175_v3  ;;  %v1665_v42 = vshll.u32 %v10515_v33, 16  ;;  %v10557_v38 = vld [vmem:[%s10117_s11 + $0x3c] sm:$0xff]   ;;  %v1669_v23 = vshrl.u32 %v10515_v33, 16  ;;  %v10594_v14 = vld [vmem:[%s10117_s11 + $0x54] sm:$0xff]  }
  0x64   : > { %v10551_v27 = vsel %vm1112_vm4, %v1175_v3, %v1179_v11  ;;  %v10560_v60 = vsel %vm1112_vm4, %v1179_v11, %v1183_v8  ;;  %v1660_v22 = vsel %vm1648_vm5, %v1655_v55, %v1659_v51  ;;  %v1187_v47 = vor.u32 %v1186_v28, %v1185_v49  ;;  %v10618_v30 = vld [vmem:[%s10117_s11 + $0x5c] sm:$0xff]   ;;  %v10628_v55 = vld [vmem:[%s10117_s11 + $0x64] sm:$0xff]  }
  0x65   : > { %v1667_v41 = vrot.slane %v1665_v42, 1  ;;  %v1677_v31 = vshrl.u32 %v10528_v5, 16  ;;  %v1193_v56 = vrot.slane %v833_v25, 3  ;;  %v1685_v12 = vshrl.u32 %v10544_v62, 16 }
  0x66   : > { %v10591_v52 = vsel %vm1112_vm4, %v1183_v8, %v1187_v47  ;;  %v1194_v25 = vrot.slane %v836_v53, 4  ;;  %v1683_v6 = vrot.slane %v1681_v20, 1  ;;  %v1697_v59 = vshll.u32 %v10574_v21, 16 }
  0x67   : > { %8984 = vmatmul.mubr.msk.bf16.gmra.mxu1 %vm400_vm3, %v831_v1  ;;  %v1675_v1 = vrot.slane %v1673_v16, 1  ;;  %v1671_v58 = vor.u32 %v1669_v23, %v1667_v41  ;;  %v1705_v53 = vshll.u32 %v10577_v13, 16  ;;  %v13236_v11 = vshll.u32 %v10594_v14, 16 }
  0x68   : > { %8987 = vmatprep.mubr.msk.bf16.mxu1 %vm400_vm3, %v840_v32  ;;  %v1689_v32 = vshll.u32 %v10557_v38, 16  ;;  %v10620_v19 = vor.u32 %v1194_v25, %v1193_v56  ;;  %v1699_v49 = vrot.slane %v1697_v59, 1  ;;  %v1729_v25 = vshll.u32 %v10628_v55, 16 }
  0x69   : > { %v1707_v28 = vrot.slane %v1705_v53, 1  ;;  %v1715_v56 = vrot.slane %v13236_v11, 1 }
  0x6a   : > { %8946 = vmatmul.mubr.msk.bf16.gmra.mxu0 %vm400_vm3, %v399_v10  ;;  %v2614_v10 = vsel %vm461_vm0, %v10181_v48, 0  ;;  %v1687_v48 = vor.u32 %v1685_v12, %v1683_v6  ;;  %v1691_v0 = vrot.slane %v1689_v32, 1  ;;  %v10691_v11 = vrot.slane %v1729_v25, 1 }
  0x6b   : > { %8993 = vmatprep.mubr.msk.bf16.mxu0 %vm400_vm3, %v10362_v7  ;;  %v1189_v7 = vrot.slane %v824_v39, 3  ;;  %v1663_v39 = vor.u32 %v1661_v34, %v1659_v51  ;;  %v1701_v51 = vshrl.u32 %v10574_v21, 16 }
  0x6d   : > { %v1191_v9 = vor.u32 %v1190_v36, %v1189_v7  ;;  %v1668_v2 = vsel %vm1648_vm5, %v1663_v39, %v1667_v41  ;;  %v1709_v7 = vshrl.u32 %v10577_v13, 16  ;;  %v1692_v41 = vsel %vm1648_vm5, %v1687_v48, %v1691_v0 }
  0x6f   : > { %8988 = vmatmul.mubr.msk.bf16.gmra.mxu1 %vm400_vm3, %v849_v46  ;;  %v10597_v3 = vsel %vm1112_vm4, %v1187_v47, %v1191_v9  ;;  %v10637_v8 = vsel %vm1112_vm4, %v1191_v9, %v10620_v19  ;;  %v10642_v46 = vld [vmem:[%s13230_s1 + $0xe] sm:$0x3]  ;;  %v13237_v47 = vshll.u32 %v10618_v30, 16  ;;  %v1703_v9 = vor.u32 %v1701_v51, %v1699_v49 }
  0x70   : > { %9035 = vmatprep.mubr.msk.bf16.mxu1 %vm400_vm3, %v1660_v22  ;;  %v2472_v22 = vrot.slane %v1669_v23, 1  ;;  %v1717_v23 = vshrl.u32 %v10594_v14, 16 }
  0x71   : > { %v10679_v48 = vrot.slane %v13237_v47, 1  ;;  %v13238_v47 = vshrl.u32 %v10628_v55, 16 }
  0x72   : > { %8994 = vmatmul.mubr.msk.bf16.vlgmr.msra.gmra.mxu0 %vm400_vm3, %v10355_v54  ;;  %v1679_v54 = vor.u32 %v1677_v31, %v1675_v1 }
  0x73   : > { %9076 = vmatpush3.bf16.msra.mxu0 %v2218_v61  ;;  %8997 = vmatprep.mubr.msk.bf16.mxu0 %vm400_vm3, %v10381_v45  ;;  %v1693_v61 = vshrl.u32 %v10557_v38, 16  ;;  %v1676_v45 = vsel %vm1648_vm5, %v1671_v58, %v1675_v1  ;;  %v10657_v1 = vld [vmem:[%s10117_s11 + $0x6c] sm:$0xff]   ;;  %v2468_v58 = vrot.slane %v1661_v34, 1  ;;  %v1711_v34 = vor.u32 %v1709_v7, %v1707_v28 }
  0x74   : > { %9669 = vmatprep.subr.msk.bf16.mxu0 %vm461_vm0, %v10604_v57  ;;  %v1684_v36 = vsel %vm1648_vm5, %v1679_v54, %v1683_v6  ;;  %v2473_v6 = vrot.slane %v1665_v42, 2  ;;  %v10675_v54 = vld [vmem:[%s10117_s11 + $0x74] sm:$0xff]   ;;  %v2477_v42 = vrot.slane %v1673_v16, 2 }
  0x75   : > { %v1695_v39 = vor.u32 %v1693_v61, %v1691_v0 }
  0x76   : > { %v2474_v0 = vor.u32 %v2473_v6, %v2472_v22  ;;  %v2484_v22 = vrot.slane %v1693_v61, 1  ;;  %v2488_v6 = vrot.slane %v1701_v51, 1  ;;  %v10720_v61 = vld [vmem:[%s10117_s11 + $0x8c] sm:$0xff]  }
  0x77   : > { %9036 = vmatmul.mubr.msk.bf16.vlgmr.msra.gmra.mxu1 %vm400_vm3, %v1668_v2  ;;  %v2480_v2 = vrot.slane %v1685_v12, 1  ;;  %v10704_v12 = vld [vmem:[%s10117_s11 + $0x84] sm:$0xff]  }
  0x78   : > { %9118 = vmatpush3.bf16.msra.mxu1 %v2614_v10  ;;  %9039 = vmatprep.mubr.msk.bf16.mxu1 %vm400_vm3, %v1676_v45  ;;  %v2469_v10 = vrot.slane %v1657_v43, 2  ;;  %v1708_v45 = vsel %vm1648_vm5, %v1703_v9, %v1707_v28  ;;  %v10710_v9 = vsel %vm1648_vm5, %v1711_v34, %v1715_v56  ;;  %v13240_v28 = vshrl.u32 %v10704_v12, 16 }
  0x79   : > { %9670 = vmatprep.subr.msk.bf16.mxu1 %vm461_vm0, %v10642_v46 }
  0x7a   : > { %8998 = vmatmul.mubr.msk.bf16.gmra.mxu0 %vm400_vm3, %v10387_v35  ;;  %v2476_v35 = vrot.slane %v1677_v31, 1  ;;  %v10681_v43 = vor.u32 %v2469_v10, %v2468_v58  ;;  %v2481_v31 = vrot.slane %v1681_v20, 2  ;;  %v10695_v58 = vld [vmem:[%s10117_s11 + $0x7c] sm:$0xff]  }
  0x7b   : > { %9001 = vmatprep.mubr.msk.bf16.mxu0 %vm400_vm3, %v10417_v18  ;;  %v1700_v18 = vsel %vm1648_vm5, %v1695_v39, %v1699_v49  ;;  %v2485_v39 = vrot.slane %v1689_v32, 2 }
  0x7c   : > { %v10699_v16 = vsel %vm2459_vm6, %v10681_v43, %v2474_v0  ;;  %v2478_v49 = vor.u32 %v2477_v42, %v2476_v35  ;;  %v2482_v20 = vor.u32 %v2481_v31, %v2480_v2  ;;  %v13239_v35 = vshrl.u32 %v10657_v1, 16  ;;  %v10755_v2 = vld [vmem:[%s10117_s11 + $0xa4] sm:$0xff]  }
  0x7d   : > { %v2492_v42 = vrot.slane %v1709_v7, 1  ;;  %v1719_v31 = vor.u32 %v1717_v23, %v1715_v56 }
  0x7e   : > { %v10713_v10 = vsel %vm2459_vm6, %v2474_v0, %v2478_v49  ;;  %v10723_v32 = vsel %vm2459_vm6, %v2478_v49, %v2482_v20  ;;  %v10729_v0 = vld [vmem:[%s10117_s11 + $0x94] sm:$0xff]  }
  0x7f   : > { %9040 = vmatmul.mubr.msk.bf16.gmra.mxu1 %vm400_vm3, %v1684_v36  ;;  %v2489_v36 = vrot.slane %v1697_v59, 2  ;;  %v2493_v59 = vrot.slane %v1705_v53, 2 }
  0x80   : > { %9043 = vmatprep.mubr.msk.bf16.mxu1 %vm400_vm3, %v1692_v41  ;;  %v2486_v41 = vor.u32 %v2485_v39, %v2484_v22  ;;  %v2496_v22 = vrot.slane %v1717_v23, 1 }
  0x81   : > { %v2490_v51 = vor.u32 %v2489_v36, %v2488_v6  ;;  %v2494_v53 = vor.u32 %v2493_v59, %v2492_v42  ;;  %v2505_v42 = vrot.slane %v1729_v25, 2  ;;  %v2508_v36 = vrot.slane %v13239_v35, 1 }
  0x82   : > { %9002 = vmatmul.mubr.msk.bf16.gmra.mxu0 %vm400_vm3, %v10423_v15  ;;  %v10736_v49 = vsel %vm2459_vm6, %v2482_v20, %v2486_v41  ;;  %v13311_v15 = vshll.u32 %v10594_v14, 16  ;;  %v13313_v20 = vshll.u32 %v10618_v30, 16  ;;  %v13315_v25 = vshll.u32 %v10657_v1, 16 }
  0x83   : > { %9005 = vmatprep.mubr.msk.bf16.mxu0 %vm400_vm3, %v10444_v26  ;;  %v10743_v6 = vsel %vm2459_vm6, %v2486_v41, %v2490_v51  ;;  %v13312_v26 = vshrl.u32 %v10618_v30, 16  ;;  %v10758_v7 = vsel %vm2459_vm6, %v2490_v51, %v2494_v53  ;;  %v2504_v41 = vrot.slane %v13238_v47, 1 }
  0x84   : > { %v2497_v39 = vrot.slane %v13311_v15, 2  ;;  %v2501_v23 = vrot.slane %v13313_v20, 2  ;;  %v10752_v15 = vld [vmem:[%s10117_s11 + $0x9c] sm:$0xff]   ;;  %v2509_v47 = vrot.slane %v13315_v25, 2 }
  0x85   : > { %v2500_v56 = vrot.slane %v13312_v26, 1  ;;  %v2506_v51 = vor.u32 %v2505_v42, %v2504_v41  ;;  %v13241_v41 = vshll.u32 %v10755_v2, 16 }
  0x86   : > { %v2498_v34 = vor.u32 %v2497_v39, %v2496_v22  ;;  %v2510_v25 = vor.u32 %v2509_v47, %v2508_v36  ;;  %v2520_v47 = vrot.slane %v13240_v28, 1  ;;  %v13325_v28 = vshrl.u32 %v10720_v61, 16 }
  0x87   : > { %9044 = vmatmul.mubr.msk.bf16.gmra.mxu1 %vm400_vm3, %v1700_v18  ;;  %v2502_v26 = vor.u32 %v2501_v23, %v2500_v56  ;;  %v13318_v56 = vshll.u32 %v10675_v54, 16  ;;  %v1724_v23 = vsel %vm1648_vm5, %v1719_v31, %v10679_v48  ;;  %v10812_v31 = vld [vmem:[%s10117_s11 + $0xac] sm:$0xff]  }
  0x88   : > { %v10766_v39 = vsel %vm2459_vm6, %v2494_v53, %v2498_v34  ;;  %9047 = vmatprep.mubr.msk.bf16.mxu1 %vm400_vm3, %v1708_v45  ;;  %v13317_v53 = vshrl.u32 %v10675_v54, 16  ;;  %v10799_v18 = vsel %vm2459_vm6, %v2506_v51, %v2510_v25 }
  0x89   : > { %13314 = vst [vmem:[#allocation5_spill] sm:$0xff] %v10766_v39  ;;  %v10776_v59 = vsel %vm2459_vm6, %v2498_v34, %v2502_v26  ;;  %v2513_v45 = vrot.slane %v13318_v56, 2  ;;  %v10787_v42 = vsel %vm2459_vm6, %v2502_v26, %v2506_v51  ;;  %v13242_v34 = vshrl.u32 %v10755_v2, 16  ;;  %13322 = vst [vmem:[#allocation8_spill] sm:$0xff] %v10799_v18 }
  0x8a   : > { %13316 = vst [vmem:[#allocation6_spill] sm:$0xff] %v10776_v59  ;;  %v2512_v22 = vrot.slane %v13317_v53, 1  ;;  %9006 = vmatmul.mubr.msk.bf16.gmra.mxu0 %vm400_vm3, %v10452_v44  ;;  %13319 = vst [vmem:[#allocation7_spill] sm:$0xff] %v10787_v42  ;;  %v13320_v56 = vshrl.u32 %v10695_v58, 16  ;;  %v13321_v44 = vshll.u32 %v10695_v58, 16  ;;  %v2537_v26 = vrot.slane %v13241_v41, 2 }
  0x8b   : > { %9009 = vmatprep.mubr.msk.bf16.mxu0 %vm400_vm3, %v10476_v40  ;;  %v13323_v40 = vshll.u32 %v10704_v12, 16  ;;  %v2536_v51 = vrot.slane %v13242_v34, 1  ;;  %v2524_v18 = vrot.slane %v13325_v28, 1  ;;  %v13329_v41 = vshll.u32 %v10729_v0, 16 }
  0x8c   : > { %v2514_v53 = vor.u32 %v2513_v45, %v2512_v22  ;;  %v2516_v35 = vrot.slane %v13320_v56, 1  ;;  %v2517_v20 = vrot.slane %v13321_v44, 2  ;;  %v13330_v28 = vshrl.u32 %v10618_v30, 16  ;;  %v9786_v34 = vld [vmem:[%s10117_s11 + $0xb4] ss:$0 sps:$4 sm:$0x33]  }
  0x8d   : > { %v2521_v36 = vrot.slane %v13323_v40, 2  ;;  %v13326_v40 = vshll.u32 %v10720_v61, 16  ;;  %v13334_v59 = vshll.u32 %v10752_v15, 16 }
  0x8e   : > { %v10809_v45 = vsel %vm2459_vm6, %v2510_v25, %v2514_v53  ;;  %v2518_v56 = vor.u32 %v2517_v20, %v2516_v35  ;;  %v13328_v35 = vshrl.u32 %v10729_v0, 16 }
  0x8f   : > { %13324 = vst [vmem:[#allocation9_spill] sm:$0xff] %v10809_v45  ;;  %v2522_v44 = vor.u32 %v2521_v36, %v2520_v47  ;;  %v2525_v22 = vrot.slane %v13326_v40, 2  ;;  %9048 = vmatmul.mubr.msk.bf16.gmra.mxu1 %vm400_vm3, %v10710_v9  ;;  %v2529_v45 = vrot.slane %v13329_v41, 2  ;;  %v1727_v47 = vor.u32 %v13330_v28, %v10679_v48 }
  0x90   : > { %v10823_v25 = vsel %vm2459_vm6, %v2514_v53, %v2518_v56  ;;  %v2528_v20 = vrot.slane %v13328_v35, 1  ;;  %9051 = vmatprep.mubr.msk.bf16.mxu1 %vm400_vm3, %v1724_v23  ;;  %v13331_v36 = vshrl.u32 %v10628_v55, 16  ;;  %v13332_v35 = vshll.u32 %v10657_v1, 16 }
  0x91   : > { %13327 = vst [vmem:[#allocation10_spill] sm:$0xff] %v10823_v25  ;;  %v10837_v9 = vsel %vm2459_vm6, %v2518_v56, %v2522_v44  ;;  %v2526_v53 = vor.u32 %v2525_v22, %v2524_v18  ;;  %v13333_v41 = vshrl.u32 %v10752_v15, 16  ;;  %v2533_v39 = vrot.slane %v13334_v59, 2 }
  0x92   : > { %v1735_v40 = vor.u32 %v13331_v36, %v10691_v11  ;;  %v1739_v25 = vrot.slane %v13332_v35, 1  ;;  %v2530_v42 = vor.u32 %v2529_v45, %v2528_v20  ;;  %9010 = vmatmul.mubr.msk.bf16.gmra.mxu0 %vm400_vm3, %v10483_v17  ;;  %v1801_v48 = vshll.u32 %v10812_v31, 16 }
  0x93   : > { %v2532_v23 = vrot.slane %v13333_v41, 1  ;;  %v1805_v56 = vshrl.u32 %v10812_v31, 16  ;;  %v10851_v18 = vsel %vm2459_vm6, %v2522_v44, %v2526_v53  ;;  %v2538_v22 = vor.u32 %v2537_v26, %v2536_v51  ;;  %9013 = vmatprep.mubr.msk.bf16.mxu0 %vm400_vm3, %v10497_v63 }
  0x94   : > { %v10856_v45 = vsel %vm2459_vm6, %v2526_v53, %v2530_v42  ;;  %v1732_v59 = vsel %vm1648_vm5, %v1727_v47, %v10691_v11  ;;  %v2541_v28 = vrot.slane %v1801_v48, 2  ;;  %v2545_v36 = vshrl.u32 %v9786_v34, 16 }
  0x95   : > { %v2534_v20 = vor.u32 %v2533_v39, %v2532_v23  ;;  %v2540_v17 = vrot.slane %v1805_v56, 1  ;;  %v1740_v35 = vsel %vm1648_vm5, %v1735_v40, %v1739_v25  ;;  %v2548_v63 = vshll.u32 %v9786_v34, 16 }
  0x96   : > { %v2547_v53 = vrot.slane %v2545_v36, 1  ;;  %v13335_v11 = vshll.u32 %v10675_v54, 16  ;;  %v13336_v41 = vshrl.u32 %v10657_v1, 16  ;;  %v13337_v23 = vshrl.u32 %v10675_v54, 16 }
  0x97   : > { %v10864_v44 = vsel %vm2459_vm6, %v2530_v42, %v2534_v20  ;;  %v10867_v26 = vsel %vm2459_vm6, %v2534_v20, %v2538_v22  ;;  %v2542_v51 = vor.u32 %v2541_v28, %v2540_v17  ;;  %9052 = vmatmul.mubr.msk.bf16.gmra.mxu1 %vm400_vm3, %v1732_v59  ;;  %v2550_v47 = vrot.slane %v2548_v63, 2 }
  0x98   : > { %v1747_v39 = vrot.slane %v13335_v11, 1  ;;  %9055 = vmatprep.mubr.msk.bf16.mxu1 %vm400_vm3, %v1740_v35  ;;  %v1743_v40 = vor.u32 %v13336_v41, %v1739_v25  ;;  %v13338_v34 = vshll.u32 %v10695_v58, 16  ;;  %v13339_v36 = vshll.u32 %v10704_v12, 16  ;;  %v9782_v41 = vld [vmem:[%s10117_s11 + $0xa8] ss:$0 sps:$4 sm:$0xff]  }
  0x99   : > { %v10876_v42 = vsel %vm2459_vm6, %v2538_v22, %v2542_v51  ;;  %v2551_v28 = vor.u32 %v2550_v47, %v2547_v53 }
  0x9a   : > { %v1751_v20 = vor.u32 %v13337_v23, %v1747_v39  ;;  %v1755_v17 = vrot.slane %v13338_v34, 1  ;;  %9014 = vmatmul.mubr.msk.bf16.gmra.mxu0 %vm400_vm3, %v10503_v24  ;;  %v1748_v25 = vsel %vm1648_vm5, %v1743_v40, %v1747_v39  ;;  %v1763_v35 = vrot.slane %v13339_v36, 1 }
  0x9b   : > { %9017 = vmatprep.mubr.msk.bf16.mxu0 %vm400_vm3, %v10522_v29  ;;  %v10887_v59 = vsel %vm2459_vm6, %v2542_v51, %v2551_v28  ;;  %v13340_v24 = vshrl.u32 %v10695_v58, 16  ;;  %v13341_v29 = vshrl.u32 %v10704_v12, 16  ;;  %v13342_v51 = vshll.u32 %v10720_v61, 16 }
  0x9c   : > { %v1756_v22 = vsel %vm1648_vm5, %v1751_v20, %v1755_v17  ;;  %v13343_v40 = vshll.u32 %v10729_v0, 16  ;;  %v13344_v20 = vshrl.u32 %v10720_v61, 16  ;;  %v13346_v28 = vshll.u32 %v10752_v15, 16 }
  0x9d   : > { %v1759_v63 = vor.u32 %v13340_v24, %v1755_v17  ;;  %v1767_v53 = vor.u32 %v13341_v29, %v1763_v35  ;;  %v1771_v11 = vrot.slane %v13342_v51, 1  ;;  %v13345_v17 = vshrl.u32 %v10729_v0, 16  ;;  %v10925_v24 = vld [vmem:[%s10117_s11 + $0xb4] ss:$0 sps:$4 sm:$0x11]  }
  0x9e   : > { %v1779_v23 = vrot.slane %v13343_v40, 1  ;;  %v1201_v36 = vshll.u32 %v9782_v41, 16  ;;  %v13347_v29 = vshll.u32 %v10755_v2, 16 }
  0x9f   : > { %9056 = vmatmul.mubr.msk.bf16.gmra.mxu1 %vm400_vm3, %v1748_v25  ;;  %v1764_v39 = vsel %vm1648_vm5, %v1759_v63, %v1763_v35  ;;  %v1772_v47 = vsel %vm1648_vm5, %v1767_v53, %v1771_v11  ;;  %v1775_v34 = vor.u32 %v13344_v20, %v1771_v11  ;;  %v1787_v25 = vrot.slane %v13346_v28, 1 }
  0xa0   : > { %9059 = vmatprep.mubr.msk.bf16.mxu1 %vm400_vm3, %v1756_v22  ;;  %v1198_v22 = vshrl.u32 %v9782_v41, 16  ;;  %v1795_v53 = vrot.slane %v13347_v29, 1  ;;  %v13349_v41 = vshrl.u32 %v10755_v2, 16 }
  0xa1   : > { %v1780_v35 = vsel %vm1648_vm5, %v1775_v34, %v1779_v23  ;;  %v1809_v34 = vshll.u32 %v10925_v24, 16 }
  0xa2   : > { %9018 = vmatmul.mubr.msk.bf16.gmra.mxu0 %vm400_vm3, %v10531_v50  ;;  %v2109_v50 = vld [vmem:[%s10117_s11 + $0x14] sm:$0xe]  ;;  %v1200_v51 = vrot.slane %v1198_v22, 3  ;;  %v1799_v40 = vor.u32 %v13349_v41, %v1795_v53 }
  0xa3   : > { %9021 = vmatprep.mubr.msk.bf16.mxu0 %vm400_vm3, %v10551_v27  ;;  %v1783_v27 = vor.u32 %v13345_v17, %v1779_v23  ;;  %v8100_v11 = vcombine.low %v2109_v50, %v10440_v4  ;;  %v2117_v17 = vrot.slane %v10492_v37, 1  ;;  %v1811_v22 = vrot.slane %v1809_v34, 1 }
  0xa4   : > { %v2119_v37 = vrot.slane %v10515_v33, 1  ;;  %v10975_v33 = vld [vmem:[%s13230_s1 + $0x10] sm:$0x3] }
  0xa5   : > { %v1788_v63 = vsel %vm1648_vm5, %v1783_v27, %v1787_v25  ;;  %v2461_v23 = vshrl.u32 %v8100_v11, 16  ;;  %v2464_v20 = vshll.u32 %v8100_v11, 16  ;;  %v2116_v50 = vrot.slane %v8100_v11, 1  ;;  %v10990_v11 = vld [vmem:[%s13230_s1 + $0x12] sm:$0x3] }
  0xa7   : > { %9060 = vmatmul.mubr.msk.bf16.gmra.mxu1 %vm400_vm3, %v1764_v39  ;;  %v1203_v39 = vrot.slane %v1201_v36, 4  ;;  %v2463_v28 = vrot.slane %v2461_v23, 1  ;;  %v10952_v36 = vsel %vm2115_vm7, %v2116_v50, %v2117_v17  ;;  %v13363_v23 = vld [vmem:[#allocation7_spill] sm:$0xff] }
  0xa8   : > { %9063 = vmatprep.mubr.msk.bf16.mxu1 %vm400_vm3, %v1772_v47  ;;  %v1803_v47 = vrot.slane %v1801_v48, 1  ;;  %13350 = vst [vmem:[#allocation11_spill] sm:$0xff] %v10952_v36 }
  0xa9   : > { %v1204_v4 = vor.u32 %v1203_v39, %v1200_v51 }
  0xaa   : > { %9022 = vmatmul.mubr.msk.bf16.gmra.mxu0 %vm400_vm3, %v10560_v60  ;;  %v13348_v60 = vshrl.u32 %v10752_v15, 16  ;;  %v1804_v27 = vsel %vm1648_vm5, %v1799_v40, %v1803_v47 }
  0xab   : > { %9025 = vmatprep.mubr.msk.bf16.mxu0 %vm400_vm3, %v10591_v52 }
  0xac   : > { %v1791_v52 = vor.u32 %v13348_v60, %v1787_v25  ;;  %v2466_v25 = vrot.slane %v2464_v20, 2  ;;  %v13361_v60 = vld [vmem:[#allocation6_spill] sm:$0xff] }
  0xae   : > { %v1796_v48 = vsel %vm1648_vm5, %v1791_v52, %v1795_v53  ;;  %v10966_v53 = vsel %vm2115_vm7, %v2117_v17, %v2119_v37 }
  0xaf   : > { %9064 = vmatmul.mubr.msk.bf16.gmra.mxu1 %vm400_vm3, %v1780_v35  ;;  %v2467_v35 = vor.u32 %v2466_v25, %v2463_v28  ;;  %13351 = vst [vmem:[#allocation12_spill] sm:$0xff] %v10966_v53  ;;  %v2143_v25 = vrot.slane %v10704_v12, 1 }
  0xb0   : > { %9067 = vmatprep.mubr.msk.bf16.mxu1 %vm400_vm3, %v1788_v63 }
  0xb1   : > { %v2471_v29 = vsel %vm2459_vm6, %v2467_v35, %v10681_v43  ;;  %v3587_v43 = vsel %vm461_vm0, %v10642_v46, 0  ;;  %v2129_v46 = vrot.slane %v10577_v13, 1  ;;  %v2133_v13 = vrot.slane %v10618_v30, 1 }
  0xb2   : > { %9026 = vmatmul.mubr.msk.bf16.gmra.mxu0 %vm400_vm3, %v10597_v3  ;;  %v1205_v3 = vsel %vm1112_vm4, %v10620_v19, %v1204_v4  ;;  %v2121_v19 = vrot.slane %v10528_v5, 1  ;;  %v2123_v5 = vrot.slane %v10544_v62, 1  ;;  %v2137_v30 = vrot.slane %v10657_v1, 1 }
  0xb3   : > { %9029 = vmatprep.mubr.msk.bf16.mxu0 %vm400_vm3, %v10637_v8  ;;  %v1807_v8 = vor.u32 %v1805_v56, %v1803_v47  ;;  %v3244_v56 = vsel %vm461_vm0, %v10604_v57, 0  ;;  %v2125_v57 = vrot.slane %v10557_v38, 1  ;;  %v2127_v38 = vrot.slane %v10574_v21, 1  ;;  %v13359_v47 = vld [vmem:[#allocation5_spill] sm:$0xff] }
  0xb4   : > { %v10970_v51 = vsel %vm2115_vm7, %v2119_v37, %v2121_v19  ;;  %v10995_v39 = vsel %vm2115_vm7, %v2121_v19, %v2123_v5  ;;  %v2131_v21 = vrot.slane %v10594_v14, 1  ;;  %v2135_v14 = vrot.slane %v10628_v55, 1 }
  0xb5   : > { %v1812_v63 = vsel %vm1648_vm5, %v1807_v8, %v1811_v22  ;;  %13352 = vst [vmem:[#allocation13_spill] sm:$0xff] %v10970_v51  ;;  %13353 = vst [vmem:[#allocation14_spill] sm:$0xff] %v10995_v39  ;;  %v11000_v62 = vsel %vm2115_vm7, %v2123_v5, %v2125_v57  ;;  %v2141_v1 = vrot.slane %v10695_v58, 1  ;;  %v2145_v8 = vrot.slane %v10720_v61, 1 }
  0xb6   : > { %13354 = vst [vmem:[#allocation15_spill] sm:$0xff] %v11000_v62  ;;  %v11051_v52 = vsel %vm2115_vm7, %v2135_v14, %v2137_v30 }
  0xb7   : > { %9068 = vmatmul.mubr.msk.bf16.gmra.mxu1 %vm400_vm3, %v1796_v48  ;;  %13362 = vst [vmem:[#allocation6_spill] sm:$0xff] %v11051_v52  ;;  %v13365_v48 = vld [vmem:[#allocation8_spill] sm:$0xff]  ;;  %v11092_v61 = vsel %vm2115_vm7, %v2143_v25, %v2145_v8 }
  0xb8   : > { %9071 = vmatprep.mubr.msk.bf16.mxu1 %vm400_vm3, %v1804_v27 }
  0xba   : > { %9030 = vmatmul.mubr.msk.bf16.gmra.mxu0 %vm400_vm3, %v1205_v3 }
  0xbb   : > { %9077 = vmatprep.mubr.msk.bf16.mxu0 %vm400_vm3, %v10952_v36 }
  0xbf   : > { %9072 = vmatmul.mubr.msk.bf16.gmra.mxu1 %vm400_vm3, %v1812_v63 }
  0xc0   : > { %9119 = vmatprep.mubr.msk.bf16.mxu1 %vm400_vm3, %v2471_v29  ;;  %v13367_v29 = vld [vmem:[#allocation9_spill] sm:$0xff] }
  0xc2   : > { %9078 = vmatmul.mubr.msk.bf16.vlgmr.msra.gmra.mxu0 %vm400_vm3, %v10966_v53  ;;  %v11327_v53 = vld [vmem:[%s10117_s11 + $0x74] sm:$0xff]  }
  0xc3   : > { %9160 = vmatpush3.bf16.msra.mxu0 %v3244_v56  ;;  %9081 = vmatprep.mubr.msk.bf16.mxu0 %vm400_vm3, %v10970_v51  ;;  %v11085_v56 = vsel %vm2115_vm7, %v2141_v1, %v2143_v25  ;;  %v2151_v25 = vrot.slane %v10755_v2, 1  ;;  %13382 = vst [vmem:[#allocation31_spill] sm:$0xff] %v11327_v53 }
  0xc4   : > { %9671 = vmatprep.subr.msk.bf16.mxu0 %vm461_vm0, %v10975_v33  ;;  %13368 = vst [vmem:[#allocation9_spill] sm:$0xff] %v11085_v56 }
  0xc7   : > { %9120 = vmatmul.mubr.msk.bf16.vlgmr.msra.gmra.mxu1 %vm400_vm3, %v10699_v16  ;;  %v11013_v16 = vsel %vm2115_vm7, %v2125_v57, %v2127_v38  ;;  %v13369_v57 = vld [vmem:[#allocation10_spill] sm:$0xff] }
  0xc8   : > { %9202 = vmatpush3.bf16.msra.mxu1 %v3587_v43  ;;  %9123 = vmatprep.mubr.msk.bf16.mxu1 %vm400_vm3, %v10713_v10  ;;  %13355 = vst [vmem:[#allocation16_spill] sm:$0xff] %v11013_v16  ;;  %v11018_v10 = vsel %vm2115_vm7, %v2127_v38, %v2129_v46  ;;  %13370 = vst [vmem:[#allocation10_spill] sm:$0xff] %v11092_v61 }
  0xc9   : > { %9672 = vmatprep.subr.msk.bf16.mxu1 %vm461_vm0, %v10990_v11  ;;  %13356 = vst [vmem:[#allocation17_spill] sm:$0xff] %v11018_v10 }
  0xca   : > { %9082 = vmatmul.mubr.msk.bf16.gmra.mxu0 %vm400_vm3, %v10995_v39 }
  0xcb   : > { %9085 = vmatprep.mubr.msk.bf16.mxu0 %vm400_vm3, %v11000_v62 }
  0xcf   : > { %9124 = vmatmul.mubr.msk.bf16.gmra.mxu1 %vm400_vm3, %v10723_v32  ;;  %v11029_v32 = vsel %vm2115_vm7, %v2129_v46, %v2131_v21 }
  0xd0   : > { %9127 = vmatprep.mubr.msk.bf16.mxu1 %vm400_vm3, %v10736_v49  ;;  %13357 = vst [vmem:[#allocation18_spill] sm:$0xff] %v11029_v32  ;;  %v11034_v49 = vsel %vm2115_vm7, %v2131_v21, %v2133_v13 }
  0xd1   : > { %13358 = vst [vmem:[#allocation19_spill] sm:$0xff] %v11034_v49 }
  0xd2   : > { %9086 = vmatmul.mubr.msk.bf16.gmra.mxu0 %vm400_vm3, %v11013_v16 }
  0xd3   : > { %9089 = vmatprep.mubr.msk.bf16.mxu0 %vm400_vm3, %v11018_v10 }
  0xd7   : > { %9128 = vmatmul.mubr.msk.bf16.gmra.mxu1 %vm400_vm3, %v10743_v6  ;;  %v2139_v6 = vrot.slane %v10675_v54, 1 }
  0xd8   : > { %9131 = vmatprep.mubr.msk.bf16.mxu1 %vm400_vm3, %v10758_v7  ;;  %v11046_v7 = vsel %vm2115_vm7, %v2133_v13, %v2135_v14  ;;  %v2147_v13 = vrot.slane %v10729_v0, 1 }
  0xd9   : > { %13360 = vst [vmem:[#allocation5_spill] sm:$0xff] %v11046_v7  ;;  %v11061_v20 = vsel %vm2115_vm7, %v2137_v30, %v2139_v6  ;;  %v11068_v50 = vsel %vm2115_vm7, %v2139_v6, %v2141_v1  ;;  %v2149_v6 = vrot.slane %v10752_v15, 1 }
  0xda   : > { %9090 = vmatmul.mubr.msk.bf16.gmra.mxu0 %vm400_vm3, %v11029_v32  ;;  %13364 = vst [vmem:[#allocation7_spill] sm:$0xff] %v11061_v20  ;;  %13366 = vst [vmem:[#allocation8_spill] sm:$0xff] %v11068_v50 }
  0xdb   : > { %9093 = vmatprep.mubr.msk.bf16.mxu0 %vm400_vm3, %v11034_v49  ;;  %v11121_v15 = vsel %vm2115_vm7, %v2147_v13, %v2149_v6  ;;  %v11140_v2 = vsel %vm2115_vm7, %v2149_v6, %v2151_v25 }
  0xdc   : > { %13372 = vst [vmem:[#allocation21_spill] sm:$0xff] %v11121_v15  ;;  %13373 = vst [vmem:[#allocation22_spill] sm:$0xff] %v11140_v2 }
  0xdf   : > { %9132 = vmatmul.mubr.msk.bf16.gmra.mxu1 %vm400_vm3, %v13359_v47 }
  0xe0   : > { %9135 = vmatprep.mubr.msk.bf16.mxu1 %vm400_vm3, %v13361_v60  ;;  %v2849_v60 = vld [vmem:[%s10117_s11 + $0x1c] sm:$0xc] }
  0xe2   : > { %v8911_v41 = vpop.f32.mrf.mxu0  ;;  %9094 = vmatmul.mubr.msk.bf16.gmra.mxu0 %vm400_vm3, %v11046_v7 }
  0xe3   : > { %9097 = vmatprep.mubr.msk.bf16.mxu0 %vm400_vm3, %v11051_v52 }
  0xe4   : > { %v499_v55 = vpop.f32.mrf.mxu0 }
  0xe6   : > { %v8912_v54 = vpop.f32.mrf.mxu0 }
  0xe7   : > { %v8953_v40 = vpop.f32.mrf.mxu1  ;;  %9136 = vmatmul.mubr.msk.bf16.gmra.mxu1 %vm400_vm3, %v13363_v23  ;;  %v11114_v23 = vld [vmem:[%s10117_s11 + $0x24] sm:$0xff]  }
  0xe8   : > { %v11063_v34 = vadd.f32 %v8953_v40, %v8911_v41  ;;  %v502_v4 = vpop.f32.mrf.mxu0  ;;  %9139 = vmatprep.mubr.msk.bf16.mxu1 %vm400_vm3, %v13365_v48  ;;  %v2850_v41 = vld [vmem:[%s10117_s11 + $0x20] sm:$0xf]  ;;  %v11111_v40 = vsel %vm2115_vm7, %v2145_v8, %v2147_v13  ;;  %v11147_v13 = vld [vmem:[%s10117_s11 + $0x2c] sm:$0xff]  }
  0xe9   : > { %v947_v17 = vpop.f32.mrf.mxu1  ;;  %13371 = vst [vmem:[#allocation20_spill] sm:$0xff] %v11111_v40  ;;  %v8144_v48 = vcombine.low %v2849_v60, %v2850_v41 }
  0xea   : > { %v11070_v27 = vadd.f32 %v947_v17, %v499_v55  ;;  %v8915_v58 = vpop.f32.mrf.mxu0  ;;  %9098 = vmatmul.mubr.msk.bf16.gmra.mxu0 %vm400_vm3, %v11061_v20 }
  0xeb   : > { %v8954_v28 = vpop.f32.mrf.mxu1  ;;  %9101 = vmatprep.mubr.msk.bf16.mxu0 %vm400_vm3, %v11068_v50 }
  0xec   : > { %v11077_v22 = vadd.f32 %v8954_v28, %v8912_v54  ;;  %v515_v3 = vpop.f32.mrf.mxu0 }
  0xed   : > { %v950_v35 = vpop.f32.mrf.mxu1 }
  0xee   : > { %v11080_v37 = vadd.f32 %v950_v35, %v502_v4  ;;  %v8916_v63 = vpop.f32.mrf.mxu0 }
  0xef   : > { %v8957_v19 = vpop.f32.mrf.mxu1  ;;  %9140 = vmatmul.mubr.msk.bf16.gmra.mxu1 %vm400_vm3, %v13367_v29  ;;  %v2999_v29 = vshll.u32 %v8144_v48, 16 }
  0xf0   : > { %v11087_v5 = vadd.f32 %v8957_v19, %v8915_v58  ;;  %v518_v12 = vpop.f32.mrf.mxu0  ;;  %9143 = vmatprep.mubr.msk.bf16.mxu1 %vm400_vm3, %v13369_v57  ;;  %v2996_v19 = vshrl.u32 %v8144_v48, 16 }
  0xf1   : > { %v963_v43 = vpop.f32.mrf.mxu1  ;;  %v3001_v6 = vrot.slane %v2999_v29, 3 }
  0xf2   : > { %v11094_v38 = vadd.f32 %v963_v43, %v515_v3  ;;  %v8919_v46 = vpop.f32.mrf.mxu0  ;;  %9102 = vmatmul.mubr.msk.bf16.gmra.mxu0 %vm400_vm3, %v11085_v56  ;;  %v13243_v3 = vshll.u32 %v11114_v23, 16  ;;  %v2998_v60 = vrot.slane %v2996_v19, 2  ;;  %v13246_v19 = vshll.u32 %v11147_v13, 16  ;;  %v11239_v56 = vld [vmem:[%s10117_s11 + $0x54] sm:$0xff]  }
  0xf3   : > { %v8958_v21 = vpop.f32.mrf.mxu1  ;;  %9105 = vmatprep.mubr.msk.bf16.mxu0 %vm400_vm3, %v11092_v61  ;;  %13376 = vst [vmem:[#allocation25_spill] sm:$0xff] %v11239_v56 }
  0xf4   : > { %v11101_v14 = vadd.f32 %v8958_v21, %v8916_v63  ;;  %v531_v30 = vpop.f32.mrf.mxu0  ;;  %v2153_v63 = vrot.slane %v10812_v31, 1  ;;  %v3009_v31 = vrot.slane %v13243_v3, 3 }
  0xf5   : > { %v966_v47 = vpop.f32.mrf.mxu1 }
  0xf6   : > { %v11106_v55 = vadd.f32 %v966_v47, %v518_v12  ;;  %v8920_v1 = vpop.f32.mrf.mxu0 }
  0xf7   : > { %v8961_v54 = vpop.f32.mrf.mxu1  ;;  %9144 = vmatmul.mubr.msk.bf16.gmra.mxu1 %vm400_vm3, %v10837_v9 }
  0xf8   : > { %v11116_v0 = vadd.f32 %v8961_v54, %v8919_v46  ;;  %v534_v4 = vpop.f32.mrf.mxu0  ;;  %9147 = vmatprep.mubr.msk.bf16.mxu1 %vm400_vm3, %v10851_v18  ;;  %v13244_v18 = vshrl.u32 %v11114_v23, 16 }
  0xf9   : > { %v979_v17 = vpop.f32.mrf.mxu1 }
  0xfa   : > { %v11123_v58 = vadd.f32 %v979_v17, %v531_v30  ;;  %v8923_v28 = vpop.f32.mrf.mxu0  ;;  %9106 = vmatmul.mubr.msk.bf16.gmra.mxu0 %vm400_vm3, %v11111_v40  ;;  %v3006_v21 = vrot.slane %v13244_v18, 2  ;;  %v3479_v17 = vld [vmem:[%s10117_s11 + $0x1c] sm:$0x8] }
  0xfb   : > { %v8962_v9 = vpop.f32.mrf.mxu1  ;;  %9109 = vmatprep.mubr.msk.bf16.mxu0 %vm400_vm3, %v11121_v15  ;;  %v11173_v18 = vcombine.low %v3479_v17, %v2850_v41  ;;  %v11199_v17 = vld [vmem:[%s10117_s11 + $0x44] sm:$0xff]  }
  0xfc   : > { %v11132_v8 = vadd.f32 %v8962_v9, %v8920_v1  ;;  %v547_v35 = vpop.f32.mrf.mxu0  ;;  %v11157_v1 = vld [vmem:[%s10117_s11 + $0x34] sm:$0xff]   ;;  %v3010_v9 = vor.u32 %v3009_v31, %v3006_v21 }
  0xfd   : > { %v982_v12 = vpop.f32.mrf.mxu1 }
  0xfe   : > { %v11135_v57 = vadd.f32 %v982_v12, %v534_v4  ;;  %v8924_v43 = vpop.f32.mrf.mxu0  ;;  %v3002_v12 = vor.u32 %v3001_v6, %v2998_v60  ;;  %v3018_v60 = vrot.slane %v13246_v19, 3  ;;  %v11187_v6 = vld [vmem:[%s10117_s11 + $0x3c] sm:$0xff]  }
  0xff   : > { %v8965_v46 = vpop.f32.mrf.mxu1  ;;  %9148 = vmatmul.mubr.msk.bf16.gmra.mxu1 %vm400_vm3, %v10856_v45  ;;  %v11154_v45 = vsel %vm2115_vm7, %v2151_v25, %v2153_v63  ;;  %v13249_v25 = vshrl.u32 %v11147_v13, 16 }
 0x100   : > { %v11149_v30 = vadd.f32 %v8965_v46, %v8923_v28  ;;  %v550_v47 = vpop.f32.mrf.mxu0  ;;  %9151 = vmatprep.mubr.msk.bf16.mxu1 %vm400_vm3, %v10864_v44  ;;  %13374 = vst [vmem:[#allocation23_spill] sm:$0xff] %v11154_v45  ;;  %v2155_v44 = vrot.slane %v10925_v24, 1  ;;  %v13247_v46 = vshrl.u32 %v11157_v1, 16 }
 0x101   : > { %v995_v54 = vpop.f32.mrf.mxu1  ;;  %v3015_v31 = vrot.slane %v13249_v25, 2 }
 0x102   : > { %v11159_v4 = vadd.f32 %v995_v54, %v547_v35  ;;  %v8927_v48 = vpop.f32.mrf.mxu0  ;;  %9110 = vmatmul.mubr.msk.bf16.gmra.mxu0 %vm400_vm3, %v11140_v2  ;;  %v13248_v54 = vshll.u32 %v11157_v1, 16 }
 0x103   : > { %v8966_v28 = vpop.f32.mrf.mxu1  ;;  %9113 = vmatprep.mubr.msk.bf16.mxu0 %vm400_vm3, %v11154_v45 }
 0x104   : > { %v11169_v29 = vadd.f32 %v8966_v28, %v8924_v43  ;;  %v563_v35 = vpop.f32.mrf.mxu0  ;;  %v11180_v43 = vsel %vm2115_vm7, %v2153_v63, %v2155_v44  ;;  %v3027_v63 = vrot.slane %v13248_v54, 3  ;;  %v3485_v44 = vrot.slane %v11173_v18, 3 }
 0x105   : > { %v998_v3 = vpop.f32.mrf.mxu1  ;;  %13375 = vst [vmem:[#allocation24_spill] sm:$0xff] %v11180_v43  ;;  %v13257_v54 = vshll.u32 %v11187_v6, 16 }
 0x106   : > { %v11175_v45 = vadd.f32 %v998_v3, %v550_v47  ;;  %v8928_v24 = vpop.f32.mrf.mxu0  ;;  %v3011_v47 = vsel %vm661_vm2, %v3002_v12, %v3010_v9  ;;  %v3019_v12 = vor.u32 %v3018_v60, %v3015_v31  ;;  %v3982_v60 = vsel %vm461_vm0, %v10975_v33, 0 }
 0x107   : > { %v8969_v21 = vpop.f32.mrf.mxu1  ;;  %9152 = vmatmul.mubr.msk.bf16.gmra.mxu1 %vm400_vm3, %v10867_v26  ;;  %v3024_v26 = vrot.slane %v13247_v46, 2  ;;  %v13256_v46 = vshrl.u32 %v11187_v6, 16 }
 0x108   : > { %v11189_v41 = vadd.f32 %v8969_v21, %v8927_v48  ;;  %v566_v3 = vpop.f32.mrf.mxu0  ;;  %9155 = vmatprep.mubr.msk.bf16.mxu1 %vm400_vm3, %v10876_v42  ;;  %v3486_v48 = vrot.slane %v11114_v23, 3 }
 0x109   : > { %v1011_v28 = vpop.f32.mrf.mxu1  ;;  %v3028_v15 = vor.u32 %v3027_v63, %v3024_v26  ;;  %v3488_v26 = vrot.slane %v11147_v13, 3  ;;  %v3033_v63 = vrot.slane %v13256_v46, 2 }
 0x10a   : > { %v11203_v21 = vadd.f32 %v1011_v28, %v563_v35  ;;  %v8931_v19 = vpop.f32.mrf.mxu0  ;;  %9114 = vmatmul.mubr.msk.bf16.gmra.mxu0 %vm400_vm3, %v11180_v43  ;;  %v13258_v35 = vshrl.u32 %v11199_v17, 16  ;;  %v13259_v28 = vshll.u32 %v11199_v17, 16  ;;  %v3487_v43 = vsel %vm358_vm1, %v3485_v44, %v3486_v48 }
 0x10b   : > { %v8970_v42 = vpop.f32.mrf.mxu1  ;;  %9161 = vmatprep.mubr.msk.bf16.mxu0 %vm400_vm3, %v3011_v47  ;;  %v3029_v33 = vsel %vm661_vm2, %v3019_v12, %v3028_v15 }
 0x10c   : > { %v11210_v25 = vadd.f32 %v8970_v42, %v8928_v24  ;;  %v579_v2 = vpop.f32.mrf.mxu0  ;;  %v3020_v24 = vsel %vm661_vm2, %v3010_v9, %v3019_v12  ;;  %v3045_v9 = vrot.slane %v13259_v28, 3 }
 0x10d   : > { %v1014_v40 = vpop.f32.mrf.mxu1 }
 0x10e   : > { %v11215_v61 = vadd.f32 %v1014_v40, %v566_v3  ;;  %v8932_v31 = vpop.f32.mrf.mxu0  ;;  %v3036_v40 = vrot.slane %v13257_v54, 3  ;;  %v11228_v3 = vld [vmem:[%s10117_s11 + $0x4c] sm:$0xff]   ;;  %v3490_v54 = vrot.slane %v11157_v1, 3 }
 0x10f   : > { %v8973_v47 = vpop.f32.mrf.mxu1  ;;  %9156 = vmatmul.mubr.msk.bf16.gmra.mxu1 %vm400_vm3, %v10887_v59  ;;  %v3042_v59 = vrot.slane %v13258_v35, 2  ;;  %v3489_v35 = vsel %vm358_vm1, %v3486_v48, %v3488_v26  ;;  %v13266_v50 = vshrl.u32 %v11228_v3, 16  ;;  %v13268_v20 = vshll.u32 %v11228_v3, 16 }
 0x110   : > { %v11230_v44 = vadd.f32 %v8973_v47, %v8931_v19  ;;  %v582_v42 = vpop.f32.mrf.mxu0  ;;  %9203 = vmatprep.mubr.msk.bf16.mxu1 %vm400_vm3, %v3487_v43  ;;  %v11245_v19 = vld [vmem:[%s13230_s1 + $0x14] sm:$0x3]  ;;  %v3037_v28 = vor.u32 %v3036_v40, %v3033_v63  ;;  %v11268_v40 = vld [vmem:[%s13230_s1 + $0x16] sm:$0x3] }
 0x111   : > { %v1027_v46 = vpop.f32.mrf.mxu1  ;;  %v3046_v49 = vor.u32 %v3045_v9, %v3042_v59  ;;  %v3492_v9 = vrot.slane %v11187_v6, 3 }
 0x112   : > { %v11247_v47 = vadd.f32 %v1027_v46, %v579_v2  ;;  %v8935_v43 = vpop.f32.mrf.mxu0  ;;  %9162 = vmatmul.mubr.msk.bf16.vlgmr.msra.gmra.mxu0 %vm400_vm3, %v3020_v24  ;;  %v13270_v2 = vshrl.u32 %v11239_v56, 16  ;;  %v13269_v46 = vshll.u32 %v11239_v56, 16  ;;  %v3491_v24 = vsel %vm358_vm1, %v3488_v26, %v3490_v54 }
 0x113   : > { %v8974_v12 = vpop.f32.mrf.mxu1  ;;  %9244 = vmatpush3.bf16.msra.mxu0 %v3982_v60  ;;  %9165 = vmatprep.mubr.msk.bf16.mxu0 %vm400_vm3, %v3029_v33  ;;  %v4420_v60 = vsel %vm461_vm0, %v10990_v11, 0  ;;  %v3038_v59 = vsel %vm661_vm2, %v3028_v15, %v3037_v28  ;;  %v3051_v11 = vrot.slane %v13266_v50, 2  ;;  %v3054_v26 = vrot.slane %v13268_v20, 3  ;;  %v11289_v50 = vld [vmem:[%s10117_s11 + $0x64] sm:$0xff]  }
 0x114   : > { %v11254_v52 = vadd.f32 %v8974_v12, %v8932_v31  ;;  %v595_v7 = vpop.f32.mrf.mxu0  ;;  %9673 = vmatprep.subr.msk.bf16.mxu0 %vm461_vm0, %v11245_v19  ;;  %v3060_v15 = vrot.slane %v13270_v2, 2  ;;  %v3063_v32 = vrot.slane %v13269_v46, 3  ;;  %13378 = vst [vmem:[#allocation27_spill] sm:$0xff] %v11289_v50  ;;  %v3494_v20 = vrot.slane %v11199_v17, 3 }
 0x115   : > { %v1030_v48 = vpop.f32.mrf.mxu1 }
 0x116   : > { %v11263_v63 = vadd.f32 %v1030_v48, %v582_v42  ;;  %v8936_v31 = vpop.f32.mrf.mxu0  ;;  %v11278_v42 = vld [vmem:[%s10117_s11 + $0x5c] sm:$0xff]   ;;  %v3064_v39 = vor.u32 %v3063_v32, %v3060_v15  ;;  %v3495_v51 = vsel %vm358_vm1, %v3492_v9, %v3494_v20 }
 0x117   : > { %v8977_v33 = vpop.f32.mrf.mxu1  ;;  %9204 = vmatmul.mubr.msk.bf16.vlgmr.msra.gmra.mxu1 %vm400_vm3, %v3489_v35  ;;  %13377 = vst [vmem:[#allocation26_spill] sm:$0xff] %v11278_v42  ;;  %v3047_v35 = vsel %vm661_vm2, %v3037_v28, %v3046_v49  ;;  %v13276_v46 = vshrl.u32 %v11278_v42, 16  ;;  %v13277_v2 = vshll.u32 %v11278_v42, 16 }
 0x118   : > { %v11280_v12 = vadd.f32 %v8977_v33, %v8935_v43  ;;  %9286 = vmatpush3.bf16.msra.mxu1 %v4420_v60  ;;  %v598_v48 = vpop.f32.mrf.mxu0  ;;  %9207 = vmatprep.mubr.msk.bf16.mxu1 %vm400_vm3, %v3491_v24  ;;  %v3493_v24 = vsel %vm358_vm1, %v3490_v54, %v3492_v9  ;;  %v3055_v33 = vor.u32 %v3054_v26, %v3051_v11 }
 0x119   : > { %v1043_v10 = vpop.f32.mrf.mxu1  ;;  %9674 = vmatprep.subr.msk.bf16.mxu1 %vm461_vm0, %v11268_v40  ;;  %v3069_v32 = vrot.slane %v13276_v46, 2  ;;  %v3072_v15 = vrot.slane %v13277_v2, 3  ;;  %v3498_v2 = vrot.slane %v11239_v56, 3 }
 0x11a   : > { %v11294_v43 = vadd.f32 %v1043_v10, %v595_v7  ;;  %v8939_v60 = vpop.f32.mrf.mxu0  ;;  %9166 = vmatmul.mubr.msk.bf16.gmra.mxu0 %vm400_vm3, %v3038_v59  ;;  %v13279_v10 = vshrl.u32 %v11289_v50, 16  ;;  %v13280_v7 = vshll.u32 %v11289_v50, 16 }
 0x11b   : > { %v8978_v28 = vpop.f32.mrf.mxu1  ;;  %9169 = vmatprep.mubr.msk.bf16.mxu0 %vm400_vm3, %v3047_v35  ;;  %v3056_v35 = vsel %vm661_vm2, %v3046_v49, %v3055_v33 }
 0x11c   : > { %v11301_v16 = vadd.f32 %v8978_v28, %v8936_v31  ;;  %v611_v62 = vpop.f32.mrf.mxu0  ;;  %v3496_v31 = vrot.slane %v11228_v3, 3  ;;  %v11316_v28 = vld [vmem:[%s10117_s11 + $0x6c] sm:$0xff]   ;;  %v3078_v49 = vrot.slane %v13279_v10, 2 }
 0x11d   : > { %v1046_v59 = vpop.f32.mrf.mxu1  ;;  %13380 = vst [vmem:[#allocation29_spill] sm:$0xff] %v11316_v28  ;;  %v13283_v10 = vshrl.u32 %v11316_v28, 16 }
 0x11e   : > { %v11306_v54 = vadd.f32 %v1046_v59, %v598_v48  ;;  %v8940_v11 = vpop.f32.mrf.mxu0  ;;  %v3065_v59 = vsel %vm661_vm2, %v3055_v33, %v3064_v39  ;;  %v3073_v33 = vor.u32 %v3072_v15, %v3069_v32 }
 0x11f   : > { %v8981_v26 = vpop.f32.mrf.mxu1  ;;  %9208 = vmatmul.mubr.msk.bf16.gmra.mxu1 %vm400_vm3, %v3493_v24  ;;  %v3081_v24 = vrot.slane %v13280_v7, 3  ;;  %v13284_v7 = vshll.u32 %v11316_v28, 16 }
 0x120   : > { %13379 = vst [vmem:[#allocation28_spill] sm:$0xff] %v11306_v54  ;;  %v11318_v9 = vadd.f32 %v8981_v26, %v8939_v60  ;;  %v614_v48 = vpop.f32.mrf.mxu0  ;;  %9211 = vmatprep.mubr.msk.bf16.mxu1 %vm400_vm3, %v3495_v51  ;;  %v3497_v51 = vsel %vm358_vm1, %v3494_v20, %v3496_v31 }
 0x121   : > { %v1059_v46 = vpop.f32.mrf.mxu1  ;;  %v3082_v56 = vor.u32 %v3081_v24, %v3078_v49  ;;  %v3087_v49 = vrot.slane %v13283_v10, 2  ;;  %v3090_v24 = vrot.slane %v13284_v7, 3  ;;  %v3502_v7 = vrot.slane %v11289_v50, 3 }
 0x122   : > { %13381 = vst [vmem:[#allocation30_spill] sm:$0xff] %v11318_v9  ;;  %v11330_v36 = vadd.f32 %v1059_v46, %v611_v62  ;;  %v8943_v60 = vpop.f32.mrf.mxu0  ;;  %9170 = vmatmul.mubr.msk.bf16.gmra.mxu0 %vm400_vm3, %v3056_v35  ;;  %v13287_v62 = vshrl.u32 %v11327_v53, 16  ;;  %v13288_v46 = vshll.u32 %v11327_v53, 16 }
 0x123   : > { %v8982_v26 = vpop.f32.mrf.mxu1  ;;  %9173 = vmatprep.mubr.msk.bf16.mxu0 %vm400_vm3, %v3065_v59  ;;  %v3074_v59 = vsel %vm661_vm2, %v3064_v39, %v3073_v33 }
 0x124   : > { %13383 = vst [vmem:[#allocation32_spill] sm:$0xff] %v11330_v36  ;;  %v11337_v9 = vadd.f32 %v8982_v26, %v8940_v11  ;;  %v627_v54 = vpop.f32.mrf.mxu0  ;;  %v3499_v36 = vsel %vm358_vm1, %v3496_v31, %v3498_v2  ;;  %v3500_v11 = vrot.slane %v11278_v42, 3  ;;  %v11352_v26 = vld [vmem:[%s10117_s11 + $0x7c] sm:$0xff]   ;;  %v3096_v39 = vrot.slane %v13287_v62, 2 }
 0x125   : > { %v1062_v35 = vpop.f32.mrf.mxu1  ;;  %v13293_v62 = vshrl.u32 %v11352_v26, 16 }
 0x126   : > { %13384 = vst [vmem:[#allocation33_spill] sm:$0xff] %v11337_v9  ;;  %v11342_v20 = vadd.f32 %v1062_v35, %v614_v48  ;;  %v8944_v32 = vpop.f32.mrf.mxu0  ;;  %v3083_v35 = vsel %vm661_vm2, %v3073_v33, %v3082_v56  ;;  %v3501_v33 = vsel %vm358_vm1, %v3498_v2, %v3500_v11 }
 0x127   : > { %v8985_v15 = vpop.f32.mrf.mxu1  ;;  %9212 = vmatmul.mubr.msk.bf16.gmra.mxu1 %vm400_vm3, %v3497_v51  ;;  %v3099_v51 = vrot.slane %v13288_v46, 3  ;;  %v13295_v46 = vshll.u32 %v11352_v26, 16 }
 0x128   : > { %13385 = vst [vmem:[#allocation34_spill] sm:$0xff] %v11342_v20  ;;  %v11354_v31 = vadd.f32 %v8985_v15, %v8943_v60  ;;  %v630_v48 = vpop.f32.mrf.mxu0  ;;  %9215 = vmatprep.mubr.msk.bf16.mxu1 %vm400_vm3, %v3499_v36  ;;  %v11363_v20 = vld [vmem:[%s10117_s11 + $0x84] sm:$0xff]   ;;  %v3091_v15 = vor.u32 %v3090_v24, %v3087_v49  ;;  %v11381_v49 = vld [vmem:[%s10117_s11 + $0x8c] sm:$0xff]  }
 0x129   : > { %v1075_v10 = vpop.f32.mrf.mxu1  ;;  %v3100_v50 = vor.u32 %v3099_v51, %v3096_v39  ;;  %13390 = vst [vmem:[#allocation39_spill] sm:$0xff] %v11381_v49  ;;  %v3504_v39 = vrot.slane %v11316_v28, 3  ;;  %v3105_v51 = vrot.slane %v13293_v62, 2  ;;  %v3506_v62 = vrot.slane %v11327_v53, 3 }
 0x12a   : > { %13386 = vst [vmem:[#allocation35_spill] sm:$0xff] %v11354_v31  ;;  %v11366_v42 = vadd.f32 %v1075_v10, %v627_v54  ;;  %v8947_v60 = vpop.f32.mrf.mxu0  ;;  %9174 = vmatmul.mubr.msk.bf16.gmra.mxu0 %vm400_vm3, %v3074_v59  ;;  %v13294_v10 = vshrl.u32 %v11363_v20, 16  ;;  %v13296_v54 = vshll.u32 %v11363_v20, 16 }
 0x12b   : > { %v8986_v36 = vpop.f32.mrf.mxu1  ;;  %9177 = vmatprep.mubr.msk.bf16.mxu0 %vm400_vm3, %v3083_v35 }
 0x12c   : > { %13387 = vst [vmem:[#allocation36_spill] sm:$0xff] %v11366_v42  ;;  %v11373_v31 = vadd.f32 %v8986_v36, %v8944_v32  ;;  %v643_v9 = vpop.f32.mrf.mxu0  ;;  %v3503_v42 = vsel %vm358_vm1, %v3500_v11, %v3502_v7  ;;  %v3092_v32 = vsel %vm661_vm2, %v3082_v56, %v3091_v15  ;;  %v3108_v36 = vrot.slane %v13295_v46, 3 }
 0x12d   : > { %v1078_v59 = vpop.f32.mrf.mxu1  ;;  %v3117_v56 = vrot.slane %v13296_v54, 3  ;;  %v3505_v46 = vsel %vm358_vm1, %v3502_v7, %v3504_v39 }
 0x12e   : > { %13388 = vst [vmem:[#allocation37_spill] sm:$0xff] %v11373_v31  ;;  %v11378_v2 = vadd.f32 %v1078_v59, %v630_v48  ;;  %v8948_v35 = vpop.f32.mrf.mxu0  ;;  %v3101_v59 = vsel %vm661_vm2, %v3091_v15, %v3100_v50  ;;  %v3109_v54 = vor.u32 %v3108_v36, %v3105_v51  ;;  %v13393_v51 = vshrl.u32 %v11381_v49, 16 }
 0x12f   : > { %v8989_v24 = vpop.f32.mrf.mxu1  ;;  %9216 = vmatmul.mubr.msk.bf16.gmra.mxu1 %vm400_vm3, %v3501_v33  ;;  %v3114_v33 = vrot.slane %v13294_v10, 2  ;;  %v13394_v36 = vshll.u32 %v11381_v49, 16 }
 0x130   : > { %13389 = vst [vmem:[#allocation38_spill] sm:$0xff] %v11378_v2  ;;  %v11390_v11 = vadd.f32 %v8989_v24, %v8947_v60  ;;  %v646_v48 = vpop.f32.mrf.mxu0  ;;  %9219 = vmatprep.mubr.msk.bf16.mxu1 %vm400_vm3, %v3503_v42  ;;  %v11399_v2 = vld [vmem:[%s10117_s11 + $0x94] sm:$0xff]  }
 0x131   : > { %v1091_v28 = vpop.f32.mrf.mxu1 }
 0x132   : > { %13391 = vst [vmem:[#allocation40_spill] sm:$0xff] %v11390_v11  ;;  %v11402_v31 = vadd.f32 %v1091_v28, %v643_v9  ;;  %v8995_v60 = vpop.f32.mrf.mxu0  ;;  %9178 = vmatmul.mubr.msk.bf16.gmra.mxu0 %vm400_vm3, %v3092_v32  ;;  %v3118_v28 = vor.u32 %v3117_v56, %v3114_v33  ;;  %v13299_v9 = vshrl.u32 %v11399_v2, 16  ;;  %v13300_v32 = vshll.u32 %v11399_v2, 16 }
 0x133   : > { %v8990_v24 = vpop.f32.mrf.mxu1  ;;  %v1464_v10 = vadd.f32 %v8995_v60, %v11063_v34  ;;  %9181 = vmatprep.mubr.msk.bf16.mxu0 %vm400_vm3, %v3101_v59  ;;  %v3126_v59 = vrot.slane %v13394_v36, 3  ;;  %v3110_v60 = vsel %vm661_vm2, %v3100_v50, %v3109_v54 }
 0x134   : > { %13392 = vst [vmem:[#allocation41_spill] sm:$0xff] %v11402_v31  ;;  %v11410_v11 = vadd.f32 %v8990_v24, %v8948_v35  ;;  %v1303_v53 = vpop.f32.mrf.mxu0  ;;  %v3507_v31 = vsel %vm358_vm1, %v3504_v39, %v3506_v62  ;;  %v3123_v35 = vrot.slane %v13393_v51, 2  ;;  %v3132_v24 = vrot.slane %v13299_v9, 2 }
 0x135   : > { %v1094_v42 = vpop.f32.mrf.mxu1  ;;  %v1462_v15 = vadd.f32 %v1303_v53, %v11070_v27  ;;  %v3508_v53 = vrot.slane %v11352_v26, 3  ;;  %v11427_v27 = vld [vmem:[%s10117_s11 + $0x9c] sm:$0xff]   ;;  %v3510_v51 = vrot.slane %v11363_v20, 3 }
 0x136   : > { %v11416_v34 = vadd.f32 %v1094_v42, %v646_v48  ;;  %v8996_v7 = vpop.f32.mrf.mxu0  ;;  %v3119_v42 = vsel %vm661_vm2, %v3109_v54, %v3118_v28 }
 0x137   : > { %v1465_v33 = vadd.f32 %v8996_v7, %v11077_v22  ;;  %v9037_v56 = vpop.f32.mrf.mxu1  ;;  %9220 = vmatmul.mubr.msk.bf16.gmra.mxu1 %vm400_vm3, %v3505_v46  ;;  %v3135_v22 = vrot.slane %v13300_v32, 3  ;;  %v11438_v46 = vld [vmem:[%s10117_s11 + $0xa4] sm:$0xff]   ;;  %v3509_v9 = vsel %vm358_vm1, %v3506_v62, %v3508_v53  ;;  %v3511_v62 = vsel %vm358_vm1, %v3508_v53, %v3510_v51 }
 0x138   : > { %v11429_v39 = vadd.f32 %v9037_v56, %v1464_v10  ;;  %v1306_v48 = vpop.f32.mrf.mxu0  ;;  %9223 = vmatprep.mubr.msk.bf16.mxu1 %vm400_vm3, %v3507_v31  ;;  %v3127_v31 = vor.u32 %v3126_v59, %v3123_v35  ;;  %v13304_v35 = vshll.u32 %v11438_v46, 16 }
 0x139   : > { %v1463_v50 = vadd.f32 %v1306_v48, %v11080_v37  ;;  %v1910_v7 = vpop.f32.mrf.mxu1  ;;  %v11460_v37 = vld [vmem:[%s10117_s11 + $0xac] sm:$0xff]  }
 0x13a   : > { %v11442_v10 = vadd.f32 %v1910_v7, %v1462_v15  ;;  %v8999_v36 = vpop.f32.mrf.mxu0  ;;  %9182 = vmatmul.mubr.msk.bf16.gmra.mxu0 %vm400_vm3, %v3110_v60  ;;  %v3136_v7 = vor.u32 %v3135_v22, %v3132_v24  ;;  %v13303_v60 = vshrl.u32 %v11438_v46, 16  ;;  %v3128_v32 = vsel %vm661_vm2, %v3118_v28, %v3127_v31 }
 0x13b   : > { %v1468_v54 = vadd.f32 %v8999_v36, %v11087_v5  ;;  %v9038_v56 = vpop.f32.mrf.mxu1  ;;  %9185 = vmatprep.mubr.msk.bf16.mxu0 %vm400_vm3, %v3119_v42  ;;  %v3512_v22 = vrot.slane %v11381_v49, 3 }
 0x13c   : > { %v11450_v48 = vadd.f32 %v9038_v56, %v1465_v33  ;;  %v1319_v15 = vpop.f32.mrf.mxu0  ;;  %v13396_v56 = vshrl.u32 %v11427_v27, 16 }
 0x13d   : > { %v1466_v5 = vadd.f32 %v1319_v15, %v11094_v38  ;;  %v1913_v59 = vpop.f32.mrf.mxu1  ;;  %v13397_v15 = vshll.u32 %v11427_v27, 16 }
 0x13e   : > { %v11456_v36 = vadd.f32 %v1913_v59, %v1463_v50  ;;  %v9000_v42 = vpop.f32.mrf.mxu0  ;;  %v3141_v38 = vrot.slane %v13396_v56, 2  ;;  %v11470_v50 = vld [vmem:[%s10117_s11 + $0xb4] sm:$0xff]  }
 0x13f   : > { %v1469_v33 = vadd.f32 %v9000_v42, %v11101_v14  ;;  %v9041_v24 = vpop.f32.mrf.mxu1  ;;  %9224 = vmatmul.mubr.msk.bf16.gmra.mxu1 %vm400_vm3, %v3509_v9  ;;  %v3144_v53 = vrot.slane %v13397_v15, 3  ;;  %v3137_v14 = vsel %vm661_vm2, %v3127_v31, %v3136_v7  ;;  %v3150_v9 = vrot.slane %v13303_v60, 2 }
 0x140   : > { %13395 = vst [vmem:[#allocation42_spill] sm:$0xff] %v11456_v36  ;;  %v11472_v59 = vadd.f32 %v9041_v24, %v1468_v54  ;;  %v1322_v28 = vpop.f32.mrf.mxu0  ;;  %9227 = vmatprep.mubr.msk.bf16.mxu1 %vm400_vm3, %v3511_v62  ;;  %v3153_v42 = vrot.slane %v13304_v35, 3  ;;  %v3514_v15 = vrot.slane %v11399_v2, 3 }
 0x141   : > { %v1467_v56 = vadd.f32 %v1322_v28, %v11106_v55  ;;  %v1926_v36 = vpop.f32.mrf.mxu1  ;;  %v3145_v35 = vor.u32 %v3144_v53, %v3141_v38  ;;  %v13305_v55 = vshrl.u32 %v11470_v50, 16  ;;  %v13400_v38 = vshrl.u32 %v11460_v37, 16 }
 0x142   : > { %13398 = vst [vmem:[#allocation43_spill] sm:$0xff] %v11472_v59  ;;  %v11482_v49 = vadd.f32 %v1926_v36, %v1466_v5  ;;  %v9003_v54 = vpop.f32.mrf.mxu0  ;;  %9186 = vmatmul.mubr.msk.bf16.gmra.mxu0 %vm400_vm3, %v3128_v32  ;;  %v3513_v32 = vsel %vm358_vm1, %v3510_v51, %v3512_v22 }
 0x143   : > { %v1472_v24 = vadd.f32 %v9003_v54, %v11116_v0  ;;  %v9042_v60 = vpop.f32.mrf.mxu1  ;;  %9189 = vmatprep.mubr.msk.bf16.mxu0 %vm400_vm3, %v3137_v14  ;;  %v3515_v0 = vsel %vm358_vm1, %v3512_v22, %v3514_v15  ;;  %v3159_v53 = vrot.slane %v13400_v38, 2  ;;  %v13401_v14 = vshll.u32 %v11460_v37, 16 }
 0x144   : > { %13399 = vst [vmem:[#allocation44_spill] sm:$0xff] %v11482_v49  ;;  %v11491_v5 = vadd.f32 %v9042_v60, %v1469_v33  ;;  %v1335_v36 = vpop.f32.mrf.mxu0  ;;  %v3154_v49 = vor.u32 %v3153_v42, %v3150_v9  ;;  %v11503_v60 = vld [vmem:[%s10117_s11 + $0xbc] ss:$0 sps:$4 sm:$0x77]   ;;  %v3168_v22 = vrot.slane %v13305_v55, 2  ;;  %v13402_v9 = vshll.u32 %v11470_v50, 16 }
 0x145   : > { %v1470_v62 = vadd.f32 %v1335_v36, %v11123_v58  ;;  %v1929_v31 = vpop.f32.mrf.mxu1  ;;  %v3162_v28 = vrot.slane %v13401_v14, 3  ;;  %v3146_v58 = vsel %vm661_vm2, %v3136_v7, %v3145_v35  ;;  %v3516_v36 = vrot.slane %v11427_v27, 3 }
 0x146   : > { %v11496_v54 = vadd.f32 %v1929_v31, %v1467_v56  ;;  %v9004_v59 = vpop.f32.mrf.mxu0  ;;  %v3171_v42 = vrot.slane %v13402_v9, 3  ;;  %v3518_v7 = vrot.slane %v11438_v46, 3 }
 0x147   : > { %v1473_v33 = vadd.f32 %v9004_v59, %v11132_v8  ;;  %v9045_v51 = vpop.f32.mrf.mxu1  ;;  %9228 = vmatmul.mubr.msk.bf16.gmra.mxu1 %vm400_vm3, %v3513_v32  ;;  %v3155_v8 = vsel %vm661_vm2, %v3145_v35, %v3154_v49  ;;  %v3163_v9 = vor.u32 %v3162_v28, %v3159_v53  ;;  %v3178_v35 = vshll.u32 %v11503_v60, 16 }
 0x148   : > { %v11512_v56 = vadd.f32 %v9045_v51, %v1472_v24  ;;  %v1338_v31 = vpop.f32.mrf.mxu0  ;;  %9231 = vmatprep.mubr.msk.bf16.mxu1 %vm400_vm3, %v3515_v0  ;;  %v3175_v24 = vshrl.u32 %v11503_v60, 16  ;;  %v3172_v55 = vor.u32 %v3171_v42, %v3168_v22  ;;  %v3520_v42 = vrot.slane %v11460_v37, 3 }
 0x149   : > { %v1471_v59 = vadd.f32 %v1338_v31, %v11135_v57  ;;  %v1942_v32 = vpop.f32.mrf.mxu1  ;;  %v3829_v57 = vshrl.u32 %v11173_v18, 16  ;;  %v3164_v22 = vsel %vm661_vm2, %v3154_v49, %v3163_v9  ;;  %v13405_v49 = vshrl.u32 %v11114_v23, 16 }
 0x14a   : > { %v11519_v38 = vadd.f32 %v1942_v32, %v1470_v62  ;;  %v9007_v14 = vpop.f32.mrf.mxu0  ;;  %9190 = vmatmul.mubr.msk.bf16.gmra.mxu0 %vm400_vm3, %v3146_v58  ;;  %v3517_v32 = vsel %vm358_vm1, %v3514_v15, %v3516_v36  ;;  %v3832_v58 = vshll.u32 %v11173_v18, 16  ;;  %v3173_v18 = vsel %vm661_vm2, %v3163_v9, %v3172_v55 }
 0x14b   : > { %v1476_v51 = vadd.f32 %v9007_v14, %v11149_v30  ;;  %v9046_v0 = vpop.f32.mrf.mxu1  ;;  %9193 = vmatprep.mubr.msk.bf16.mxu0 %vm400_vm3, %v3155_v8  ;;  %v3519_v30 = vsel %vm358_vm1, %v3516_v36, %v3518_v7  ;;  %v3180_v15 = vrot.slane %v3178_v35, 3 }
 0x14c   : > { %13403 = vst [vmem:[#allocation45_spill] sm:$0xff] %v11519_v38  ;;  %v11527_v31 = vadd.f32 %v9046_v0, %v1473_v33  ;;  %v1351_v62 = vpop.f32.mrf.mxu0  ;;  %v3177_v38 = vrot.slane %v3175_v24, 2  ;;  %v13406_v24 = vshll.u32 %v11114_v23, 16 }
 0x14d   : > { %v1474_v28 = vadd.f32 %v1351_v62, %v11159_v4  ;;  %v1945_v53 = vpop.f32.mrf.mxu1  ;;  %v3831_v4 = vrot.slane %v3829_v57, 3 }
 0x14e   : > { %v11533_v14 = vadd.f32 %v1945_v53, %v1471_v59  ;;  %v9008_v8 = vpop.f32.mrf.mxu0  ;;  %v3834_v59 = vrot.slane %v3832_v58, 4  ;;  %v3836_v53 = vrot.slane %v13405_v49, 3  ;;  %v3181_v58 = vor.u32 %v3180_v15, %v3177_v38 }
 0x14f   : > { %v1477_v33 = vadd.f32 %v9008_v8, %v11169_v29  ;;  %v9049_v0 = vpop.f32.mrf.mxu1  ;;  %9232 = vmatmul.mubr.msk.bf16.gmra.mxu1 %vm400_vm3, %v3517_v32  ;;  %v3522_v32 = vrot.slane %v11470_v50, 3  ;;  %v13408_v38 = vshll.u32 %v11147_v13, 16 }
 0x150   : > { %13404 = vst [vmem:[#allocation46_spill] sm:$0xff] %v11533_v14  ;;  %v11540_v62 = vadd.f32 %v9049_v0, %v1476_v51  ;;  %v1354_v36 = vpop.f32.mrf.mxu0  ;;  %9235 = vmatprep.mubr.msk.bf16.mxu1 %vm400_vm3, %v3519_v30  ;;  %v3837_v14 = vrot.slane %v13406_v24, 4  ;;  %v3521_v0 = vsel %vm358_vm1, %v3518_v7, %v3520_v42  ;;  %v3182_v7 = vsel %vm661_vm2, %v3172_v55, %v3181_v58 }
 0x151   : > { %v1475_v29 = vadd.f32 %v1354_v36, %v11175_v45  ;;  %v1958_v8 = vpop.f32.mrf.mxu1  ;;  %v3835_v45 = vor.u32 %v3834_v59, %v3831_v4  ;;  %v3523_v24 = vsel %vm358_vm1, %v3520_v42, %v3522_v32 }
 0x152   : > { %v11549_v9 = vadd.f32 %v1958_v8, %v1474_v28  ;;  %v9011_v35 = vpop.f32.mrf.mxu0  ;;  %9194 = vmatmul.mubr.msk.bf16.gmra.mxu0 %vm400_vm3, %v3164_v22  ;;  %v3838_v36 = vor.u32 %v3837_v14, %v3836_v53 }
 0x153   : > { %v1480_v51 = vadd.f32 %v9011_v35, %v11189_v41  ;;  %v9050_v57 = vpop.f32.mrf.mxu1  ;;  %9197 = vmatprep.mubr.msk.bf16.mxu0 %vm400_vm3, %v3173_v18  ;;  %v13407_v41 = vshrl.u32 %v11147_v13, 16  ;;  %v13409_v13 = vshrl.u32 %v11157_v1, 16 }
 0x154   : > { %v11554_v30 = vadd.f32 %v9050_v57, %v1477_v33  ;;  %v1367_v23 = vpop.f32.mrf.mxu0  ;;  %v3841_v33 = vrot.slane %v13408_v38, 4  ;;  %v3839_v4 = vsel %vm1112_vm4, %v3835_v45, %v3838_v36 }
 0x155   : > { %v1478_v49 = vadd.f32 %v1367_v23, %v11203_v21  ;;  %v1961_v28 = vpop.f32.mrf.mxu1  ;;  %v3840_v35 = vrot.slane %v13407_v41, 3  ;;  %v3524_v21 = vrot.slane %v11503_v60, 3  ;;  %v3844_v59 = vrot.slane %v13409_v13, 3 }
 0x156   : > { %v11559_v8 = vadd.f32 %v1961_v28, %v1475_v29  ;;  %v9012_v22 = vpop.f32.mrf.mxu0  ;;  %v9809_v28 = vld [vmem:[%s10117_s11] sm:$0xff]  }
 0x157   : > { %v1481_v18 = vadd.f32 %v9012_v22, %v11210_v25  ;;  %v9053_v15 = vpop.f32.mrf.mxu1  ;;  %9236 = vmatmul.mubr.msk.bf16.gmra.mxu1 %vm400_vm3, %v3521_v0  ;;  %v13410_v25 = vshll.u32 %v11157_v1, 16  ;;  %v3525_v1 = vsel %vm358_vm1, %v3522_v32, %v3524_v21  ;;  %v13411_v32 = vshrl.u32 %v11187_v6, 16 }
 0x158   : > { %v11569_v14 = vadd.f32 %v9053_v15, %v1480_v51  ;;  %v1370_v42 = vpop.f32.mrf.mxu0  ;;  %9239 = vmatprep.mubr.msk.bf16.mxu1 %vm400_vm3, %v3523_v24  ;;  %v3842_v51 = vor.u32 %v3841_v33, %v3840_v35  ;;  %v4903_v33 = vsel %vm461_vm0, %v11245_v19, 0  ;;  %v13412_v15 = vshll.u32 %v11187_v6, 16  ;;  %v11611_v6 = vld [vmem:[%s13230_s1 + $0x18] sm:$0x3] }
 0x159   : > { %v3845_v53 = vrot.slane %v13410_v25, 4  ;;  %v1479_v29 = vadd.f32 %v1370_v42, %v11215_v61  ;;  %v1974_v57 = vpop.f32.mrf.mxu1 }
 0x15a   : > { %v11578_v55 = vadd.f32 %v1974_v57, %v1478_v49  ;;  %v9015_v60 = vpop.f32.mrf.mxu0  ;;  %9198 = vmatmul.mubr.msk.bf16.gmra.mxu0 %vm400_vm3, %v3182_v7  ;;  %v3843_v35 = vsel %vm1112_vm4, %v3838_v36, %v3842_v51  ;;  %v13413_v36 = vshrl.u32 %v11199_v17, 16 }
 0x15b   : > { %v1484_v58 = vadd.f32 %v9015_v60, %v11230_v44  ;;  %v9054_v23 = vpop.f32.mrf.mxu1  ;;  %9245 = vmatprep.mubr.msk.bf16.mxu0 %vm400_vm3, %v3839_v4  ;;  %v3846_v24 = vor.u32 %v3845_v53, %v3844_v59  ;;  %v13414_v4 = vshll.u32 %v11199_v17, 16  ;;  %v9810_v17 = vld [vmem:[%s10117_s11 + $0x8] sm:$0xff]  }
 0x15c   : > { %v11583_v0 = vadd.f32 %v9054_v23, %v1481_v18  ;;  %v1383_v45 = vpop.f32.mrf.mxu0  ;;  %v3848_v18 = vrot.slane %v13411_v32, 3  ;;  %v3852_v42 = vrot.slane %v13413_v36, 3  ;;  %v13420_v36 = vld [vmem:[#allocation28_spill] sm:$0xff] }
 0x15d   : > { %v1482_v61 = vadd.f32 %v1383_v45, %v11247_v47  ;;  %v1977_v49 = vpop.f32.mrf.mxu1  ;;  %v3849_v47 = vrot.slane %v13412_v15, 4  ;;  %v3853_v19 = vrot.slane %v13414_v4, 4  ;;  %v13417_v15 = vld [vmem:[#allocation25_spill] sm:$0xff] }
 0x15e   : > { %v11588_v22 = vadd.f32 %v1977_v49, %v1479_v29  ;;  %v9016_v41 = vpop.f32.mrf.mxu0  ;;  %v11632_v49 = vld [vmem:[%s13230_s1 + $0x1a] sm:$0x3] }
 0x15f   : > { %v1485_v44 = vadd.f32 %v9016_v41, %v11254_v52  ;;  %v9057_v38 = vpop.f32.mrf.mxu1  ;;  %9240 = vmatmul.mubr.msk.bf16.gmra.mxu1 %vm400_vm3, %v3525_v1  ;;  %v3847_v52 = vsel %vm1112_vm4, %v3842_v51, %v3846_v24  ;;  %v3850_v60 = vor.u32 %v3849_v47, %v3848_v18  ;;  %v3854_v23 = vor.u32 %v3853_v19, %v3852_v42 }
 0x160   : > { %v11599_v7 = vadd.f32 %v9057_v38, %v1484_v58  ;;  %v1386_v21 = vpop.f32.mrf.mxu0  ;;  %9287 = vmatprep.mubr.msk.bf16.mxu1 %vm400_vm3, %v9809_v28  ;;  %v9811_v58 = vld [vmem:[%s10117_s11 + $0x10] sm:$0xff]   ;;  %v13418_v47 = vshrl.u32 %v13417_v15, 16 }
 0x161   : > { %v1483_v13 = vadd.f32 %v1386_v21, %v11263_v63  ;;  %v1990_v59 = vpop.f32.mrf.mxu1 }
 0x162   : > { %v11613_v25 = vadd.f32 %v1990_v59, %v1482_v61  ;;  %v9019_v53 = vpop.f32.mrf.mxu0  ;;  %9246 = vmatmul.mubr.msk.bf16.vlgmr.msra.gmra.mxu0 %vm400_vm3, %v3843_v35  ;;  %v3860_v21 = vrot.slane %v13418_v47, 3 }
 0x163   : > { %v1488_v29 = vadd.f32 %v9019_v53, %v11280_v12  ;;  %v9058_v57 = vpop.f32.mrf.mxu1  ;;  %9328 = vmatpush3.bf16.msra.mxu0 %v4903_v33  ;;  %9249 = vmatprep.mubr.msk.bf16.mxu0 %vm400_vm3, %v3847_v52  ;;  %v5251_v12 = vsel %vm461_vm0, %v11268_v40, 0  ;;  %v13416_v40 = vshll.u32 %v11228_v3, 16 }
 0x164   : > { %v11619_v63 = vadd.f32 %v9058_v57, %v1485_v44  ;;  %v1399_v51 = vpop.f32.mrf.mxu0  ;;  %9675 = vmatprep.subr.msk.bf16.mxu0 %vm461_vm0, %v11611_v6  ;;  %v3851_v44 = vsel %vm1112_vm4, %v3846_v24, %v3850_v60  ;;  %v13419_v24 = vshll.u32 %v13417_v15, 16 }
 0x165   : > { %v1486_v45 = vadd.f32 %v1399_v51, %v11294_v43  ;;  %v1993_v1 = vpop.f32.mrf.mxu1  ;;  %v13415_v43 = vshrl.u32 %v11228_v3, 16  ;;  %v3857_v33 = vrot.slane %v13416_v40, 4  ;;  %v9813_v51 = vld [vmem:[%s10117_s11 + $0x20] sm:$0xff]  }
 0x166   : > { %v11627_v28 = vadd.f32 %v1993_v1, %v1483_v13  ;;  %v9020_v61 = vpop.f32.mrf.mxu0  ;;  %v3861_v52 = vrot.slane %v13419_v24, 4  ;;  %v13421_v13 = vld [vmem:[#allocation30_spill] sm:$0xff]  ;;  %v13422_v1 = vld [vmem:[#allocation32_spill] sm:$0xff] }
 0x167   : > { %v1489_v41 = vadd.f32 %v9020_v61, %v11301_v16  ;;  %v9061_v35 = vpop.f32.mrf.mxu1  ;;  %9288 = vmatmul.mubr.msk.bf16.vlgmr.msra.gmra.mxu1 %vm400_vm3, %v9810_v17  ;;  %v3856_v38 = vrot.slane %v13415_v43, 3  ;;  %v3855_v16 = vsel %vm1112_vm4, %v3850_v60, %v3854_v23  ;;  %v13423_v43 = vld [vmem:[#allocation33_spill] sm:$0xff] }
 0x168   : > { %v11641_v32 = vadd.f32 %v9061_v35, %v1488_v29  ;;  %9370 = vmatpush3.bf16.msra.mxu1 %v5251_v12  ;;  %v1402_v18 = vpop.f32.mrf.mxu0  ;;  %9291 = vmatprep.mubr.msk.bf16.mxu1 %vm400_vm3, %v9811_v58  ;;  %v9812_v29 = vld [vmem:[%s10117_s11 + $0x18] sm:$0xff]   ;;  %v3862_v58 = vor.u32 %v3861_v52, %v3860_v21  ;;  %v13427_v52 = vld [vmem:[#allocation27_spill] sm:$0xff] }
 0x169   : > { %v1487_v42 = vadd.f32 %v1402_v18, %v13420_v36  ;;  %v2006_v3 = vpop.f32.mrf.mxu1  ;;  %9676 = vmatprep.subr.msk.bf16.mxu1 %vm461_vm0, %v11632_v49  ;;  %v3858_v57 = vor.u32 %v3857_v33, %v3856_v38  ;;  %v13428_v36 = vshrl.u32 %v13427_v52, 16 }
 0x16a   : > { %v11652_v4 = vadd.f32 %v2006_v3, %v1486_v45  ;;  %v9023_v19 = vpop.f32.mrf.mxu0  ;;  %9250 = vmatmul.mubr.msk.bf16.gmra.mxu0 %vm400_vm3, %v3851_v44 }
 0x16b   : > { %v1492_v59 = vadd.f32 %v9023_v19, %v13421_v13  ;;  %v9062_v53 = vpop.f32.mrf.mxu1  ;;  %9253 = vmatprep.mubr.msk.bf16.mxu0 %vm400_vm3, %v3855_v16  ;;  %v3859_v18 = vsel %vm1112_vm4, %v3854_v23, %v3858_v57  ;;  %v13424_v16 = vld [vmem:[#allocation26_spill] sm:$0xff]  ;;  %v3863_v24 = vsel %vm1112_vm4, %v3858_v57, %v3862_v58  ;;  %v13429_v23 = vshll.u32 %v13427_v52, 16 }
 0x16c   : > { %v11658_v17 = vadd.f32 %v9062_v53, %v1489_v41  ;;  %v1415_v60 = vpop.f32.mrf.mxu0  ;;  %v13425_v38 = vshrl.u32 %v13424_v16, 16  ;;  %v13426_v33 = vshll.u32 %v13424_v16, 16  ;;  %v13430_v19 = vld [vmem:[#allocation34_spill] sm:$0xff] }
 0x16d   : > { %v1490_v12 = vadd.f32 %v1415_v60, %v13422_v1  ;;  %v2009_v61 = vpop.f32.mrf.mxu1  ;;  %v3869_v3 = vrot.slane %v13429_v23, 4 }
 0x16e   : > { %v11662_v45 = vadd.f32 %v2009_v61, %v1487_v42  ;;  %v9024_v35 = vpop.f32.mrf.mxu0  ;;  %v3864_v41 = vrot.slane %v13425_v38, 3  ;;  %v3865_v15 = vrot.slane %v13426_v33, 4  ;;  %v3868_v42 = vrot.slane %v13428_v36, 3  ;;  %v9814_v61 = vld [vmem:[%s10117_s11 + $0x28] sm:$0xff]   ;;  %v13432_v38 = vld [vmem:[#allocation36_spill] sm:$0xff]  ;;  %v13433_v36 = vld [vmem:[#allocation37_spill] sm:$0xff] }
 0x16f   : > { %v1493_v44 = vadd.f32 %v9024_v35, %v13423_v43  ;;  %v9065_v40 = vpop.f32.mrf.mxu1  ;;  %9292 = vmatmul.mubr.msk.bf16.gmra.mxu1 %vm400_vm3, %v9812_v29 }
 0x170   : > { %v11671_v47 = vadd.f32 %v9065_v40, %v1492_v59  ;;  %v1418_v21 = vpop.f32.mrf.mxu0  ;;  %9295 = vmatprep.mubr.msk.bf16.mxu1 %vm400_vm3, %v9813_v51  ;;  %v13431_v59 = vld [vmem:[#allocation35_spill] sm:$0xff]  ;;  %v3866_v57 = vor.u32 %v3865_v15, %v3864_v41  ;;  %v3870_v16 = vor.u32 %v3869_v3, %v3868_v42 }
 0x171   : > { %v1491_v13 = vadd.f32 %v1418_v21, %v13430_v19  ;;  %v2022_v53 = vpop.f32.mrf.mxu1  ;;  %v9815_v40 = vld [vmem:[%s10117_s11 + $0x30] sm:$0xff]  }
 0x172   : > { %v11680_v29 = vadd.f32 %v2022_v53, %v1490_v12  ;;  %v9027_v60 = vpop.f32.mrf.mxu0  ;;  %9254 = vmatmul.mubr.msk.bf16.gmra.mxu0 %vm400_vm3, %v3859_v18  ;;  %v3867_v19 = vsel %vm1112_vm4, %v3862_v58, %v3866_v57 }
 0x173   : > { %v1496_v1 = vadd.f32 %v9027_v60, %v13431_v59  ;;  %v9066_v51 = vpop.f32.mrf.mxu1  ;;  %9257 = vmatprep.mubr.msk.bf16.mxu0 %vm400_vm3, %v3863_v24  ;;  %v13434_v24 = vld [vmem:[#allocation29_spill] sm:$0xff]  ;;  %v13437_v60 = vld [vmem:[#allocation31_spill] sm:$0xff] }
 0x174   : > { %v11686_v35 = vadd.f32 %v9066_v51, %v1493_v44  ;;  %v1431_v43 = vpop.f32.mrf.mxu0  ;;  %v13435_v41 = vshrl.u32 %v13434_v24, 16  ;;  %v13436_v15 = vshll.u32 %v13434_v24, 16  ;;  %v13438_v59 = vshrl.u32 %v13437_v60, 16  ;;  %v9816_v24 = vld [vmem:[%s10117_s11 + $0x38] sm:$0xff]  }
 0x175   : > { %v1494_v33 = vadd.f32 %v1431_v43, %v13432_v38  ;;  %v2025_v21 = vpop.f32.mrf.mxu1  ;;  %v13439_v58 = vshll.u32 %v13437_v60, 16  ;;  %v13440_v43 = vld [vmem:[#allocation38_spill] sm:$0xff]  ;;  %v9817_v60 = vld [vmem:[%s10117_s11 + $0x40] sm:$0xff]  }
 0x176   : > { %v11690_v12 = vadd.f32 %v2025_v21, %v1491_v13  ;;  %v9028_v52 = vpop.f32.mrf.mxu0  ;;  %v3872_v44 = vrot.slane %v13435_v41, 3  ;;  %v3873_v42 = vrot.slane %v13436_v15, 4  ;;  %v3871_v13 = vsel %vm1112_vm4, %v3866_v57, %v3870_v16 }
 0x177   : > { %v1497_v18 = vadd.f32 %v9028_v52, %v13433_v36  ;;  %v9069_v23 = vpop.f32.mrf.mxu1  ;;  %9296 = vmatmul.mubr.msk.bf16.gmra.mxu1 %vm400_vm3, %v9814_v61  ;;  %v3876_v51 = vrot.slane %v13438_v59, 3  ;;  %v3877_v61 = vrot.slane %v13439_v58, 4  ;;  %v13443_v58 = vld [vmem:[#allocation41_spill] sm:$0xff] }
 0x178   : > { %v11699_v3 = vadd.f32 %v9069_v23, %v1496_v1  ;;  %v1434_v53 = vpop.f32.mrf.mxu0  ;;  %9299 = vmatprep.mubr.msk.bf16.mxu1 %vm400_vm3, %v9815_v40  ;;  %v13442_v1 = vld [vmem:[#allocation40_spill] sm:$0xff]  ;;  %v3874_v57 = vor.u32 %v3873_v42, %v3872_v44  ;;  %v13444_v44 = vshrl.u32 %v11352_v26, 16  ;;  %v13445_v42 = vshll.u32 %v11352_v26, 16 }
 0x179   : > { %v1495_v38 = vadd.f32 %v1434_v53, %v13440_v43  ;;  %v2038_v21 = vpop.f32.mrf.mxu1  ;;  %v3878_v59 = vor.u32 %v3877_v61, %v3876_v51 }
 0x17a   : > { %v11708_v52 = vadd.f32 %v2038_v21, %v1494_v33  ;;  %v9031_v36 = vpop.f32.mrf.mxu0  ;;  %9258 = vmatmul.mubr.msk.bf16.gmra.mxu0 %vm400_vm3, %v3867_v19 }
 0x17b   : > { %v1500_v23 = vadd.f32 %v9031_v36, %v13442_v1  ;;  %v9070_v40 = vpop.f32.mrf.mxu1  ;;  %9261 = vmatprep.mubr.msk.bf16.mxu0 %vm400_vm3, %v3871_v13  ;;  %v3875_v36 = vsel %vm1112_vm4, %v3870_v16, %v3874_v57  ;;  %v3881_v13 = vrot.slane %v13445_v42, 4  ;;  %v13447_v16 = vshll.u32 %v11363_v20, 16 }
 0x17c   : > { %13441 = vst [vmem:[#allocation25_spill] sm:$0xff] %v11708_v52  ;;  %v11714_v41 = vadd.f32 %v9070_v40, %v1497_v18  ;;  %v1447_v15 = vpop.f32.mrf.mxu0  ;;  %v3880_v18 = vrot.slane %v13444_v44, 3 }
 0x17d   : > { %v1498_v53 = vadd.f32 %v1447_v15, %v13443_v58  ;;  %v2041_v43 = vpop.f32.mrf.mxu1  ;;  %v3885_v40 = vrot.slane %v13447_v16, 4 }
 0x17e   : > { %v11718_v33 = vadd.f32 %v2041_v43, %v1495_v38  ;;  %v9032_v21 = vpop.f32.mrf.mxu0  ;;  %v13446_v38 = vshrl.u32 %v11363_v20, 16  ;;  %v9819_v20 = vld [vmem:[%s10117_s11 + $0x50] sm:$0xff]  }
 0x17f   : > { %v1501_v19 = vadd.f32 %v9032_v21, %v11410_v11  ;;  %v9073_v52 = vpop.f32.mrf.mxu1  ;;  %9300 = vmatmul.mubr.msk.bf16.gmra.mxu1 %vm400_vm3, %v9816_v24  ;;  %v3879_v11 = vsel %vm1112_vm4, %v3874_v57, %v3878_v59  ;;  %v3882_v57 = vor.u32 %v3881_v13, %v3880_v18 }
 0x180   : > { %v11727_v51 = vadd.f32 %v9073_v52, %v1500_v23  ;;  %v1450_v61 = vpop.f32.mrf.mxu0  ;;  %9303 = vmatprep.mubr.msk.bf16.mxu1 %vm400_vm3, %v9817_v60  ;;  %v3884_v1 = vrot.slane %v13446_v38, 3  ;;  %v9818_v60 = vld [vmem:[%s10117_s11 + $0x48] sm:$0xff]  }
 0x181   : > { %v1499_v24 = vadd.f32 %v1450_v61, %v11416_v34  ;;  %v2054_v15 = vpop.f32.mrf.mxu1 }
 0x182   : > { %v11736_v58 = vadd.f32 %v2054_v15, %v1498_v53  ;;  %v9079_v26 = vpop.f32.mrf.mxu0  ;;  %9262 = vmatmul.mubr.msk.bf16.gmra.mxu0 %vm400_vm3, %v3875_v36  ;;  %v3886_v44 = vor.u32 %v3885_v40, %v3884_v1  ;;  %v13451_v40 = vshrl.u32 %v11399_v2, 16 }
 0x183   : > { %v9074_v52 = vpop.f32.mrf.mxu1  ;;  %v2415_v23 = vadd.f32 %v9079_v26, %v11429_v39  ;;  %9265 = vmatprep.mubr.msk.bf16.mxu0 %vm400_vm3, %v3879_v11  ;;  %v3883_v39 = vsel %vm1112_vm4, %v3878_v59, %v3882_v57  ;;  %v13448_v11 = vld [vmem:[#allocation39_spill] sm:$0xff]  ;;  %v13452_v59 = vshll.u32 %v11399_v2, 16  ;;  %v13453_v26 = vld [vmem:[#allocation42_spill] sm:$0xff]  ;;  %v9821_v2 = vld [vmem:[%s10117_s11 + $0x60] sm:$0xff]  }
 0x184   : > { %v11742_v43 = vadd.f32 %v9074_v52, %v1501_v19  ;;  %v2254_v21 = vpop.f32.mrf.mxu0  ;;  %v13449_v18 = vshrl.u32 %v13448_v11, 16  ;;  %v13450_v13 = vshll.u32 %v13448_v11, 16 }
 0x185   : > { %v2057_v42 = vpop.f32.mrf.mxu1  ;;  %v2413_v34 = vadd.f32 %v2254_v21, %v11442_v10  ;;  %v3893_v15 = vrot.slane %v13452_v59, 4 }
 0x186   : > { %v11746_v53 = vadd.f32 %v2057_v42, %v1499_v24  ;;  %v9080_v61 = vpop.f32.mrf.mxu0  ;;  %v3888_v19 = vrot.slane %v13449_v18, 3  ;;  %v3889_v1 = vrot.slane %v13450_v13, 4  ;;  %v3892_v24 = vrot.slane %v13451_v40, 3  ;;  %v13455_v40 = vld [vmem:[#allocation44_spill] sm:$0xff] }
 0x187   : > { %v2416_v36 = vadd.f32 %v9080_v61, %v11450_v48  ;;  %v9121_v38 = vpop.f32.mrf.mxu1  ;;  %9304 = vmatmul.mubr.msk.bf16.gmra.mxu1 %vm400_vm3, %v9818_v60  ;;  %v3887_v48 = vsel %vm1112_vm4, %v3882_v57, %v3886_v44 }
 0x188   : > { %v11755_v16 = vadd.f32 %v9121_v38, %v2415_v23  ;;  %v2257_v10 = vpop.f32.mrf.mxu0  ;;  %9307 = vmatprep.mubr.msk.bf16.mxu1 %vm400_vm3, %v9819_v20  ;;  %v13454_v23 = vld [vmem:[#allocation43_spill] sm:$0xff]  ;;  %v9820_v38 = vld [vmem:[%s10117_s11 + $0x58] sm:$0xff]   ;;  %v3890_v57 = vor.u32 %v3889_v1, %v3888_v19  ;;  %v3894_v13 = vor.u32 %v3893_v15, %v3892_v24  ;;  %v13456_v19 = vshrl.u32 %v11427_v27, 16 }
 0x189   : > { %v2414_v52 = vadd.f32 %v2257_v10, %v13453_v26  ;;  %v2650_v60 = vpop.f32.mrf.mxu1  ;;  %v13457_v1 = vshll.u32 %v11427_v27, 16 }
 0x18a   : > { %v11764_v21 = vadd.f32 %v2650_v60, %v2413_v34  ;;  %v9083_v42 = vpop.f32.mrf.mxu0  ;;  %9266 = vmatmul.mubr.msk.bf16.gmra.mxu0 %vm400_vm3, %v3883_v39 }
 0x18b   : > { %v2419_v61 = vadd.f32 %v9083_v42, %v13454_v23  ;;  %v9122_v20 = vpop.f32.mrf.mxu1  ;;  %9269 = vmatprep.mubr.msk.bf16.mxu0 %vm400_vm3, %v3887_v48  ;;  %v3891_v42 = vsel %vm1112_vm4, %v3886_v44, %v3890_v57  ;;  %v3897_v48 = vrot.slane %v13457_v1, 4  ;;  %v13459_v44 = vshll.u32 %v11438_v46, 16 }
 0x18c   : > { %v11770_v11 = vadd.f32 %v9122_v20, %v2416_v36  ;;  %v2270_v18 = vpop.f32.mrf.mxu0  ;;  %v3896_v36 = vrot.slane %v13456_v19, 3 }
 0x18d   : > { %v2417_v10 = vadd.f32 %v2270_v18, %v13455_v40  ;;  %v2653_v59 = vpop.f32.mrf.mxu1  ;;  %v3901_v20 = vrot.slane %v13459_v44, 4  ;;  %v9827_v44 = vld [vmem:[%s10117_s11 + $0xbc] ss:$0 sps:$4 sm:$0xff]  }
 0x18e   : > { %v11774_v34 = vadd.f32 %v2653_v59, %v2414_v52  ;;  %v9084_v26 = vpop.f32.mrf.mxu0  ;;  %v13458_v52 = vshrl.u32 %v11438_v46, 16  ;;  %v9822_v59 = vld [vmem:[%s10117_s11 + $0x68] sm:$0xff]  }
 0x18f   : > { %v2420_v39 = vadd.f32 %v9084_v26, %v11491_v5  ;;  %v9125_v60 = vpop.f32.mrf.mxu1  ;;  %9308 = vmatmul.mubr.msk.bf16.gmra.mxu1 %vm400_vm3, %v9820_v38  ;;  %v3895_v5 = vsel %vm1112_vm4, %v3890_v57, %v3894_v13  ;;  %v3898_v57 = vor.u32 %v3897_v48, %v3896_v36  ;;  %v13461_v36 = vshrl.u32 %v11460_v37, 16 }
 0x190   : > { %v11783_v24 = vadd.f32 %v9125_v60, %v2419_v61  ;;  %v2273_v15 = vpop.f32.mrf.mxu0  ;;  %9311 = vmatprep.mubr.msk.bf16.mxu1 %vm400_vm3, %v9821_v2  ;;  %v3900_v23 = vrot.slane %v13458_v52, 3  ;;  %v9823_v60 = vld [vmem:[%s10117_s11 + $0x70] sm:$0xff]   ;;  %v13462_v48 = vshll.u32 %v11460_v37, 16 }
 0x191   : > { %v2418_v38 = vadd.f32 %v2273_v15, %v11496_v54  ;;  %v2666_v18 = vpop.f32.mrf.mxu1  ;;  %v13460_v54 = vld [vmem:[#allocation45_spill] sm:$0xff] }
 0x192   : > { %v11792_v40 = vadd.f32 %v2666_v18, %v2417_v10  ;;  %v9087_v27 = vpop.f32.mrf.mxu0  ;;  %9270 = vmatmul.mubr.msk.bf16.gmra.mxu0 %vm400_vm3, %v3891_v42  ;;  %v3902_v19 = vor.u32 %v3901_v20, %v3900_v23  ;;  %v3905_v23 = vrot.slane %v13462_v48, 4  ;;  %v13463_v18 = vshrl.u32 %v11470_v50, 16 }
 0x193   : > { %v2423_v61 = vadd.f32 %v9087_v27, %v11512_v56  ;;  %v9126_v2 = vpop.f32.mrf.mxu1  ;;  %9273 = vmatprep.mubr.msk.bf16.mxu0 %vm400_vm3, %v3895_v5  ;;  %v3899_v5 = vsel %vm1112_vm4, %v3894_v13, %v3898_v57  ;;  %v13464_v13 = vshll.u32 %v11470_v50, 16  ;;  %v3913_v50 = vshrl.u32 %v9827_v44, 16 }
 0x194   : > { %v11798_v26 = vadd.f32 %v9126_v2, %v2420_v39  ;;  %v2286_v46 = vpop.f32.mrf.mxu0  ;;  %v3904_v39 = vrot.slane %v13461_v36, 3  ;;  %v3908_v27 = vrot.slane %v13463_v18, 3 }
 0x195   : > { %v2421_v1 = vadd.f32 %v2286_v46, %v13460_v54  ;;  %v2669_v10 = vpop.f32.mrf.mxu1  ;;  %v3909_v2 = vrot.slane %v13464_v13, 4 }
 0x196   : > { %v11802_v15 = vadd.f32 %v2669_v10, %v2418_v38  ;;  %v9088_v52 = vpop.f32.mrf.mxu0  ;;  %v9824_v10 = vld [vmem:[%s10117_s11 + $0x78] sm:$0xff]  }
 0x197   : > { %v2424_v42 = vadd.f32 %v9088_v52, %v11527_v31  ;;  %v9129_v56 = vpop.f32.mrf.mxu1  ;;  %9312 = vmatmul.mubr.msk.bf16.gmra.mxu1 %vm400_vm3, %v9822_v59  ;;  %v3903_v31 = vsel %vm1112_vm4, %v3898_v57, %v3902_v19  ;;  %v13465_v59 = vld [vmem:[#allocation46_spill] sm:$0xff]  ;;  %v3906_v52 = vor.u32 %v3905_v23, %v3904_v39  ;;  %v3915_v39 = vrot.slane %v3913_v50, 3  ;;  %v5138_v50 = vld [vmem:[%s10117_s11] sm:$0xc] }
 0x198   : > { %v11812_v20 = vadd.f32 %v9129_v56, %v2423_v61  ;;  %v2289_v38 = vpop.f32.mrf.mxu0  ;;  %9315 = vmatprep.mubr.msk.bf16.mxu1 %vm400_vm3, %v9823_v60  ;;  %v3916_v56 = vshll.u32 %v9827_v44, 16 }
 0x199   : > { %v2422_v46 = vadd.f32 %v2289_v38, %v13465_v59  ;;  %v2682_v37 = vpop.f32.mrf.mxu1  ;;  %v9825_v38 = vld [vmem:[%s10117_s11 + $0x80] sm:$0xff]  }
 0x19a   : > { %v11821_v54 = vadd.f32 %v2682_v37, %v2421_v1  ;;  %v9091_v61 = vpop.f32.mrf.mxu0  ;;  %9274 = vmatmul.mubr.msk.bf16.gmra.mxu0 %vm400_vm3, %v3899_v5  ;;  %v3910_v1 = vor.u32 %v3909_v2, %v3908_v27  ;;  %v4655_v59 = vld [vmem:[%s10117_s11] sm:$0xe]  ;;  %v4656_v5 = vld [vmem:[%s10117_s11 + $0x4] sm:$0xf]  ;;  %v3918_v23 = vrot.slane %v3916_v56, 4 }
 0x19b   : > { %v2427_v60 = vadd.f32 %v9091_v61, %v11540_v62  ;;  %v9130_v57 = vpop.f32.mrf.mxu1  ;;  %9277 = vmatprep.mubr.msk.bf16.mxu0 %vm400_vm3, %v3903_v31  ;;  %v8271_v2 = vcombine.low %v4655_v59, %v4656_v5  ;;  %v9828_v59 = vld [vmem:[%s10117_s11 + $0x90] sm:$0xff]  }
 0x19c   : > { %v11827_v36 = vadd.f32 %v9130_v57, %v2424_v42  ;;  %v2302_v48 = vpop.f32.mrf.mxu0  ;;  %v3907_v42 = vsel %vm1112_vm4, %v3902_v19, %v3906_v52  ;;  %v3911_v27 = vsel %vm1112_vm4, %v3906_v52, %v3910_v1  ;;  %v3919_v52 = vor.u32 %v3918_v23, %v3915_v39  ;;  %v9832_v39 = vld [vmem:[%s10117_s11 + $0x10] sm:$0xff]  }
 0x19d   : > { %v2425_v18 = vadd.f32 %v2302_v48, %v11549_v9  ;;  %v2685_v13 = vpop.f32.mrf.mxu1  ;;  %v9826_v48 = vld [vmem:[%s10117_s11 + $0x88] sm:$0xff]  }
 0x19e   : > { %v11833_v37 = vadd.f32 %v2685_v13, %v2422_v46  ;;  %v9092_v62 = vpop.f32.mrf.mxu0  ;;  %v11843_v46 = vld [vmem:[%s10117_s11 + $0x8] sm:$0xff]  }
 0x19f   : > { %v2428_v61 = vadd.f32 %v9092_v62, %v11554_v30  ;;  %v9133_v31 = vpop.f32.mrf.mxu1  ;;  %9316 = vmatmul.mubr.msk.bf16.gmra.mxu1 %vm400_vm3, %v9824_v10 }
 0x1a0   : > { %v11838_v44 = vadd.f32 %v9133_v31, %v2427_v60  ;;  %v2305_v9 = vpop.f32.mrf.mxu0  ;;  %9319 = vmatprep.mubr.msk.bf16.mxu1 %vm400_vm3, %v9825_v38 }
 0x1a1   : > { %v2426_v30 = vadd.f32 %v2305_v9, %v11559_v8  ;;  %v2698_v57 = vpop.f32.mrf.mxu1  ;;  %v4801_v8 = vrot.slane %v8271_v2, 1 }
 0x1a2   : > { %v11846_v10 = vadd.f32 %v2698_v57, %v2425_v18  ;;  %v9095_v19 = vpop.f32.mrf.mxu0  ;;  %9278 = vmatmul.mubr.msk.bf16.gmra.mxu0 %vm400_vm3, %v3907_v42  ;;  %v4802_v18 = vrot.slane %v11843_v46, 1  ;;  %v8313_v42 = vcombine.low %v5138_v50, %v4656_v5  ;;  %v11869_v5 = vld [vmem:[%s10117_s11 + $0x18] sm:$0xff]   ;;  %v5150_v50 = vrot.slane %v11843_v46, 2 }
 0x1a3   : > { %v2431_v60 = vadd.f32 %v9095_v19, %v11569_v14  ;;  %v9134_v56 = vpop.f32.mrf.mxu1  ;;  %9281 = vmatprep.mubr.msk.bf16.mxu0 %vm400_vm3, %v3911_v27 }
 0x1a4   : > { %v11853_v38 = vadd.f32 %v9134_v56, %v2428_v61  ;;  %v2318_v13 = vpop.f32.mrf.mxu0  ;;  %v3920_v61 = vsel %vm1112_vm4, %v3910_v1, %v3919_v52  ;;  %v9829_v52 = vld [vmem:[%s10117_s11 + $0x98] sm:$0xff]  }
 0x1a5   : > { %v2429_v62 = vadd.f32 %v2318_v13, %v11578_v55  ;;  %v2701_v31 = vpop.f32.mrf.mxu1  ;;  %v4803_v55 = vsel %vm2115_vm7, %v4801_v8, %v4802_v18  ;;  %v4804_v13 = vrot.slane %v9832_v39, 1  ;;  %v4806_v8 = vrot.slane %v11869_v5, 1 }
 0x1a6   : > { %v11858_v9 = vadd.f32 %v2701_v31, %v2426_v30  ;;  %v9096_v14 = vpop.f32.mrf.mxu0 }
 0x1a7   : > { %v2432_v57 = vadd.f32 %v9096_v14, %v11583_v0  ;;  %v9137_v27 = vpop.f32.mrf.mxu1  ;;  %9320 = vmatmul.mubr.msk.bf16.gmra.mxu1 %vm400_vm3, %v9826_v48  ;;  %v5149_v0 = vrot.slane %v8313_v42, 2 }
 0x1a8   : > { %v11864_v23 = vadd.f32 %v9137_v27, %v2431_v60  ;;  %v2321_v2 = vpop.f32.mrf.mxu0  ;;  %9323 = vmatprep.mubr.msk.bf16.mxu1 %vm400_vm3, %v9828_v59 }
 0x1a9   : > { %v2430_v30 = vadd.f32 %v2321_v2, %v11588_v22  ;;  %v2714_v19 = vpop.f32.mrf.mxu1  ;;  %v5151_v31 = vsel %vm5148_vm8, %v5149_v0, %v5150_v50  ;;  %v11899_v0 = vld [vmem:[%s10117_s11 + $0x28] sm:$0xff]  }
 0x1aa   : > { %v11873_v56 = vadd.f32 %v2714_v19, %v2429_v62  ;;  %v9099_v1 = vpop.f32.mrf.mxu0  ;;  %9282 = vmatmul.mubr.msk.bf16.gmra.mxu0 %vm400_vm3, %v3920_v61  ;;  %v11890_v61 = vld [vmem:[%s10117_s11 + $0x20] sm:$0xff]   ;;  %v4807_v19 = vsel %vm2115_vm7, %v4804_v13, %v4806_v8 }
 0x1ab   : > { %v2435_v60 = vadd.f32 %v9099_v1, %v11599_v7  ;;  %v9138_v48 = vpop.f32.mrf.mxu1  ;;  %9329 = vmatprep.mubr.msk.bf16.mxu0 %vm400_vm3, %v4803_v55 }
 0x1ac   : > { %v11879_v59 = vadd.f32 %v9138_v48, %v2432_v57  ;;  %v2334_v22 = vpop.f32.mrf.mxu0  ;;  %v4805_v57 = vsel %vm2115_vm7, %v4802_v18, %v4804_v13  ;;  %v5154_v18 = vrot.slane %v11869_v5, 2 }
 0x1ad   : > { %v2433_v46 = vadd.f32 %v2334_v22, %v11613_v25  ;;  %v2717_v62 = vpop.f32.mrf.mxu1  ;;  %v5689_v25 = vsel %vm461_vm0, %v11611_v6, 0 }
 0x1ae   : > { %v11884_v42 = vadd.f32 %v2717_v62, %v2430_v30  ;;  %v9100_v7 = vpop.f32.mrf.mxu0  ;;  %v5152_v30 = vrot.slane %v9832_v39, 2 }
 0x1af   : > { %v2436_v14 = vadd.f32 %v9100_v7, %v11619_v63  ;;  %v9141_v27 = vpop.f32.mrf.mxu1  ;;  %9324 = vmatmul.mubr.msk.bf16.gmra.mxu1 %vm400_vm3, %v9829_v52 }
 0x1b0   : > { %v11892_v2 = vadd.f32 %v9141_v27, %v2435_v60  ;;  %v2337_v55 = vpop.f32.mrf.mxu0  ;;  %9371 = vmatprep.mubr.msk.bf16.mxu1 %vm400_vm3, %v5151_v31  ;;  %v11906_v60 = vld [vmem:[%s13230_s1 + $0x1c] sm:$0x3]  ;;  %v5153_v22 = vsel %vm5148_vm8, %v5150_v50, %v5152_v30  ;;  %v5927_v31 = vsel %vm461_vm0, %v11632_v49, 0  ;;  %v5155_v7 = vsel %vm5148_vm8, %v5152_v30, %v5154_v18  ;;  %v11929_v50 = vld [vmem:[%s13230_s1 + $0x1e] sm:$0x3] }
 0x1b1   : > { %v2434_v63 = vadd.f32 %v2337_v55, %v11627_v28  ;;  %v2730_v1 = vpop.f32.mrf.mxu1  ;;  %v4808_v28 = vrot.slane %v11890_v61, 1 }
 0x1b2   : > { %v11908_v48 = vadd.f32 %v2730_v1, %v2433_v46  ;;  %v9103_v6 = vpop.f32.mrf.mxu0  ;;  %9330 = vmatmul.mubr.msk.bf16.vlgmr.msra.gmra.mxu0 %vm400_vm3, %v4805_v57  ;;  %v4810_v46 = vrot.slane %v11899_v0, 1  ;;  %v11941_v1 = vld [vmem:[%s10117_s11 + $0x38] sm:$0xff]  }
 0x1b3   : > { %v2439_v39 = vadd.f32 %v9103_v6, %v11641_v32  ;;  %v9142_v52 = vpop.f32.mrf.mxu1  ;;  %9412 = vmatpush3.bf16.msra.mxu0 %v5689_v25  ;;  %9333 = vmatprep.mubr.msk.bf16.mxu0 %vm400_vm3, %v4807_v19  ;;  %v9837_v25 = vld [vmem:[%s10117_s11 + $0x30] sm:$0xff]   ;;  %v5156_v19 = vrot.slane %v11890_v61, 2 }
 0x1b4   : > { %v11914_v13 = vadd.f32 %v9142_v52, %v2436_v14  ;;  %v2350_v5 = vpop.f32.mrf.mxu0  ;;  %9677 = vmatprep.subr.msk.bf16.mxu0 %vm461_vm0, %v11906_v60  ;;  %v5158_v52 = vrot.slane %v11899_v0, 2 }
 0x1b5   : > { %v2437_v62 = vadd.f32 %v2350_v5, %v11652_v4  ;;  %v2733_v32 = vpop.f32.mrf.mxu1  ;;  %v4809_v4 = vsel %vm2115_vm7, %v4806_v8, %v4808_v28  ;;  %v5157_v0 = vsel %vm5148_vm8, %v5154_v18, %v5156_v19 }
 0x1b6   : > { %v11924_v14 = vadd.f32 %v2733_v32, %v2434_v63  ;;  %v9104_v27 = vpop.f32.mrf.mxu0  ;;  %v4811_v63 = vsel %vm2115_vm7, %v4808_v28, %v4810_v46  ;;  %v4812_v28 = vrot.slane %v9837_v25, 1  ;;  %v4814_v32 = vrot.slane %v11941_v1, 1 }
 0x1b7   : > { %v2440_v57 = vadd.f32 %v9104_v27, %v11658_v17  ;;  %v9145_v55 = vpop.f32.mrf.mxu1  ;;  %9372 = vmatmul.mubr.msk.bf16.vlgmr.msra.gmra.mxu1 %vm400_vm3, %v5153_v22 }
 0x1b8   : > { %v11935_v49 = vadd.f32 %v9145_v55, %v2439_v39  ;;  %9454 = vmatpush3.bf16.msra.mxu1 %v5927_v31  ;;  %v2353_v30 = vpop.f32.mrf.mxu0  ;;  %9375 = vmatprep.mubr.msk.bf16.mxu1 %vm400_vm3, %v5155_v7  ;;  %v5159_v7 = vsel %vm5148_vm8, %v5156_v19, %v5158_v52  ;;  %v11969_v19 = vld [vmem:[%s10117_s11 + $0x48] sm:$0xff]  }
 0x1b9   : > { %v2438_v17 = vadd.f32 %v2353_v30, %v11662_v45  ;;  %v2746_v6 = vpop.f32.mrf.mxu1  ;;  %9678 = vmatprep.subr.msk.bf16.mxu1 %vm461_vm0, %v11929_v50  ;;  %v9839_v30 = vld [vmem:[%s10117_s11 + $0x40] sm:$0xff]  }
 0x1ba   : > { %v11947_v8 = vadd.f32 %v2746_v6, %v2437_v62  ;;  %v9107_v39 = vpop.f32.mrf.mxu0  ;;  %9334 = vmatmul.mubr.msk.bf16.gmra.mxu0 %vm400_vm3, %v4809_v4  ;;  %v4815_v6 = vsel %vm2115_vm7, %v4812_v28, %v4814_v32 }
 0x1bb   : > { %v2443_v5 = vadd.f32 %v9107_v39, %v11671_v47  ;;  %v9146_v61 = vpop.f32.mrf.mxu1  ;;  %9337 = vmatprep.mubr.msk.bf16.mxu0 %vm400_vm3, %v4811_v63 }
 0x1bc   : > { %v11952_v22 = vadd.f32 %v9146_v61, %v2440_v57  ;;  %v2366_v45 = vpop.f32.mrf.mxu0  ;;  %v4813_v57 = vsel %vm2115_vm7, %v4810_v46, %v4812_v28 }
 0x1bd   : > { %v2441_v62 = vadd.f32 %v2366_v45, %v11680_v29  ;;  %v2749_v31 = vpop.f32.mrf.mxu1  ;;  %v5160_v29 = vrot.slane %v9837_v25, 2  ;;  %v4816_v25 = vrot.slane %v9839_v30, 1 }
 0x1be   : > { %v11958_v27 = vadd.f32 %v2749_v31, %v2438_v17  ;;  %v9108_v47 = vpop.f32.mrf.mxu0  ;;  %v4818_v31 = vrot.slane %v11969_v19, 1 }
 0x1bf   : > { %v2444_v55 = vadd.f32 %v9108_v47, %v11686_v35  ;;  %v9149_v4 = vpop.f32.mrf.mxu1  ;;  %9376 = vmatmul.mubr.msk.bf16.gmra.mxu1 %vm400_vm3, %v5157_v0  ;;  %v5162_v35 = vrot.slane %v11941_v1, 2  ;;  %v13466_v1 = vld [vmem:[#allocation25_spill] sm:$0xff] }
 0x1c0   : > { %v11964_v18 = vadd.f32 %v9149_v4, %v2443_v5  ;;  %v2369_v63 = vpop.f32.mrf.mxu0  ;;  %9379 = vmatprep.mubr.msk.bf16.mxu1 %vm400_vm3, %v5159_v7 }
 0x1c1   : > { %v2442_v17 = vadd.f32 %v2369_v63, %v11690_v12  ;;  %v2762_v39 = vpop.f32.mrf.mxu1  ;;  %v5161_v12 = vsel %vm5148_vm8, %v5158_v52, %v5160_v29  ;;  %v5163_v47 = vsel %vm5148_vm8, %v5160_v29, %v5162_v35  ;;  %v11995_v29 = vld [vmem:[%s10117_s11 + $0x58] sm:$0xff]  }
 0x1c2   : > { %v11973_v61 = vadd.f32 %v2762_v39, %v2441_v62  ;;  %v9111_v45 = vpop.f32.mrf.mxu0  ;;  %9338 = vmatmul.mubr.msk.bf16.gmra.mxu0 %vm400_vm3, %v4813_v57 }
 0x1c3   : > { %v2447_v46 = vadd.f32 %v9111_v45, %v11699_v3  ;;  %v9150_v5 = vpop.f32.mrf.mxu1  ;;  %9341 = vmatprep.mubr.msk.bf16.mxu0 %vm400_vm3, %v4815_v6  ;;  %v9841_v6 = vld [vmem:[%s10117_s11 + $0x50] sm:$0xff]   ;;  %v5164_v45 = vrot.slane %v9839_v30, 2 }
 0x1c4   : > { %v11978_v28 = vadd.f32 %v9150_v5, %v2444_v55  ;;  %v2382_v0 = vpop.f32.mrf.mxu0  ;;  %v4817_v55 = vsel %vm2115_vm7, %v4814_v32, %v4816_v25  ;;  %v4819_v5 = vsel %vm2115_vm7, %v4816_v25, %v4818_v31  ;;  %v4820_v30 = vrot.slane %v9841_v6, 1 }
 0x1c5   : > { %v2445_v62 = vadd.f32 %v2382_v0, %v13466_v1  ;;  %v2765_v7 = vpop.f32.mrf.mxu1 }
 0x1c6   : > { %v11984_v4 = vadd.f32 %v2765_v7, %v2442_v17  ;;  %v9112_v3 = vpop.f32.mrf.mxu0 }
 0x1c7   : > { %v2448_v57 = vadd.f32 %v9112_v3, %v11714_v41  ;;  %v9153_v63 = vpop.f32.mrf.mxu1  ;;  %9380 = vmatmul.mubr.msk.bf16.gmra.mxu1 %vm400_vm3, %v5161_v12  ;;  %v5166_v41 = vrot.slane %v11969_v19, 2 }
 0x1c8   : > { %v11990_v52 = vadd.f32 %v9153_v63, %v2447_v46  ;;  %v2385_v39 = vpop.f32.mrf.mxu0  ;;  %9383 = vmatprep.mubr.msk.bf16.mxu1 %vm400_vm3, %v5163_v47  ;;  %v4822_v47 = vrot.slane %v11995_v29, 1 }
 0x1c9   : > { %v2446_v17 = vadd.f32 %v2385_v39, %v11718_v33  ;;  %v2778_v0 = vpop.f32.mrf.mxu1  ;;  %v5165_v33 = vsel %vm5148_vm8, %v5162_v35, %v5164_v45  ;;  %v5167_v3 = vsel %vm5148_vm8, %v5164_v45, %v5166_v41  ;;  %v12021_v45 = vld [vmem:[%s10117_s11 + $0x68] sm:$0xff]  }
 0x1ca   : > { %v11999_v1 = vadd.f32 %v2778_v0, %v2445_v62  ;;  %v9115_v12 = vpop.f32.mrf.mxu0  ;;  %9342 = vmatmul.mubr.msk.bf16.gmra.mxu0 %vm400_vm3, %v4817_v55 }
 0x1cb   : > { %v2451_v32 = vadd.f32 %v9115_v12, %v11727_v51  ;;  %v9154_v46 = vpop.f32.mrf.mxu1  ;;  %9345 = vmatprep.mubr.msk.bf16.mxu0 %vm400_vm3, %v4819_v5  ;;  %v9843_v5 = vld [vmem:[%s10117_s11 + $0x60] sm:$0xff]   ;;  %v4823_v12 = vsel %vm2115_vm7, %v4820_v30, %v4822_v47 }
 0x1cc   : > { %v12004_v25 = vadd.f32 %v9154_v46, %v2448_v57  ;;  %v2398_v7 = vpop.f32.mrf.mxu0  ;;  %v4821_v57 = vsel %vm2115_vm7, %v4818_v31, %v4820_v30 }
 0x1cd   : > { %v2449_v19 = vadd.f32 %v2398_v7, %v11736_v58  ;;  %v2781_v62 = vpop.f32.mrf.mxu1  ;;  %v5168_v58 = vrot.slane %v9841_v6, 2  ;;  %v4824_v6 = vrot.slane %v9843_v5, 1 }
 0x1ce   : > { %v12010_v63 = vadd.f32 %v2781_v62, %v2446_v17  ;;  %v9116_v51 = vpop.f32.mrf.mxu0 }
 0x1cf   : > { %v2452_v55 = vadd.f32 %v9116_v51, %v11742_v43  ;;  %v9157_v39 = vpop.f32.mrf.mxu1  ;;  %9384 = vmatmul.mubr.msk.bf16.gmra.mxu1 %vm400_vm3, %v5165_v33  ;;  %v5170_v43 = vrot.slane %v11995_v29, 2 }
 0x1d0   : > { %v12016_v35 = vadd.f32 %v9157_v39, %v2451_v32  ;;  %v2401_v0 = vpop.f32.mrf.mxu0  ;;  %9387 = vmatprep.mubr.msk.bf16.mxu1 %vm400_vm3, %v5167_v3  ;;  %v4826_v3 = vrot.slane %v12021_v45, 1 }
 0x1d1   : > { %v2450_v17 = vadd.f32 %v2401_v0, %v11746_v53  ;;  %v2794_v46 = vpop.f32.mrf.mxu1  ;;  %v5169_v53 = vsel %vm5148_vm8, %v5166_v41, %v5168_v58  ;;  %v5171_v51 = vsel %vm5148_vm8, %v5168_v58, %v5170_v43  ;;  %v12047_v58 = vld [vmem:[%s10117_s11 + $0x78] sm:$0xff]  }
 0x1d2   : > { %v12025_v7 = vadd.f32 %v2794_v46, %v2449_v19  ;;  %v9163_v33 = vpop.f32.mrf.mxu0  ;;  %9346 = vmatmul.mubr.msk.bf16.gmra.mxu0 %vm400_vm3, %v4821_v57 }
 0x1d3   : > { %v9158_v31 = vpop.f32.mrf.mxu1  ;;  %v3441_v32 = vadd.f32 %v9163_v33, %v11755_v16  ;;  %9349 = vmatprep.mubr.msk.bf16.mxu0 %vm400_vm3, %v4823_v12  ;;  %v9845_v12 = vld [vmem:[%s10117_s11 + $0x70] sm:$0xff]   ;;  %v5172_v33 = vrot.slane %v9843_v5, 2 }
 0x1d4   : > { %v12030_v30 = vadd.f32 %v9158_v31, %v2452_v55  ;;  %v3280_v62 = vpop.f32.mrf.mxu0  ;;  %v4825_v55 = vsel %vm2115_vm7, %v4822_v47, %v4824_v6  ;;  %v4828_v5 = vrot.slane %v9845_v12, 1 }
 0x1d5   : > { %v2797_v29 = vpop.f32.mrf.mxu1  ;;  %v3439_v19 = vadd.f32 %v3280_v62, %v11764_v21  ;;  %v4827_v21 = vsel %vm2115_vm7, %v4824_v6, %v4826_v3 }
 0x1d6   : > { %v12036_v39 = vadd.f32 %v2797_v29, %v2450_v17  ;;  %v9164_v16 = vpop.f32.mrf.mxu0 }
 0x1d7   : > { %v3442_v57 = vadd.f32 %v9164_v16, %v11770_v11  ;;  %v9205_v0 = vpop.f32.mrf.mxu1  ;;  %9388 = vmatmul.mubr.msk.bf16.gmra.mxu1 %vm400_vm3, %v5169_v53  ;;  %v5174_v11 = vrot.slane %v12021_v45, 2 }
 0x1d8   : > { %v12042_v41 = vadd.f32 %v9205_v0, %v3441_v32  ;;  %v3283_v46 = vpop.f32.mrf.mxu0  ;;  %9391 = vmatprep.mubr.msk.bf16.mxu1 %vm400_vm3, %v5171_v51  ;;  %v4830_v51 = vrot.slane %v12047_v58, 1 }
 0x1d9   : > { %v3440_v17 = vadd.f32 %v3283_v46, %v11774_v34  ;;  %v3623_v31 = vpop.f32.mrf.mxu1  ;;  %v5173_v34 = vsel %vm5148_vm8, %v5170_v43, %v5172_v33  ;;  %v5175_v16 = vsel %vm5148_vm8, %v5172_v33, %v5174_v11  ;;  %v12073_v33 = vld [vmem:[%s10117_s11 + $0x88] sm:$0xff]  }
 0x1da   : > { %v12051_v62 = vadd.f32 %v3623_v31, %v3439_v19  ;;  %v9167_v53 = vpop.f32.mrf.mxu0  ;;  %9350 = vmatmul.mubr.msk.bf16.gmra.mxu0 %vm400_vm3, %v4825_v55 }
 0x1db   : > { %v3445_v47 = vadd.f32 %v9167_v53, %v11783_v24  ;;  %v9206_v32 = vpop.f32.mrf.mxu1  ;;  %9353 = vmatprep.mubr.msk.bf16.mxu0 %vm400_vm3, %v4827_v21  ;;  %v9847_v21 = vld [vmem:[%s10117_s11 + $0x80] sm:$0xff]   ;;  %v4831_v53 = vsel %vm2115_vm7, %v4828_v5, %v4830_v51 }
 0x1dc   : > { %v12056_v6 = vadd.f32 %v9206_v32, %v3442_v57  ;;  %v3296_v29 = vpop.f32.mrf.mxu0  ;;  %v4829_v57 = vsel %vm2115_vm7, %v4826_v3, %v4828_v5 }
 0x1dd   : > { %v3443_v45 = vadd.f32 %v3296_v29, %v11792_v40  ;;  %v3626_v19 = vpop.f32.mrf.mxu1  ;;  %v5176_v40 = vrot.slane %v9845_v12, 2  ;;  %v4832_v12 = vrot.slane %v9847_v21, 1 }
 0x1de   : > { %v12062_v0 = vadd.f32 %v3626_v19, %v3440_v17  ;;  %v9168_v24 = vpop.f32.mrf.mxu0 }
 0x1df   : > { %v3446_v55 = vadd.f32 %v9168_v24, %v11798_v26  ;;  %v9209_v46 = vpop.f32.mrf.mxu1  ;;  %9392 = vmatmul.mubr.msk.bf16.gmra.mxu1 %vm400_vm3, %v5173_v34  ;;  %v5178_v26 = vrot.slane %v12047_v58, 2 }
 0x1e0   : > { %v12068_v43 = vadd.f32 %v9209_v46, %v3445_v47  ;;  %v3299_v31 = vpop.f32.mrf.mxu0  ;;  %9395 = vmatprep.mubr.msk.bf16.mxu1 %vm400_vm3, %v5175_v16  ;;  %v4834_v16 = vrot.slane %v12073_v33, 1 }
 0x1e1   : > { %v3444_v17 = vadd.f32 %v3299_v31, %v11802_v15  ;;  %v3639_v32 = vpop.f32.mrf.mxu1  ;;  %v5177_v15 = vsel %vm5148_vm8, %v5174_v11, %v5176_v40  ;;  %v5179_v24 = vsel %vm5148_vm8, %v5176_v40, %v5178_v26  ;;  %v12099_v40 = vld [vmem:[%s10117_s11 + $0x98] sm:$0xff]  }
 0x1e2   : > { %v12077_v29 = vadd.f32 %v3639_v32, %v3443_v45  ;;  %v9171_v34 = vpop.f32.mrf.mxu0  ;;  %9354 = vmatmul.mubr.msk.bf16.gmra.mxu0 %vm400_vm3, %v4829_v57 }
 0x1e3   : > { %v3449_v3 = vadd.f32 %v9171_v34, %v11812_v20  ;;  %v9210_v47 = vpop.f32.mrf.mxu1  ;;  %9357 = vmatprep.mubr.msk.bf16.mxu0 %vm400_vm3, %v4831_v53  ;;  %v9849_v53 = vld [vmem:[%s10117_s11 + $0x90] sm:$0xff]   ;;  %v4835_v34 = vsel %vm2115_vm7, %v4832_v12, %v4834_v16 }
 0x1e4   : > { %v12082_v5 = vadd.f32 %v9210_v47, %v3446_v55  ;;  %v3312_v19 = vpop.f32.mrf.mxu0  ;;  %v4833_v55 = vsel %vm2115_vm7, %v4830_v51, %v4832_v12 }
 0x1e5   : > { %v3447_v58 = vadd.f32 %v3312_v19, %v11821_v54  ;;  %v3642_v45 = vpop.f32.mrf.mxu1  ;;  %v5180_v54 = vrot.slane %v9847_v21, 2  ;;  %v4836_v21 = vrot.slane %v9849_v53, 1 }
 0x1e6   : > { %v12088_v46 = vadd.f32 %v3642_v45, %v3444_v17  ;;  %v9172_v20 = vpop.f32.mrf.mxu0 }
 0x1e7   : > { %v3450_v57 = vadd.f32 %v9172_v20, %v11827_v36  ;;  %v9213_v31 = vpop.f32.mrf.mxu1  ;;  %9396 = vmatmul.mubr.msk.bf16.gmra.mxu1 %vm400_vm3, %v5177_v15  ;;  %v5182_v36 = vrot.slane %v12073_v33, 2 }
 0x1e8   : > { %v12094_v11 = vadd.f32 %v9213_v31, %v3449_v3  ;;  %v3315_v32 = vpop.f32.mrf.mxu0  ;;  %9399 = vmatprep.mubr.msk.bf16.mxu1 %vm400_vm3, %v5179_v24  ;;  %v4838_v24 = vrot.slane %v12099_v40, 1 }
 0x1e9   : > { %v3448_v17 = vadd.f32 %v3315_v32, %v11833_v37  ;;  %v3655_v47 = vpop.f32.mrf.mxu1  ;;  %v5181_v37 = vsel %vm5148_vm8, %v5178_v26, %v5180_v54  ;;  %v5183_v20 = vsel %vm5148_vm8, %v5180_v54, %v5182_v36 }
 0x1ea   : > { %v12103_v19 = vadd.f32 %v3655_v47, %v3447_v58  ;;  %v9175_v15 = vpop.f32.mrf.mxu0  ;;  %9358 = vmatmul.mubr.msk.bf16.gmra.mxu0 %vm400_vm3, %v4833_v55  ;;  %v4839_v54 = vsel %vm2115_vm7, %v4836_v21, %v4838_v24 }
 0x1eb   : > { %v3453_v51 = vadd.f32 %v9175_v15, %v11838_v44  ;;  %v9214_v3 = vpop.f32.mrf.mxu1  ;;  %9361 = vmatprep.mubr.msk.bf16.mxu0 %vm400_vm3, %v4835_v34  ;;  %v9851_v34 = vld [vmem:[%s10117_s11 + $0xa0] ss:$0 sps:$4 sm:$0x11]  }
 0x1ec   : > { %v12108_v12 = vadd.f32 %v9214_v3, %v3450_v57  ;;  %v3328_v45 = vpop.f32.mrf.mxu0  ;;  %v4837_v57 = vsel %vm2115_vm7, %v4834_v16, %v4836_v21 }
 0x1ed   : > { %v3451_v33 = vadd.f32 %v3328_v45, %v11846_v10  ;;  %v3658_v58 = vpop.f32.mrf.mxu1  ;;  %v5184_v10 = vrot.slane %v9849_v53, 2 }
 0x1ee   : > { %v12114_v31 = vadd.f32 %v3658_v58, %v3448_v17  ;;  %v9176_v44 = vpop.f32.mrf.mxu0  ;;  %v9852_v58 = vld [vmem:[%s10117_s11 + $0xa0] ss:$0 sps:$4 sm:$0x33]  }
 0x1ef   : > { %v3454_v55 = vadd.f32 %v9176_v44, %v11853_v38  ;;  %v9217_v32 = vpop.f32.mrf.mxu1  ;;  %9400 = vmatmul.mubr.msk.bf16.gmra.mxu1 %vm400_vm3, %v5181_v37  ;;  %v5186_v38 = vrot.slane %v12099_v40, 2  ;;  %v4840_v37 = vrot.slane %v9851_v34, 1  ;;  %v9853_v34 = vld [vmem:[%s10117_s11 + $0x14] sm:$0xff]  }
 0x1f0   : > { %v12120_v47 = vadd.f32 %v9217_v32, %v3453_v51  ;;  %v3331_v26 = vpop.f32.mrf.mxu0  ;;  %9403 = vmatprep.mubr.msk.bf16.mxu1 %vm400_vm3, %v5183_v20 }
 0x1f1   : > { %v3452_v17 = vadd.f32 %v3331_v26, %v11858_v9  ;;  %v3671_v15 = vpop.f32.mrf.mxu1  ;;  %v5185_v9 = vsel %vm5148_vm8, %v5182_v36, %v5184_v10  ;;  %v5187_v20 = vsel %vm5148_vm8, %v5184_v10, %v5186_v38 }
 0x1f2   : > { %v12126_v3 = vadd.f32 %v3671_v15, %v3451_v33  ;;  %v9179_v45 = vpop.f32.mrf.mxu0  ;;  %9362 = vmatmul.mubr.msk.bf16.gmra.mxu0 %vm400_vm3, %v4837_v57 }
 0x1f3   : > { %v3457_v16 = vadd.f32 %v9179_v45, %v11864_v23  ;;  %v9218_v51 = vpop.f32.mrf.mxu1  ;;  %9365 = vmatprep.mubr.msk.bf16.mxu0 %vm400_vm3, %v4839_v54 }
 0x1f4   : > { %v12131_v53 = vadd.f32 %v9218_v51, %v3454_v55  ;;  %v3344_v21 = vpop.f32.mrf.mxu0  ;;  %v4841_v55 = vsel %vm2115_vm7, %v4838_v24, %v4840_v37 }
 0x1f5   : > { %v3455_v40 = vadd.f32 %v3344_v21, %v11873_v56  ;;  %v3674_v33 = vpop.f32.mrf.mxu1  ;;  %v5188_v56 = vrot.slane %v9852_v58, 2  ;;  %v9854_v58 = vld [vmem:[%s10117_s11 + $0x1c] sm:$0xff]  }
 0x1f6   : > { %v12137_v44 = vadd.f32 %v3674_v33, %v3452_v17  ;;  %v9180_v32 = vpop.f32.mrf.mxu0 }
 0x1f7   : > { %v3458_v23 = vadd.f32 %v9180_v32, %v11879_v59  ;;  %v9221_v57 = vpop.f32.mrf.mxu1  ;;  %9404 = vmatmul.mubr.msk.bf16.gmra.mxu1 %vm400_vm3, %v5185_v9  ;;  %v5189_v51 = vsel %vm5148_vm8, %v5186_v38, %v5188_v56  ;;  %v13467_v38 = vld [vmem:[#allocation11_spill] sm:$0xff] }
 0x1f8   : > { %v12143_v26 = vadd.f32 %v9221_v57, %v3457_v16  ;;  %v3347_v36 = vpop.f32.mrf.mxu0  ;;  %9407 = vmatprep.mubr.msk.bf16.mxu1 %vm400_vm3, %v5187_v20 }
 0x1f9   : > { %v3456_v10 = vadd.f32 %v3347_v36, %v11884_v42  ;;  %v3687_v54 = vpop.f32.mrf.mxu1 }
 0x1fa   : > { %v12147_v17 = vadd.f32 %v3687_v54, %v3455_v40  ;;  %v9183_v15 = vpop.f32.mrf.mxu0  ;;  %9366 = vmatmul.mubr.msk.bf16.gmra.mxu0 %vm400_vm3, %v4841_v55 }
 0x1fb   : > { %v3461_v59 = vadd.f32 %v9183_v15, %v11892_v2  ;;  %v9222_v24 = vpop.f32.mrf.mxu1  ;;  %9413 = vmatprep.mubr.msk.bf16.mxu0 %vm400_vm3, %v9853_v34  ;;  %v9855_v2 = vld [vmem:[%s10117_s11 + $0x24] sm:$0xff]   ;;  %v6708_v15 = vsel %vm461_vm0, %v11929_v50, 0 }
 0x1fc   : > { %v12152_v45 = vadd.f32 %v9222_v24, %v3458_v23  ;;  %v3360_v16 = vpop.f32.mrf.mxu0  ;;  %v6270_v23 = vsel %vm461_vm0, %v11906_v60, 0  ;;  %v9856_v24 = vld [vmem:[%s10117_s11 + $0x2c] sm:$0xff]  }
 0x1fd   : > { %v3459_v37 = vadd.f32 %v3360_v16, %v11908_v48  ;;  %v3690_v42 = vpop.f32.mrf.mxu1  ;;  %v12192_v16 = vld [vmem:[%s13230_s1 + $0x22] sm:$0x3] }
 0x1fe   : > { %v12156_v21 = vadd.f32 %v3690_v42, %v3456_v10  ;;  %v9184_v9 = vpop.f32.mrf.mxu0  ;;  %v13468_v42 = vld [vmem:[#allocation12_spill] sm:$0xff] }
 0x1ff   : > { %v3462_v40 = vadd.f32 %v9184_v9, %v11914_v13  ;;  %v9225_v33 = vpop.f32.mrf.mxu1  ;;  %9408 = vmatmul.mubr.msk.bf16.gmra.mxu1 %vm400_vm3, %v5189_v51  ;;  %v12172_v13 = vld [vmem:[%s13230_s1 + $0x20] sm:$0x3] }
 0x200   : > { %v12162_v20 = vadd.f32 %v9225_v33, %v3461_v59  ;;  %v3363_v32 = vpop.f32.mrf.mxu0  ;;  %9455 = vmatprep.mubr.msk.bf16.mxu1 %vm400_vm3, %v13467_v38 }
 0x201   : > { %v3460_v48 = vadd.f32 %v3363_v32, %v11924_v14  ;;  %v3703_v57 = vpop.f32.mrf.mxu1 }
 0x202   : > { %v12174_v55 = vadd.f32 %v3703_v57, %v3459_v37  ;;  %v9187_v34 = vpop.f32.mrf.mxu0  ;;  %9414 = vmatmul.mubr.msk.bf16.vlgmr.msra.gmra.mxu0 %vm400_vm3, %v9854_v58  ;;  %v13469_v58 = vld [vmem:[#allocation13_spill] sm:$0xff] }
 0x203   : > { %v3465_v36 = vadd.f32 %v9187_v34, %v11935_v49  ;;  %v9226_v60 = vpop.f32.mrf.mxu1  ;;  %9496 = vmatpush3.bf16.msra.mxu0 %v6270_v23  ;;  %9417 = vmatprep.mubr.msk.bf16.mxu0 %vm400_vm3, %v9855_v2 }
 0x204   : > { %v12179_v14 = vadd.f32 %v9226_v60, %v3462_v40  ;;  %v3376_v56 = vpop.f32.mrf.mxu0  ;;  %9679 = vmatprep.subr.msk.bf16.mxu0 %vm461_vm0, %v12172_v13  ;;  %v9858_v60 = vld [vmem:[%s10117_s11 + $0x3c] sm:$0xff]  }
 0x205   : > { %v3463_v10 = vadd.f32 %v3376_v56, %v11947_v8  ;;  %v3706_v54 = vpop.f32.mrf.mxu1  ;;  %v9857_v8 = vld [vmem:[%s10117_s11 + $0x34] sm:$0xff]  }
 0x206   : > { %v12186_v59 = vadd.f32 %v3706_v54, %v3460_v48  ;;  %v9188_v49 = vpop.f32.mrf.mxu0  ;;  %v13470_v54 = vld [vmem:[#allocation14_spill] sm:$0xff] }
 0x207   : > { %v3466_v51 = vadd.f32 %v9188_v49, %v11952_v22  ;;  %v9229_v37 = vpop.f32.mrf.mxu1  ;;  %9456 = vmatmul.mubr.msk.bf16.vlgmr.msra.gmra.mxu1 %vm400_vm3, %v13468_v42 }
 0x208   : > { %v12198_v9 = vadd.f32 %v9229_v37, %v3465_v36  ;;  %9538 = vmatpush3.bf16.msra.mxu1 %v6708_v15  ;;  %v3379_v50 = vpop.f32.mrf.mxu0  ;;  %9459 = vmatprep.mubr.msk.bf16.mxu1 %vm400_vm3, %v13469_v58 }
 0x209   : > { %v3464_v40 = vadd.f32 %v3379_v50, %v11958_v27  ;;  %v3719_v33 = vpop.f32.mrf.mxu1  ;;  %9680 = vmatprep.subr.msk.bf16.mxu1 %vm461_vm0, %v12192_v16 }
 0x20a   : > { %v12205_v22 = vadd.f32 %v3719_v33, %v3463_v10  ;;  %v9191_v2 = vpop.f32.mrf.mxu0  ;;  %9418 = vmatmul.mubr.msk.bf16.gmra.mxu0 %vm400_vm3, %v9856_v24  ;;  %v13471_v24 = vld [vmem:[#allocation15_spill] sm:$0xff] }
 0x20b   : > { %v3469_v32 = vadd.f32 %v9191_v2, %v11964_v18  ;;  %v9230_v23 = vpop.f32.mrf.mxu1  ;;  %9421 = vmatprep.mubr.msk.bf16.mxu0 %vm400_vm3, %v9857_v8  ;;  %v9859_v18 = vld [vmem:[%s10117_s11 + $0x44] sm:$0xff]  }
 0x20c   : > { %v12210_v38 = vadd.f32 %v9230_v23, %v3466_v51  ;;  %v3392_v48 = vpop.f32.mrf.mxu0 }
 0x20d   : > { %v3467_v27 = vadd.f32 %v3392_v48, %v11973_v61  ;;  %v3722_v57 = vpop.f32.mrf.mxu1 }
 0x20e   : > { %v12213_v34 = vadd.f32 %v3722_v57, %v3464_v40  ;;  %v9192_v36 = vpop.f32.mrf.mxu0 }
 0x20f   : > { %v3470_v56 = vadd.f32 %v9192_v36, %v11978_v28  ;;  %v9233_v10 = vpop.f32.mrf.mxu1  ;;  %9460 = vmatmul.mubr.msk.bf16.gmra.mxu1 %vm400_vm3, %v13470_v54 }
 0x210   : > { %v12220_v15 = vadd.f32 %v9233_v10, %v3469_v32  ;;  %v3395_v49 = vpop.f32.mrf.mxu0  ;;  %9463 = vmatprep.mubr.msk.bf16.mxu1 %vm400_vm3, %v13471_v24  ;;  %v9860_v32 = vld [vmem:[%s10117_s11 + $0x4c] sm:$0xff]  }
 0x211   : > { %v3468_v61 = vadd.f32 %v3395_v49, %v11984_v4  ;;  %v3735_v51 = vpop.f32.mrf.mxu1 }
 0x212   : > { %v12225_v37 = vadd.f32 %v3735_v51, %v3467_v27  ;;  %v9195_v42 = vpop.f32.mrf.mxu0  ;;  %9422 = vmatmul.mubr.msk.bf16.gmra.mxu0 %vm400_vm3, %v9858_v60  ;;  %v13472_v27 = vld [vmem:[#allocation16_spill] sm:$0xff]  ;;  %v13473_v60 = vld [vmem:[#allocation17_spill] sm:$0xff] }
 0x213   : > { %v3473_v28 = vadd.f32 %v9195_v42, %v11990_v52  ;;  %v9234_v8 = vpop.f32.mrf.mxu1  ;;  %9425 = vmatprep.mubr.msk.bf16.mxu0 %vm400_vm3, %v9859_v18  ;;  %v9861_v52 = vld [vmem:[%s10117_s11 + $0x54] sm:$0xff]  }
 0x214   : > { %v12230_v50 = vadd.f32 %v9234_v8, %v3470_v56  ;;  %v3408_v58 = vpop.f32.mrf.mxu0 }
 0x215   : > { %v3471_v40 = vadd.f32 %v3408_v58, %v11999_v1  ;;  %v3738_v33 = vpop.f32.mrf.mxu1 }
 0x216   : > { %v12233_v2 = vadd.f32 %v3738_v33, %v3468_v61  ;;  %v9196_v4 = vpop.f32.mrf.mxu0 }
 0x217   : > { %v3474_v23 = vadd.f32 %v9196_v4, %v12004_v25  ;;  %v9237_v48 = vpop.f32.mrf.mxu1  ;;  %9464 = vmatmul.mubr.msk.bf16.gmra.mxu1 %vm400_vm3, %v13472_v27 }
 0x218   : > { %v12240_v57 = vadd.f32 %v9237_v48, %v3473_v28  ;;  %v3411_v36 = vpop.f32.mrf.mxu0  ;;  %9467 = vmatprep.mubr.msk.bf16.mxu1 %vm400_vm3, %v13473_v60  ;;  %v9862_v28 = vld [vmem:[%s10117_s11 + $0x5c] sm:$0xff]  }
 0x219   : > { %v3472_v1 = vadd.f32 %v3411_v36, %v12010_v63  ;;  %v3751_v56 = vpop.f32.mrf.mxu1 }
 0x21a   : > { %v12245_v10 = vadd.f32 %v3751_v56, %v3471_v40  ;;  %v9199_v54 = vpop.f32.mrf.mxu0  ;;  %9426 = vmatmul.mubr.msk.bf16.gmra.mxu0 %vm400_vm3, %v9860_v32  ;;  %v13474_v40 = vld [vmem:[#allocation18_spill] sm:$0xff]  ;;  %v13475_v32 = vld [vmem:[#allocation19_spill] sm:$0xff] }
 0x21b   : > { %v3477_v25 = vadd.f32 %v9199_v54, %v12016_v35  ;;  %v9238_v18 = vpop.f32.mrf.mxu1  ;;  %9429 = vmatprep.mubr.msk.bf16.mxu0 %vm400_vm3, %v9861_v52  ;;  %v9863_v35 = vld [vmem:[%s10117_s11 + $0x64] sm:$0xff]  }
 0x21c   : > { %v12250_v49 = vadd.f32 %v9238_v18, %v3474_v23  ;;  %v3424_v24 = vpop.f32.mrf.mxu0 }
 0x21d   : > { %v3475_v61 = vadd.f32 %v3424_v24, %v12025_v7  ;;  %v3754_v51 = vpop.f32.mrf.mxu1 }
 0x21e   : > { %v12253_v42 = vadd.f32 %v3754_v51, %v3472_v1  ;;  %v9200_v63 = vpop.f32.mrf.mxu0  ;;  %v9865_v51 = vld [vmem:[%s10117_s11 + $0x74] sm:$0xff]  }
 0x21f   : > { %v3478_v8 = vadd.f32 %v9200_v63, %v12030_v30  ;;  %v9241_v58 = vpop.f32.mrf.mxu1  ;;  %9468 = vmatmul.mubr.msk.bf16.gmra.mxu1 %vm400_vm3, %v13474_v40 }
 0x220   : > { %v12260_v33 = vadd.f32 %v9241_v58, %v3477_v25  ;;  %v3427_v4 = vpop.f32.mrf.mxu0  ;;  %9471 = vmatprep.mubr.msk.bf16.mxu1 %vm400_vm3, %v13475_v32  ;;  %v9864_v25 = vld [vmem:[%s10117_s11 + $0x6c] sm:$0xff]  }
 0x221   : > { %v3476_v7 = vadd.f32 %v3427_v4, %v12036_v39  ;;  %v3767_v23 = vpop.f32.mrf.mxu1 }
 0x222   : > { %v12265_v48 = vadd.f32 %v3767_v23, %v3475_v61  ;;  %v9247_v27 = vpop.f32.mrf.mxu0  ;;  %9430 = vmatmul.mubr.msk.bf16.gmra.mxu0 %vm400_vm3, %v9862_v28  ;;  %v13476_v61 = vld [vmem:[#allocation5_spill] sm:$0xff]  ;;  %v13477_v28 = vld [vmem:[#allocation6_spill] sm:$0xff] }
 0x223   : > { %v9242_v30 = vpop.f32.mrf.mxu1  ;;  %v4179_v52 = vadd.f32 %v9247_v27, %v12042_v41  ;;  %9433 = vmatprep.mubr.msk.bf16.mxu0 %vm400_vm3, %v9863_v35 }
 0x224   : > { %v12270_v36 = vadd.f32 %v9242_v30, %v3478_v8  ;;  %v4018_v60 = vpop.f32.mrf.mxu0  ;;  %v9866_v30 = vld [vmem:[%s10117_s11 + $0x7c] sm:$0xff]  }
 0x225   : > { %v3770_v1 = vpop.f32.mrf.mxu1  ;;  %v4177_v56 = vadd.f32 %v4018_v60, %v12051_v62 }
 0x226   : > { %v12273_v54 = vadd.f32 %v3770_v1, %v3476_v7  ;;  %v9248_v39 = vpop.f32.mrf.mxu0  ;;  %v13478_v1 = vld [vmem:[#allocation7_spill] sm:$0xff] }
 0x227   : > { %v4180_v18 = vadd.f32 %v9248_v39, %v12056_v6  ;;  %v9289_v24 = vpop.f32.mrf.mxu1  ;;  %9472 = vmatmul.mubr.msk.bf16.gmra.mxu1 %vm400_vm3, %v13476_v61 }
 0x228   : > { %v12280_v41 = vadd.f32 %v9289_v24, %v4179_v52  ;;  %v4021_v63 = vpop.f32.mrf.mxu0  ;;  %9475 = vmatprep.mubr.msk.bf16.mxu1 %vm400_vm3, %v13477_v28 }
 0x229   : > { %v4178_v62 = vadd.f32 %v4021_v63, %v12062_v0  ;;  %v4456_v8 = vpop.f32.mrf.mxu1 }
 0x22a   : > { %v12285_v58 = vadd.f32 %v4456_v8, %v4177_v56  ;;  %v9251_v40 = vpop.f32.mrf.mxu0  ;;  %9434 = vmatmul.mubr.msk.bf16.gmra.mxu0 %vm400_vm3, %v9864_v25  ;;  %v13479_v25 = vld [vmem:[#allocation8_spill] sm:$0xff] }
 0x22b   : > { %v4183_v6 = vadd.f32 %v9251_v40, %v12068_v43  ;;  %v9290_v35 = vpop.f32.mrf.mxu1  ;;  %9437 = vmatprep.mubr.msk.bf16.mxu0 %vm400_vm3, %v9865_v51  ;;  %v9867_v43 = vld [vmem:[%s10117_s11 + $0x84] sm:$0xff]  }
 0x22c   : > { %v12290_v4 = vadd.f32 %v9290_v35, %v4180_v18  ;;  %v4034_v32 = vpop.f32.mrf.mxu0 }
 0x22d   : > { %v4181_v7 = vadd.f32 %v4034_v32, %v12077_v29  ;;  %v4459_v23 = vpop.f32.mrf.mxu1 }
 0x22e   : > { %v12293_v27 = vadd.f32 %v4459_v23, %v4178_v62  ;;  %v9252_v0 = vpop.f32.mrf.mxu0 }
 0x22f   : > { %v4184_v52 = vadd.f32 %v9252_v0, %v12082_v5  ;;  %v9293_v60 = vpop.f32.mrf.mxu1  ;;  %9476 = vmatmul.mubr.msk.bf16.gmra.mxu1 %vm400_vm3, %v13478_v1 }
 0x230   : > { %v12300_v56 = vadd.f32 %v9293_v60, %v4183_v6  ;;  %v4037_v39 = vpop.f32.mrf.mxu0  ;;  %9479 = vmatprep.mubr.msk.bf16.mxu1 %vm400_vm3, %v13479_v25  ;;  %v9868_v6 = vld [vmem:[%s10117_s11 + $0x8c] sm:$0xff]  }
 0x231   : > { %v4182_v29 = vadd.f32 %v4037_v39, %v12088_v46  ;;  %v4472_v18 = vpop.f32.mrf.mxu1 }
 0x232   : > { %v12305_v24 = vadd.f32 %v4472_v18, %v4181_v7  ;;  %v9255_v61 = vpop.f32.mrf.mxu0  ;;  %9438 = vmatmul.mubr.msk.bf16.gmra.mxu0 %vm400_vm3, %v9866_v30  ;;  %v13480_v7 = vld [vmem:[#allocation9_spill] sm:$0xff]  ;;  %v13481_v30 = vld [vmem:[#allocation10_spill] sm:$0xff] }
 0x233   : > { %v4187_v5 = vadd.f32 %v9255_v61, %v12094_v11  ;;  %v9294_v51 = vpop.f32.mrf.mxu1  ;;  %9441 = vmatprep.mubr.msk.bf16.mxu0 %vm400_vm3, %v9867_v43  ;;  %v9869_v11 = vld [vmem:[%s10117_s11 + $0x94] sm:$0xff]  }
 0x234   : > { %v12310_v63 = vadd.f32 %v9294_v51, %v4184_v52  ;;  %v4050_v28 = vpop.f32.mrf.mxu0  ;;  %v9870_v51 = vld [vmem:[%s10117_s11 + $0x9c] sm:$0xff]  }
 0x235   : > { %v4185_v62 = vadd.f32 %v4050_v28, %v12103_v19  ;;  %v4475_v8 = vpop.f32.mrf.mxu1 }
 0x236   : > { %v12313_v40 = vadd.f32 %v4475_v8, %v4182_v29  ;;  %v9256_v46 = vpop.f32.mrf.mxu0  ;;  %v13482_v8 = vld [vmem:[#allocation20_spill] sm:$0xff] }
 0x237   : > { %v4188_v35 = vadd.f32 %v9256_v46, %v12108_v12  ;;  %v9297_v32 = vpop.f32.mrf.mxu1  ;;  %9480 = vmatmul.mubr.msk.bf16.gmra.mxu1 %vm400_vm3, %v13480_v7 }
 0x238   : > { %v12320_v23 = vadd.f32 %v9297_v32, %v4187_v5  ;;  %v4053_v0 = vpop.f32.mrf.mxu0  ;;  %9483 = vmatprep.mubr.msk.bf16.mxu1 %vm400_vm3, %v13481_v30 }
 0x239   : > { %v4186_v19 = vadd.f32 %v4053_v0, %v12114_v31  ;;  %v4488_v52 = vpop.f32.mrf.mxu1  ;;  %v6162_v31 = vld [vmem:[%s10117_s11 + $0x14] sm:$0xc] }
 0x23a   : > { %v12325_v60 = vadd.f32 %v4488_v52, %v4185_v62  ;;  %v9259_v1 = vpop.f32.mrf.mxu0  ;;  %9442 = vmatmul.mubr.msk.bf16.gmra.mxu0 %vm400_vm3, %v9868_v6 }
 0x23b   : > { %v4191_v12 = vadd.f32 %v9259_v1, %v12120_v47  ;;  %v9298_v43 = vpop.f32.mrf.mxu1  ;;  %9445 = vmatprep.mubr.msk.bf16.mxu0 %vm400_vm3, %v9869_v11  ;;  %v9871_v47 = vld [vmem:[%s10117_s11 + $0xa4] sm:$0xff]  }
 0x23c   : > { %v12330_v39 = vadd.f32 %v9298_v43, %v4188_v35  ;;  %v4066_v25 = vpop.f32.mrf.mxu0  ;;  %v13483_v35 = vld [vmem:[#allocation21_spill] sm:$0xff] }
 0x23d   : > { %v4189_v29 = vadd.f32 %v4066_v25, %v12126_v3  ;;  %v4491_v18 = vpop.f32.mrf.mxu1  ;;  %v9917_v3 = vld [vmem:[%s10117_s11 + $0x18] sm:$0xf]  ;;  %v9918_v43 = vld [vmem:[%s10117_s11 + $0x1c] sm:$0xff]  }
 0x23e   : > { %v12334_v61 = vadd.f32 %v4491_v18, %v4186_v19  ;;  %v9260_v5 = vpop.f32.mrf.mxu0  ;;  %v8398_v32 = vcombine.low %v6162_v31, %v9917_v3  ;;  %v6169_v25 = vrot.slane %v9918_v43, 2 }
 0x23f   : > { %v4192_v28 = vadd.f32 %v9260_v5, %v12131_v53  ;;  %v9301_v62 = vpop.f32.mrf.mxu1  ;;  %9484 = vmatmul.mubr.msk.bf16.gmra.mxu1 %vm400_vm3, %v13482_v8  ;;  %v9872_v5 = vld [vmem:[%s10117_s11 + $0xac] sm:$0xff]  }
 0x240   : > { %v12341_v46 = vadd.f32 %v9301_v62, %v4191_v12  ;;  %v4069_v6 = vpop.f32.mrf.mxu0  ;;  %9487 = vmatprep.mubr.msk.bf16.mxu1 %vm400_vm3, %v13483_v35  ;;  %v6168_v12 = vrot.slane %v8398_v32, 2  ;;  %v13484_v62 = vld [vmem:[#allocation22_spill] sm:$0xff] }
 0x241   : > { %v4190_v7 = vadd.f32 %v4069_v6, %v12137_v44  ;;  %v4504_v11 = vpop.f32.mrf.mxu1 }
 0x242   : > { %v12347_v0 = vadd.f32 %v4504_v11, %v4189_v29  ;;  %v9263_v53 = vpop.f32.mrf.mxu0  ;;  %9446 = vmatmul.mubr.msk.bf16.gmra.mxu0 %vm400_vm3, %v9870_v51  ;;  %v9919_v11 = vld [vmem:[%s10117_s11 + $0x24] sm:$0xff]  }
 0x243   : > { %v4195_v30 = vadd.f32 %v9263_v53, %v12143_v26  ;;  %v9302_v19 = vpop.f32.mrf.mxu1  ;;  %9449 = vmatprep.mubr.msk.bf16.mxu0 %vm400_vm3, %v9871_v47  ;;  %v13485_v47 = vld [vmem:[#allocation23_spill] sm:$0xff]  ;;  %v6171_v53 = vrot.slane %v9919_v11, 2 }
 0x244   : > { %v12352_v52 = vadd.f32 %v9302_v19, %v4192_v28  ;;  %v4082_v1 = vpop.f32.mrf.mxu0 }
 0x245   : > { %v4193_v44 = vadd.f32 %v4082_v1, %v12147_v17  ;;  %v4507_v18 = vpop.f32.mrf.mxu1  ;;  %v6170_v17 = vsel %vm5148_vm8, %v6168_v12, %v6169_v25  ;;  %v9874_v1 = vld [vmem:[%s10117_s11 + $0x28] sm:$0xff]  }
 0x246   : > { %v12356_v31 = vadd.f32 %v4507_v18, %v4190_v7  ;;  %v9264_v29 = vpop.f32.mrf.mxu0  ;;  %v9920_v12 = vld [vmem:[%s10117_s11 + $0x2c] sm:$0xff]  }
 0x247   : > { %v4196_v51 = vadd.f32 %v9264_v29, %v12152_v45  ;;  %v9305_v26 = vpop.f32.mrf.mxu1  ;;  %9488 = vmatmul.mubr.msk.bf16.gmra.mxu1 %vm400_vm3, %v13484_v62  ;;  %v6173_v43 = vrot.slane %v9920_v12, 2 }
 0x248   : > { %v12362_v28 = vadd.f32 %v9305_v26, %v4195_v30  ;;  %v4085_v8 = vpop.f32.mrf.mxu0  ;;  %9491 = vmatprep.mubr.msk.bf16.mxu1 %vm400_vm3, %v13485_v47  ;;  %v13486_v26 = vld [vmem:[#allocation24_spill] sm:$0xff] }
 0x249   : > { %v4194_v6 = vadd.f32 %v4085_v8, %v12156_v21  ;;  %v4520_v35 = vpop.f32.mrf.mxu1  ;;  %v6174_v47 = vsel %vm5148_vm8, %v6171_v53, %v6173_v43 }
 0x24a   : > { %v12368_v3 = vadd.f32 %v4520_v35, %v4193_v44  ;;  %v9267_v45 = vpop.f32.mrf.mxu0  ;;  %9450 = vmatmul.mubr.msk.bf16.gmra.mxu0 %vm400_vm3, %v9872_v5 }
 0x24b   : > { %v4199_v32 = vadd.f32 %v9267_v45, %v12162_v20  ;;  %v9306_v7 = vpop.f32.mrf.mxu1  ;;  %9497 = vmatprep.mubr.msk.bf16.mxu0 %vm400_vm3, %v6170_v17 }
 0x24c   : > { %v12374_v30 = vadd.f32 %v9306_v7, %v4196_v51  ;;  %v4098_v19 = vpop.f32.mrf.mxu0  ;;  %v6172_v51 = vsel %vm5148_vm8, %v6169_v25, %v6171_v53 }
 0x24d   : > { %v4197_v21 = vadd.f32 %v4098_v19, %v12174_v55  ;;  %v4523_v44 = vpop.f32.mrf.mxu1  ;;  %v7191_v55 = vsel %vm461_vm0, %v12172_v13, 0  ;;  %v9921_v13 = vld [vmem:[%s10117_s11 + $0x34] sm:$0xff]  }
 0x24e   : > { %v12379_v18 = vadd.f32 %v4523_v44, %v4194_v6  ;;  %v9268_v29 = vpop.f32.mrf.mxu0  ;;  %v6175_v7 = vrot.slane %v9921_v13, 2  ;;  %v9876_v19 = vld [vmem:[%s10117_s11 + $0x38] sm:$0xff]   ;;  %v7538_v44 = vsel %vm461_vm0, %v12192_v16, 0  ;;  %v9878_v13 = vld [vmem:[%s10117_s11 + $0x48] sm:$0xff]  }
 0x24f   : > { %v4200_v5 = vadd.f32 %v9268_v29, %v12179_v14  ;;  %v9309_v20 = vpop.f32.mrf.mxu1  ;;  %9492 = vmatmul.mubr.msk.bf16.gmra.mxu1 %vm400_vm3, %v13486_v26 }
 0x250   : > { %v12385_v62 = vadd.f32 %v9309_v20, %v4199_v32  ;;  %v4101_v8 = vpop.f32.mrf.mxu0  ;;  %9539 = vmatprep.mubr.msk.bf16.mxu1 %vm400_vm3, %v9874_v1  ;;  %v9875_v32 = vld [vmem:[%s10117_s11 + $0x30] sm:$0xff]  }
 0x251   : > { %v4198_v14 = vadd.f32 %v4101_v8, %v12186_v59  ;;  %v4536_v17 = vpop.f32.mrf.mxu1  ;;  %v9922_v59 = vld [vmem:[%s10117_s11 + $0x3c] sm:$0xff]  }
 0x252   : > { %v12392_v6 = vadd.f32 %v4536_v17, %v4197_v21  ;;  %v9271_v35 = vpop.f32.mrf.mxu0  ;;  %9498 = vmatmul.mubr.msk.bf16.vlgmr.msra.gmra.mxu0 %vm400_vm3, %v6172_v51  ;;  %v6177_v1 = vrot.slane %v9922_v59, 2  ;;  %v9877_v17 = vld [vmem:[%s10117_s11 + $0x40] sm:$0xff]  }
 0x253   : > { %v4203_v25 = vadd.f32 %v9271_v35, %v12198_v9  ;;  %v9310_v45 = vpop.f32.mrf.mxu1  ;;  %9580 = vmatpush3.bf16.msra.mxu0 %v7191_v55  ;;  %9501 = vmatprep.mubr.msk.bf16.mxu0 %vm400_vm3, %v6174_v47  ;;  %v9923_v35 = vld [vmem:[%s10117_s11 + $0x44] sm:$0xff]  }
 0x254   : > { %v12399_v11 = vadd.f32 %v9310_v45, %v4200_v5  ;;  %v4114_v53 = vpop.f32.mrf.mxu0  ;;  %v6176_v5 = vsel %vm5148_vm8, %v6173_v43, %v6175_v7  ;;  %v6178_v16 = vsel %vm5148_vm8, %v6175_v7, %v6177_v1  ;;  %v9924_v7 = vld [vmem:[%s10117_s11 + $0x4c] sm:$0xff]  }
 0x255   : > { %v4201_v12 = vadd.f32 %v4114_v53, %v12205_v22  ;;  %v4539_v21 = vpop.f32.mrf.mxu1 }
 0x256   : > { %v12406_v9 = vadd.f32 %v4539_v21, %v4198_v14  ;;  %v9272_v29 = vpop.f32.mrf.mxu0 }
 0x257   : > { %v4204_v20 = vadd.f32 %v9272_v29, %v12210_v38  ;;  %v9313_v26 = vpop.f32.mrf.mxu1  ;;  %9540 = vmatmul.mubr.msk.bf16.vlgmr.msra.gmra.mxu1 %vm400_vm3, %v9875_v32 }
 0x258   : > { %v12411_v51 = vadd.f32 %v9313_v26, %v4203_v25  ;;  %9622 = vmatpush3.bf16.msra.mxu1 %v7538_v44  ;;  %v4117_v22 = vpop.f32.mrf.mxu0  ;;  %9543 = vmatprep.mubr.msk.bf16.mxu1 %vm400_vm3, %v9876_v19  ;;  %v6179_v25 = vrot.slane %v9923_v35, 2  ;;  %v9926_v35 = vld [vmem:[%s10117_s11 + $0x5c] sm:$0xff]  }
 0x259   : > { %v4202_v8 = vadd.f32 %v4117_v22, %v12213_v34  ;;  %v4552_v38 = vpop.f32.mrf.mxu1  ;;  %v6181_v34 = vrot.slane %v9924_v7, 2 }
 0x25a   : > { %v12416_v55 = vadd.f32 %v4552_v38, %v4201_v12  ;;  %v9275_v47 = vpop.f32.mrf.mxu0  ;;  %9502 = vmatmul.mubr.msk.bf16.gmra.mxu0 %vm400_vm3, %v6176_v5  ;;  %v6180_v44 = vsel %vm5148_vm8, %v6177_v1, %v6179_v25  ;;  %v9925_v38 = vld [vmem:[%s10117_s11 + $0x54] sm:$0xff]  }
 0x25b   : > { %v4207_v43 = vadd.f32 %v9275_v47, %v12220_v15  ;;  %v9314_v14 = vpop.f32.mrf.mxu1  ;;  %9505 = vmatprep.mubr.msk.bf16.mxu0 %vm400_vm3, %v6178_v16  ;;  %v6183_v47 = vrot.slane %v9925_v38, 2  ;;  %v9928_v38 = vld [vmem:[%s10117_s11 + $0x6c] sm:$0xff]  }
 0x25c   : > { %v12423_v45 = vadd.f32 %v9314_v14, %v4204_v20  ;;  %v4130_v32 = vpop.f32.mrf.mxu0 }
 0x25d   : > { %v4205_v53 = vadd.f32 %v4130_v32, %v12225_v37  ;;  %v4555_v19 = vpop.f32.mrf.mxu1  ;;  %v6182_v37 = vsel %vm5148_vm8, %v6179_v25, %v6181_v34 }
 0x25e   : > { %v12428_v59 = vadd.f32 %v4555_v19, %v4202_v8  ;;  %v9276_v12 = vpop.f32.mrf.mxu0  ;;  %v9879_v8 = vld [vmem:[%s10117_s11 + $0x50] sm:$0xff]   ;;  %v6184_v19 = vsel %vm5148_vm8, %v6181_v34, %v6183_v47 }
 0x25f   : > { %v4208_v15 = vadd.f32 %v9276_v12, %v12230_v50  ;;  %v9317_v21 = vpop.f32.mrf.mxu1  ;;  %9544 = vmatmul.mubr.msk.bf16.gmra.mxu1 %vm400_vm3, %v9877_v17  ;;  %v9880_v17 = vld [vmem:[%s10117_s11 + $0x58] sm:$0xff]  }
 0x260   : > { %v12433_v29 = vadd.f32 %v9317_v21, %v4207_v43  ;;  %v4133_v20 = vpop.f32.mrf.mxu0  ;;  %9547 = vmatprep.mubr.msk.bf16.mxu1 %vm400_vm3, %v9878_v13 }
 0x261   : > { %v4206_v26 = vadd.f32 %v4133_v20, %v12233_v2  ;;  %v4568_v5 = vpop.f32.mrf.mxu1  ;;  %v6185_v2 = vrot.slane %v9926_v35, 2 }
 0x262   : > { %v12438_v22 = vadd.f32 %v4568_v5, %v4205_v53  ;;  %v9279_v50 = vpop.f32.mrf.mxu0  ;;  %9506 = vmatmul.mubr.msk.bf16.gmra.mxu0 %vm400_vm3, %v6180_v44  ;;  %v9927_v5 = vld [vmem:[%s10117_s11 + $0x64] sm:$0xff]  }
 0x263   : > { %v4211_v16 = vadd.f32 %v9279_v50, %v12240_v57  ;;  %v9318_v1 = vpop.f32.mrf.mxu1  ;;  %9509 = vmatprep.mubr.msk.bf16.mxu0 %vm400_vm3, %v6182_v37  ;;  %v6187_v50 = vrot.slane %v9927_v5, 2  ;;  %v9930_v5 = vld [vmem:[%s10117_s11 + $0x7c] sm:$0xff]  }
 0x264   : > { %v12445_v43 = vadd.f32 %v9318_v1, %v4208_v15  ;;  %v4146_v14 = vpop.f32.mrf.mxu0 }
 0x265   : > { %v4209_v25 = vadd.f32 %v4146_v14, %v12245_v10  ;;  %v4571_v32 = vpop.f32.mrf.mxu1  ;;  %v6186_v10 = vsel %vm5148_vm8, %v6183_v47, %v6185_v2 }
 0x266   : > { %v12450_v13 = vadd.f32 %v4571_v32, %v4206_v26  ;;  %v9280_v7 = vpop.f32.mrf.mxu0  ;;  %v9881_v26 = vld [vmem:[%s10117_s11 + $0x60] sm:$0xff]   ;;  %v6188_v32 = vsel %vm5148_vm8, %v6185_v2, %v6187_v50 }
 0x267   : > { %v4212_v57 = vadd.f32 %v9280_v7, %v12250_v49  ;;  %v9321_v53 = vpop.f32.mrf.mxu1  ;;  %9548 = vmatmul.mubr.msk.bf16.gmra.mxu1 %vm400_vm3, %v9879_v8  ;;  %v9882_v8 = vld [vmem:[%s10117_s11 + $0x68] sm:$0xff]  }
 0x268   : > { %v12455_v12 = vadd.f32 %v9321_v53, %v4211_v16  ;;  %v4149_v15 = vpop.f32.mrf.mxu0  ;;  %9551 = vmatprep.mubr.msk.bf16.mxu1 %vm400_vm3, %v9880_v17 }
 0x269   : > { %v4210_v21 = vadd.f32 %v4149_v15, %v12253_v42  ;;  %v4584_v44 = vpop.f32.mrf.mxu1  ;;  %v6189_v42 = vrot.slane %v9928_v38, 2 }
 0x26a   : > { %v12460_v20 = vadd.f32 %v4584_v44, %v4209_v25  ;;  %v9283_v49 = vpop.f32.mrf.mxu0  ;;  %9510 = vmatmul.mubr.msk.bf16.gmra.mxu0 %vm400_vm3, %v6184_v19  ;;  %v9929_v44 = vld [vmem:[%s10117_s11 + $0x74] sm:$0xff]  }
 0x26b   : > { %v4215_v37 = vadd.f32 %v9283_v49, %v12260_v33  ;;  %v9322_v34 = vpop.f32.mrf.mxu1  ;;  %9513 = vmatprep.mubr.msk.bf16.mxu0 %vm400_vm3, %v6186_v10  ;;  %v6191_v49 = vrot.slane %v9929_v44, 2  ;;  %v9932_v44 = vld [vmem:[%s10117_s11 + $0x8c] sm:$0xff]  }
 0x26c   : > { %v12467_v16 = vadd.f32 %v9322_v34, %v4212_v57  ;;  %v4162_v1 = vpop.f32.mrf.mxu0 }
 0x26d   : > { %v4213_v47 = vadd.f32 %v4162_v1, %v12265_v48  ;;  %v4587_v14 = vpop.f32.mrf.mxu1  ;;  %v6190_v48 = vsel %vm5148_vm8, %v6187_v50, %v6189_v42 }
 0x26e   : > { %v12472_v17 = vadd.f32 %v4587_v14, %v4210_v21  ;;  %v9284_v35 = vpop.f32.mrf.mxu0  ;;  %v9883_v21 = vld [vmem:[%s10117_s11 + $0x70] sm:$0xff]   ;;  %v6192_v14 = vsel %vm5148_vm8, %v6189_v42, %v6191_v49 }
 0x26f   : > { %v4216_v33 = vadd.f32 %v9284_v35, %v12270_v36  ;;  %v9325_v25 = vpop.f32.mrf.mxu1  ;;  %9552 = vmatmul.mubr.msk.bf16.gmra.mxu1 %vm400_vm3, %v9881_v26  ;;  %v9884_v26 = vld [vmem:[%s10117_s11 + $0x78] sm:$0xff]  }
 0x270   : > { %v12477_v7 = vadd.f32 %v9325_v25, %v4215_v37  ;;  %v4165_v57 = vpop.f32.mrf.mxu0  ;;  %9555 = vmatprep.mubr.msk.bf16.mxu1 %vm400_vm3, %v9882_v8 }
 0x271   : > { %v4214_v53 = vadd.f32 %v4165_v57, %v12273_v54  ;;  %v4600_v19 = vpop.f32.mrf.mxu1  ;;  %v6193_v54 = vrot.slane %v9930_v5, 2 }
 0x272   : > { %v12482_v15 = vadd.f32 %v4600_v19, %v4213_v47  ;;  %v9331_v36 = vpop.f32.mrf.mxu0  ;;  %9514 = vmatmul.mubr.msk.bf16.gmra.mxu0 %vm400_vm3, %v6188_v32  ;;  %v9931_v19 = vld [vmem:[%s10117_s11 + $0x84] sm:$0xff]  }
 0x273   : > { %v9326_v10 = vpop.f32.mrf.mxu1  ;;  %v5100_v2 = vadd.f32 %v9331_v36, %v12280_v41  ;;  %9517 = vmatprep.mubr.msk.bf16.mxu0 %vm400_vm3, %v6190_v48  ;;  %v6195_v36 = vrot.slane %v9931_v19, 2  ;;  %v9934_v19 = vld [vmem:[%s10117_s11 + $0x9c] sm:$0xff]  }
 0x274   : > { %v12489_v37 = vadd.f32 %v9326_v10, %v4216_v33  ;;  %v4939_v34 = vpop.f32.mrf.mxu0 }
 0x275   : > { %v4603_v50 = vpop.f32.mrf.mxu1  ;;  %v5098_v1 = vadd.f32 %v4939_v34, %v12285_v58  ;;  %v6194_v58 = vsel %vm5148_vm8, %v6191_v49, %v6193_v54 }
 0x276   : > { %v12494_v8 = vadd.f32 %v4603_v50, %v4214_v53  ;;  %v9332_v38 = vpop.f32.mrf.mxu0  ;;  %v9885_v53 = vld [vmem:[%s10117_s11 + $0x80] sm:$0xff]  }
 0x277   : > { %v5101_v41 = vadd.f32 %v9332_v38, %v12290_v4  ;;  %v9373_v47 = vpop.f32.mrf.mxu1  ;;  %9556 = vmatmul.mubr.msk.bf16.gmra.mxu1 %vm400_vm3, %v9883_v21  ;;  %v9886_v21 = vld [vmem:[%s10117_s11 + $0x88] sm:$0xff]  }
 0x278   : > { %v12499_v35 = vadd.f32 %v9373_v47, %v5100_v2  ;;  %v4942_v33 = vpop.f32.mrf.mxu0  ;;  %9559 = vmatprep.mubr.msk.bf16.mxu1 %vm400_vm3, %v9884_v26 }
 0x279   : > { %v5099_v25 = vadd.f32 %v4942_v33, %v12293_v27  ;;  %v5287_v32 = vpop.f32.mrf.mxu1  ;;  %v6197_v27 = vrot.slane %v9932_v44, 2 }
 0x27a   : > { %v12504_v57 = vadd.f32 %v5287_v32, %v5098_v1  ;;  %v9335_v4 = vpop.f32.mrf.mxu0  ;;  %9518 = vmatmul.mubr.msk.bf16.gmra.mxu0 %vm400_vm3, %v6192_v14  ;;  %v6196_v1 = vsel %vm5148_vm8, %v6193_v54, %v6195_v36  ;;  %v9933_v32 = vld [vmem:[%s10117_s11 + $0x94] sm:$0xff]  }
 0x27b   : > { %v5104_v48 = vadd.f32 %v9335_v4, %v12300_v56  ;;  %v9374_v42 = vpop.f32.mrf.mxu1  ;;  %9521 = vmatprep.mubr.msk.bf16.mxu0 %vm400_vm3, %v6194_v58  ;;  %v6199_v4 = vrot.slane %v9933_v32, 2 }
 0x27c   : > { %v12511_v10 = vadd.f32 %v9374_v42, %v5101_v41  ;;  %v4955_v2 = vpop.f32.mrf.mxu0 }
 0x27d   : > { %v5102_v49 = vadd.f32 %v4955_v2, %v12305_v24  ;;  %v5290_v34 = vpop.f32.mrf.mxu1  ;;  %v6198_v24 = vsel %vm5148_vm8, %v6195_v36, %v6197_v27 }
 0x27e   : > { %v12516_v26 = vadd.f32 %v5290_v34, %v5099_v25  ;;  %v9336_v5 = vpop.f32.mrf.mxu0  ;;  %v9887_v25 = vld [vmem:[%s10117_s11 + $0x90] sm:$0xff]   ;;  %v6200_v34 = vsel %vm5148_vm8, %v6197_v27, %v6199_v4 }
 0x27f   : > { %v5105_v56 = vadd.f32 %v9336_v5, %v12310_v63  ;;  %v9377_v50 = vpop.f32.mrf.mxu1  ;;  %9560 = vmatmul.mubr.msk.bf16.gmra.mxu1 %vm400_vm3, %v9885_v53  ;;  %v9888_v53 = vld [vmem:[%s10117_s11 + $0x98] sm:$0xff]  }
 0x280   : > { %v12521_v38 = vadd.f32 %v9377_v50, %v5104_v48  ;;  %v4958_v41 = vpop.f32.mrf.mxu0  ;;  %9563 = vmatprep.mubr.msk.bf16.mxu1 %vm400_vm3, %v9886_v21 }
 0x281   : > { %v5103_v47 = vadd.f32 %v4958_v41, %v12313_v40  ;;  %v5303_v14 = vpop.f32.mrf.mxu1  ;;  %v6201_v40 = vrot.slane %v9934_v19, 2  ;;  %v6944_v19 = vld [vmem:[%s10117_s11 + $0x2c] sm:$0xf] }
 0x282   : > { %v12526_v33 = vadd.f32 %v5303_v14, %v5102_v49  ;;  %v9339_v63 = vpop.f32.mrf.mxu0  ;;  %9522 = vmatmul.mubr.msk.bf16.gmra.mxu0 %vm400_vm3, %v6196_v1  ;;  %v9935_v14 = vld [vmem:[%s10117_s11 + $0xa4] sm:$0xff]  }
 0x283   : > { %v5108_v58 = vadd.f32 %v9339_v63, %v12320_v23  ;;  %v9378_v54 = vpop.f32.mrf.mxu1  ;;  %9525 = vmatprep.mubr.msk.bf16.mxu0 %vm400_vm3, %v6198_v24  ;;  %v6203_v63 = vrot.slane %v9935_v14, 2  ;;  %v9937_v14 = vld [vmem:[%s10117_s11 + $0xb4] ss:$0 sps:$4 sm:$0x33]  }
 0x284   : > { %v12533_v48 = vadd.f32 %v9378_v54, %v5105_v56  ;;  %v4971_v42 = vpop.f32.mrf.mxu0 }
 0x285   : > { %v5106_v36 = vadd.f32 %v4971_v42, %v12325_v60  ;;  %v5306_v2 = vpop.f32.mrf.mxu1  ;;  %v6202_v60 = vsel %vm5148_vm8, %v6199_v4, %v6201_v40 }
 0x286   : > { %v12538_v21 = vadd.f32 %v5306_v2, %v5103_v47  ;;  %v9340_v44 = vpop.f32.mrf.mxu0  ;;  %v9889_v47 = vld [vmem:[%s10117_s11 + $0xa0] sm:$0xff]  }
 0x287   : > { %v5109_v23 = vadd.f32 %v9340_v44, %v12330_v39  ;;  %v9381_v49 = vpop.f32.mrf.mxu1  ;;  %9564 = vmatmul.mubr.msk.bf16.gmra.mxu1 %vm400_vm3, %v9887_v25  ;;  %v9936_v25 = vld [vmem:[%s10117_s11 + $0xac] sm:$0xff]  }
 0x288   : > { %v12543_v5 = vadd.f32 %v9381_v49, %v5108_v58  ;;  %v4974_v56 = vpop.f32.mrf.mxu0  ;;  %9567 = vmatprep.mubr.msk.bf16.mxu1 %vm400_vm3, %v9888_v53  ;;  %v6205_v32 = vrot.slane %v9936_v25, 2  ;;  %v6943_v53 = vld [vmem:[%s10117_s11 + $0x28] sm:$0xe] }
 0x289   : > { %v5107_v50 = vadd.f32 %v4974_v56, %v12334_v61  ;;  %v5319_v1 = vpop.f32.mrf.mxu1  ;;  %v9890_v61 = vld [vmem:[%s10117_s11 + $0xa8] sm:$0xff]   ;;  %v8461_v56 = vcombine.low %v6943_v53, %v6944_v19 }
 0x28a   : > { %v12548_v41 = vadd.f32 %v5319_v1, %v5106_v36  ;;  %v9343_v39 = vpop.f32.mrf.mxu0  ;;  %9526 = vmatmul.mubr.msk.bf16.gmra.mxu0 %vm400_vm3, %v6200_v34 }
 0x28b   : > { %v5112_v27 = vadd.f32 %v9343_v39, %v12341_v46  ;;  %v9382_v24 = vpop.f32.mrf.mxu1  ;;  %9529 = vmatprep.mubr.msk.bf16.mxu0 %vm400_vm3, %v6202_v60  ;;  %v12572_v60 = vld [vmem:[%s10117_s11 + $0x30] sm:$0xff]   ;;  %v7089_v25 = vrot.slane %v8461_v56, 1 }
 0x28c   : > { %v12555_v58 = vadd.f32 %v9382_v24, %v5109_v23  ;;  %v4987_v54 = vpop.f32.mrf.mxu0  ;;  %v6204_v23 = vsel %vm5148_vm8, %v6201_v40, %v6203_v63  ;;  %v7426_v40 = vld [vmem:[%s10117_s11 + $0x28] sm:$0xc] }
 0x28d   : > { %v5110_v4 = vadd.f32 %v4987_v54, %v12347_v0  ;;  %v5322_v42 = vpop.f32.mrf.mxu1  ;;  %v6206_v0 = vsel %vm5148_vm8, %v6203_v63, %v6205_v32  ;;  %v6207_v63 = vrot.slane %v9937_v14, 2  ;;  %v9893_v14 = vld [vmem:[%s10117_s11 + $0xc0] sm:$0xff]  }
 0x28e   : > { %v12562_v36 = vadd.f32 %v5322_v42, %v5107_v50  ;;  %v9344_v46 = vpop.f32.mrf.mxu0 }
 0x28f   : > { %v5113_v2 = vadd.f32 %v9344_v46, %v12352_v52  ;;  %v9385_v44 = vpop.f32.mrf.mxu1  ;;  %9568 = vmatmul.mubr.msk.bf16.gmra.mxu1 %vm400_vm3, %v9889_v47  ;;  %v9891_v47 = vld [vmem:[%s10117_s11 + $0xb0] sm:$0xff]   ;;  %v8503_v46 = vcombine.low %v7426_v40, %v6944_v19  ;;  %v12599_v19 = vld [vmem:[%s10117_s11 + $0x40] sm:$0xff]   ;;  %v7437_v40 = vrot.slane %v12572_v60, 2 }
 0x290   : > { %v12567_v49 = vadd.f32 %v9385_v44, %v5112_v27  ;;  %v4990_v34 = vpop.f32.mrf.mxu0  ;;  %9571 = vmatprep.mubr.msk.bf16.mxu1 %vm400_vm3, %v9890_v61 }
 0x291   : > { %v5111_v52 = vadd.f32 %v4990_v34, %v12356_v31  ;;  %v5335_v50 = vpop.f32.mrf.mxu1  ;;  %v9892_v31 = vld [vmem:[%s10117_s11 + $0xb8] sm:$0xff]  }
 0x292   : > { %v12575_v1 = vadd.f32 %v5335_v50, %v5110_v4  ;;  %v9347_v39 = vpop.f32.mrf.mxu0  ;;  %9530 = vmatmul.mubr.msk.bf16.gmra.mxu0 %vm400_vm3, %v6204_v23  ;;  %v7090_v4 = vrot.slane %v12572_v60, 1 }
 0x293   : > { %v5116_v27 = vadd.f32 %v9347_v39, %v12362_v28  ;;  %v9386_v24 = vpop.f32.mrf.mxu1  ;;  %9533 = vmatprep.mubr.msk.bf16.mxu0 %vm400_vm3, %v6206_v0  ;;  %v9896_v0 = vld [vmem:[%s10117_s11 + $0x38] sm:$0xff]  }
 0x294   : > { %v12583_v54 = vadd.f32 %v9386_v24, %v5113_v2  ;;  %v5003_v61 = vpop.f32.mrf.mxu0  ;;  %v6208_v2 = vsel %vm5148_vm8, %v6205_v32, %v6207_v63  ;;  %v7092_v63 = vrot.slane %v9896_v0, 1 }
 0x295   : > { %v5114_v42 = vadd.f32 %v5003_v61, %v12368_v3  ;;  %v5338_v53 = vpop.f32.mrf.mxu1  ;;  %v7091_v3 = vsel %vm2115_vm7, %v7089_v25, %v7090_v4 }
 0x296   : > { %v12588_v28 = vadd.f32 %v5338_v53, %v5111_v52  ;;  %v9348_v44 = vpop.f32.mrf.mxu0 }
 0x297   : > { %v5117_v23 = vadd.f32 %v9348_v44, %v12374_v30  ;;  %v9389_v34 = vpop.f32.mrf.mxu1  ;;  %9572 = vmatmul.mubr.msk.bf16.gmra.mxu1 %vm400_vm3, %v9891_v47  ;;  %v7436_v30 = vrot.slane %v8503_v46, 2 }
 0x298   : > { %v12594_v56 = vadd.f32 %v9389_v34, %v5116_v27  ;;  %v5006_v50 = vpop.f32.mrf.mxu0  ;;  %9575 = vmatprep.mubr.msk.bf16.mxu1 %vm400_vm3, %v9892_v31  ;;  %v7094_v31 = vrot.slane %v12599_v19, 1  ;;  %v9899_v34 = vld [vmem:[%s10117_s11 + $0x48] sm:$0xff]  }
 0x299   : > { %v5115_v52 = vadd.f32 %v5006_v50, %v12379_v18  ;;  %v5351_v39 = vpop.f32.mrf.mxu1 }
 0x29a   : > { %v12603_v24 = vadd.f32 %v5351_v39, %v5114_v42  ;;  %v9351_v32 = vpop.f32.mrf.mxu0  ;;  %9534 = vmatmul.mubr.msk.bf16.gmra.mxu0 %vm400_vm3, %v6208_v2  ;;  %v7438_v42 = vsel %vm5148_vm8, %v7436_v30, %v7437_v40  ;;  %v12625_v39 = vld [vmem:[%s10117_s11 + $0x50] sm:$0xff]  }
 0x29b   : > { %v5120_v27 = vadd.f32 %v9351_v32, %v12385_v62  ;;  %v9390_v47 = vpop.f32.mrf.mxu1  ;;  %9581 = vmatprep.mubr.msk.bf16.mxu0 %vm400_vm3, %v7091_v3  ;;  %v7095_v3 = vsel %vm2115_vm7, %v7092_v63, %v7094_v31 }
 0x29c   : > { %v12609_v61 = vadd.f32 %v9390_v47, %v5117_v23  ;;  %v5019_v18 = vpop.f32.mrf.mxu0  ;;  %v7093_v23 = vsel %vm2115_vm7, %v7090_v4, %v7092_v63 }
 0x29d   : > { %v5118_v60 = vadd.f32 %v5019_v18, %v12392_v6  ;;  %v5354_v25 = vpop.f32.mrf.mxu1  ;;  %v7439_v6 = vrot.slane %v9896_v0, 2  ;;  %v7096_v0 = vrot.slane %v9899_v34, 1  ;;  %v7098_v18 = vrot.slane %v12625_v39, 1 }
 0x29e   : > { %v12614_v53 = vadd.f32 %v5354_v25, %v5115_v52  ;;  %v9352_v62 = vpop.f32.mrf.mxu0 }
 0x29f   : > { %v5121_v46 = vadd.f32 %v9352_v62, %v12399_v11  ;;  %v9393_v44 = vpop.f32.mrf.mxu1  ;;  %9576 = vmatmul.mubr.msk.bf16.gmra.mxu1 %vm400_vm3, %v9893_v14  ;;  %v7441_v11 = vrot.slane %v12599_v19, 2 }
 0x2a0   : > { %v12620_v2 = vadd.f32 %v9393_v44, %v5120_v27  ;;  %v5022_v50 = vpop.f32.mrf.mxu0  ;;  %9623 = vmatprep.mubr.msk.bf16.mxu1 %vm400_vm3, %v7438_v42 }
 0x2a1   : > { %v5119_v52 = vadd.f32 %v5022_v50, %v12406_v9  ;;  %v5367_v30 = vpop.f32.mrf.mxu1  ;;  %v7440_v9 = vsel %vm5148_vm8, %v7437_v40, %v7439_v6  ;;  %v7442_v25 = vsel %vm5148_vm8, %v7439_v6, %v7441_v11  ;;  %v12651_v6 = vld [vmem:[%s10117_s11 + $0x60] sm:$0xff]  }
 0x2a2   : > { %v12629_v32 = vadd.f32 %v5367_v30, %v5118_v60  ;;  %v9355_v47 = vpop.f32.mrf.mxu0  ;;  %9582 = vmatmul.mubr.msk.bf16.vlgmr.msra.gmra.mxu0 %vm400_vm3, %v7093_v23  ;;  %v9901_v23 = vld [vmem:[%s10117_s11 + $0x58] sm:$0xff]  }
 0x2a3   : > { %v5124_v4 = vadd.f32 %v9355_v47, %v12411_v51  ;;  %v9394_v27 = vpop.f32.mrf.mxu1  ;;  %9585 = vmatprep.mubr.msk.bf16.mxu0 %vm400_vm3, %v7095_v3  ;;  %v7099_v3 = vsel %vm2115_vm7, %v7096_v0, %v7098_v18 }
 0x2a4   : > { %v12634_v14 = vadd.f32 %v9394_v27, %v5121_v46  ;;  %v5035_v63 = vpop.f32.mrf.mxu0  ;;  %v7097_v46 = vsel %vm2115_vm7, %v7094_v31, %v7096_v0 }
 0x2a5   : > { %v5122_v19 = vadd.f32 %v5035_v63, %v12416_v55  ;;  %v5370_v60 = vpop.f32.mrf.mxu1  ;;  %v7443_v55 = vrot.slane %v9899_v34, 2  ;;  %v7100_v34 = vrot.slane %v9901_v23, 1 }
 0x2a6   : > { %v12640_v42 = vadd.f32 %v5370_v60, %v5119_v52  ;;  %v9356_v51 = vpop.f32.mrf.mxu0 }
 0x2a7   : > { %v5125_v62 = vadd.f32 %v9356_v51, %v12423_v45  ;;  %v9397_v44 = vpop.f32.mrf.mxu1  ;;  %9624 = vmatmul.mubr.msk.bf16.vlgmr.msra.gmra.mxu1 %vm400_vm3, %v7440_v9  ;;  %v7445_v45 = vrot.slane %v12625_v39, 2  ;;  %v7102_v9 = vrot.slane %v12651_v6, 1 }
 0x2a8   : > { %v12646_v40 = vadd.f32 %v9397_v44, %v5124_v4  ;;  %v5038_v50 = vpop.f32.mrf.mxu0  ;;  %9627 = vmatprep.mubr.msk.bf16.mxu1 %vm400_vm3, %v7442_v25 }
 0x2a9   : > { %v5123_v52 = vadd.f32 %v5038_v50, %v12428_v59  ;;  %v5383_v30 = vpop.f32.mrf.mxu1  ;;  %v7444_v59 = vsel %vm5148_vm8, %v7441_v11, %v7443_v55  ;;  %v7446_v60 = vsel %vm5148_vm8, %v7443_v55, %v7445_v45  ;;  %v12677_v55 = vld [vmem:[%s10117_s11 + $0x70] sm:$0xff]  }
 0x2aa   : > { %v12655_v47 = vadd.f32 %v5383_v30, %v5122_v19  ;;  %v9359_v27 = vpop.f32.mrf.mxu0  ;;  %9586 = vmatmul.mubr.msk.bf16.gmra.mxu0 %vm400_vm3, %v7097_v46  ;;  %v9903_v46 = vld [vmem:[%s10117_s11 + $0x68] sm:$0xff]  }
 0x2ab   : > { %v5128_v31 = vadd.f32 %v9359_v27, %v12433_v29  ;;  %v9398_v4 = vpop.f32.mrf.mxu1  ;;  %9589 = vmatprep.mubr.msk.bf16.mxu0 %vm400_vm3, %v7099_v3  ;;  %v7103_v3 = vsel %vm2115_vm7, %v7100_v34, %v7102_v9 }
 0x2ac   : > { %v12660_v0 = vadd.f32 %v9398_v4, %v5125_v62  ;;  %v5051_v63 = vpop.f32.mrf.mxu0  ;;  %v7101_v62 = vsel %vm2115_vm7, %v7098_v18, %v7100_v34 }
 0x2ad   : > { %v5126_v39 = vadd.f32 %v5051_v63, %v12438_v22  ;;  %v5386_v19 = vpop.f32.mrf.mxu1  ;;  %v7447_v22 = vrot.slane %v9901_v23, 2  ;;  %v7104_v23 = vrot.slane %v9903_v46, 1 }
 0x2ae   : > { %v12666_v25 = vadd.f32 %v5386_v19, %v5123_v52  ;;  %v9360_v29 = vpop.f32.mrf.mxu0 }
 0x2af   : > { %v5129_v51 = vadd.f32 %v9360_v29, %v12445_v43  ;;  %v9401_v44 = vpop.f32.mrf.mxu1  ;;  %9628 = vmatmul.mubr.msk.bf16.gmra.mxu1 %vm400_vm3, %v7444_v59  ;;  %v7449_v43 = vrot.slane %v12651_v6, 2  ;;  %v7106_v59 = vrot.slane %v12677_v55, 1 }
 0x2b0   : > { %v12672_v11 = vadd.f32 %v9401_v44, %v5128_v31  ;;  %v5054_v50 = vpop.f32.mrf.mxu0  ;;  %9631 = vmatprep.mubr.msk.bf16.mxu1 %vm400_vm3, %v7446_v60 }
 0x2b1   : > { %v5127_v52 = vadd.f32 %v5054_v50, %v12450_v13  ;;  %v5399_v30 = vpop.f32.mrf.mxu1  ;;  %v7448_v13 = vsel %vm5148_vm8, %v7445_v45, %v7447_v22  ;;  %v7450_v19 = vsel %vm5148_vm8, %v7447_v22, %v7449_v43  ;;  %v12703_v22 = vld [vmem:[%s10117_s11 + $0x80] sm:$0xff]  }
 0x2b2   : > { %v12681_v27 = vadd.f32 %v5399_v30, %v5126_v39  ;;  %v9363_v4 = vpop.f32.mrf.mxu0  ;;  %9590 = vmatmul.mubr.msk.bf16.gmra.mxu0 %vm400_vm3, %v7101_v62  ;;  %v9905_v62 = vld [vmem:[%s10117_s11 + $0x78] sm:$0xff]  }
 0x2b3   : > { %v5132_v18 = vadd.f32 %v9363_v4, %v12455_v12  ;;  %v9402_v31 = vpop.f32.mrf.mxu1  ;;  %9593 = vmatprep.mubr.msk.bf16.mxu0 %vm400_vm3, %v7103_v3  ;;  %v7107_v3 = vsel %vm2115_vm7, %v7104_v23, %v7106_v59 }
 0x2b4   : > { %v12686_v34 = vadd.f32 %v9402_v31, %v5129_v51  ;;  %v5067_v63 = vpop.f32.mrf.mxu0  ;;  %v7105_v51 = vsel %vm2115_vm7, %v7102_v9, %v7104_v23 }
 0x2b5   : > { %v5130_v6 = vadd.f32 %v5067_v63, %v12460_v20  ;;  %v5402_v39 = vpop.f32.mrf.mxu1  ;;  %v7451_v20 = vrot.slane %v9903_v46, 2  ;;  %v7108_v46 = vrot.slane %v9905_v62, 1 }
 0x2b6   : > { %v12692_v60 = vadd.f32 %v5402_v39, %v5127_v52  ;;  %v9364_v12 = vpop.f32.mrf.mxu0 }
 0x2b7   : > { %v5133_v29 = vadd.f32 %v9364_v12, %v12467_v16  ;;  %v9405_v44 = vpop.f32.mrf.mxu1  ;;  %9632 = vmatmul.mubr.msk.bf16.gmra.mxu1 %vm400_vm3, %v7448_v13  ;;  %v7453_v16 = vrot.slane %v12677_v55, 2  ;;  %v7110_v13 = vrot.slane %v12703_v22, 1 }
 0x2b8   : > { %v12698_v45 = vadd.f32 %v9405_v44, %v5132_v18  ;;  %v5070_v50 = vpop.f32.mrf.mxu0  ;;  %9635 = vmatprep.mubr.msk.bf16.mxu1 %vm400_vm3, %v7450_v19 }
 0x2b9   : > { %v5131_v52 = vadd.f32 %v5070_v50, %v12472_v17  ;;  %v5415_v30 = vpop.f32.mrf.mxu1  ;;  %v7452_v17 = vsel %vm5148_vm8, %v7449_v43, %v7451_v20  ;;  %v7454_v39 = vsel %vm5148_vm8, %v7451_v20, %v7453_v16  ;;  %v12729_v20 = vld [vmem:[%s10117_s11 + $0x90] sm:$0xff]  }
 0x2ba   : > { %v12707_v4 = vadd.f32 %v5415_v30, %v5130_v6  ;;  %v9367_v31 = vpop.f32.mrf.mxu0  ;;  %9594 = vmatmul.mubr.msk.bf16.gmra.mxu0 %vm400_vm3, %v7105_v51  ;;  %v9907_v51 = vld [vmem:[%s10117_s11 + $0x88] sm:$0xff]  }
 0x2bb   : > { %v5136_v9 = vadd.f32 %v9367_v31, %v12477_v7  ;;  %v9406_v18 = vpop.f32.mrf.mxu1  ;;  %9597 = vmatprep.mubr.msk.bf16.mxu0 %vm400_vm3, %v7107_v3  ;;  %v7111_v3 = vsel %vm2115_vm7, %v7108_v46, %v7110_v13 }
 0x2bc   : > { %v12712_v23 = vadd.f32 %v9406_v18, %v5133_v29  ;;  %v5083_v63 = vpop.f32.mrf.mxu0  ;;  %v7109_v29 = vsel %vm2115_vm7, %v7106_v59, %v7108_v46 }
 0x2bd   : > { %v5134_v55 = vadd.f32 %v5083_v63, %v12482_v15  ;;  %v5418_v6 = vpop.f32.mrf.mxu1  ;;  %v7455_v15 = vrot.slane %v9905_v62, 2  ;;  %v7112_v62 = vrot.slane %v9907_v51, 1 }
 0x2be   : > { %v12718_v19 = vadd.f32 %v5418_v6, %v5131_v52  ;;  %v9368_v7 = vpop.f32.mrf.mxu0 }
 0x2bf   : > { %v5137_v12 = vadd.f32 %v9368_v7, %v12489_v37  ;;  %v9409_v44 = vpop.f32.mrf.mxu1  ;;  %9636 = vmatmul.mubr.msk.bf16.gmra.mxu1 %vm400_vm3, %v7452_v17  ;;  %v7457_v37 = vrot.slane %v12703_v22, 2  ;;  %v7114_v17 = vrot.slane %v12729_v20, 1 }
 0x2c0   : > { %v12724_v43 = vadd.f32 %v9409_v44, %v5136_v9  ;;  %v5086_v50 = vpop.f32.mrf.mxu0  ;;  %9639 = vmatprep.mubr.msk.bf16.mxu1 %vm400_vm3, %v7454_v39 }
 0x2c1   : > { %v5135_v52 = vadd.f32 %v5086_v50, %v12494_v8  ;;  %v5431_v30 = vpop.f32.mrf.mxu1  ;;  %v7456_v8 = vsel %vm5148_vm8, %v7453_v16, %v7455_v15  ;;  %v7458_v6 = vsel %vm5148_vm8, %v7455_v15, %v7457_v37  ;;  %v12755_v15 = vld [vmem:[%s10117_s11 + $0xa0] sm:$0xff]  }
 0x2c2   : > { %v12733_v31 = vadd.f32 %v5431_v30, %v5134_v55  ;;  %v9415_v18 = vpop.f32.mrf.mxu0  ;;  %9598 = vmatmul.mubr.msk.bf16.gmra.mxu0 %vm400_vm3, %v7109_v29  ;;  %v9909_v29 = vld [vmem:[%s10117_s11 + $0x98] sm:$0xff]  }
 0x2c3   : > { %v9410_v59 = vpop.f32.mrf.mxu1  ;;  %v5886_v9 = vadd.f32 %v9415_v18, %v12499_v35  ;;  %9601 = vmatprep.mubr.msk.bf16.mxu0 %vm400_vm3, %v7111_v3  ;;  %v7459_v3 = vrot.slane %v9907_v51, 2  ;;  %v7116_v51 = vrot.slane %v9909_v29, 1 }
 0x2c4   : > { %v12738_v46 = vadd.f32 %v9410_v59, %v5137_v12  ;;  %v5725_v63 = vpop.f32.mrf.mxu0  ;;  %v7113_v12 = vsel %vm2115_vm7, %v7110_v13, %v7112_v62 }
 0x2c5   : > { %v5434_v22 = vpop.f32.mrf.mxu1  ;;  %v5884_v55 = vadd.f32 %v5725_v63, %v12504_v57  ;;  %v7115_v57 = vsel %vm2115_vm7, %v7112_v62, %v7114_v17 }
 0x2c6   : > { %v12744_v39 = vadd.f32 %v5434_v22, %v5135_v52  ;;  %v9416_v35 = vpop.f32.mrf.mxu0 }
 0x2c7   : > { %v5887_v7 = vadd.f32 %v9416_v35, %v12511_v10  ;;  %v9457_v44 = vpop.f32.mrf.mxu1  ;;  %9640 = vmatmul.mubr.msk.bf16.gmra.mxu1 %vm400_vm3, %v7456_v8  ;;  %v7461_v10 = vrot.slane %v12729_v20, 2  ;;  %v7118_v8 = vrot.slane %v12755_v15, 1 }
 0x2c8   : > { %v12750_v16 = vadd.f32 %v9457_v44, %v5886_v9  ;;  %v5728_v50 = vpop.f32.mrf.mxu0  ;;  %9643 = vmatprep.mubr.msk.bf16.mxu1 %vm400_vm3, %v7458_v6 }
 0x2c9   : > { %v5885_v52 = vadd.f32 %v5728_v50, %v12516_v26  ;;  %v5963_v30 = vpop.f32.mrf.mxu1  ;;  %v7460_v26 = vsel %vm5148_vm8, %v7457_v37, %v7459_v3 }
 0x2ca   : > { %v12759_v18 = vadd.f32 %v5963_v30, %v5884_v55  ;;  %v9419_v59 = vpop.f32.mrf.mxu0  ;;  %9602 = vmatmul.mubr.msk.bf16.gmra.mxu0 %vm400_vm3, %v7113_v12  ;;  %v7462_v55 = vsel %vm5148_vm8, %v7459_v3, %v7461_v10  ;;  %v9911_v12 = vld [vmem:[%s10117_s11 + $0xa8] sm:$0xff]   ;;  %v12781_v3 = vld [vmem:[%s10117_s11 + $0xb0] sm:$0xff]  }
 0x2cb   : > { %v5890_v13 = vadd.f32 %v9419_v59, %v12521_v38  ;;  %v9458_v9 = vpop.f32.mrf.mxu1  ;;  %9605 = vmatprep.mubr.msk.bf16.mxu0 %vm400_vm3, %v7115_v57  ;;  %v7119_v57 = vsel %vm2115_vm7, %v7116_v51, %v7118_v8 }
 0x2cc   : > { %v12764_v62 = vadd.f32 %v9458_v9, %v5887_v7  ;;  %v5741_v63 = vpop.f32.mrf.mxu0  ;;  %v7117_v7 = vsel %vm2115_vm7, %v7114_v17, %v7116_v51 }
 0x2cd   : > { %v5888_v20 = vadd.f32 %v5741_v63, %v12526_v33  ;;  %v5966_v22 = vpop.f32.mrf.mxu1  ;;  %v7463_v33 = vrot.slane %v9909_v29, 2  ;;  %v7120_v29 = vrot.slane %v9911_v12, 1 }
 0x2ce   : > { %v12770_v6 = vadd.f32 %v5966_v22, %v5885_v52  ;;  %v9420_v38 = vpop.f32.mrf.mxu0 }
 0x2cf   : > { %v5891_v35 = vadd.f32 %v9420_v38, %v12533_v48  ;;  %v9461_v44 = vpop.f32.mrf.mxu1  ;;  %9644 = vmatmul.mubr.msk.bf16.gmra.mxu1 %vm400_vm3, %v7460_v26  ;;  %v7465_v48 = vrot.slane %v12755_v15, 2  ;;  %v7122_v26 = vrot.slane %v12781_v3, 1 }
 0x2d0   : > { %v12776_v37 = vadd.f32 %v9461_v44, %v5890_v13  ;;  %v5744_v50 = vpop.f32.mrf.mxu0  ;;  %9647 = vmatprep.mubr.msk.bf16.mxu1 %vm400_vm3, %v7462_v55 }
 0x2d1   : > { %v5889_v52 = vadd.f32 %v5744_v50, %v12538_v21  ;;  %v5979_v30 = vpop.f32.mrf.mxu1  ;;  %v7464_v21 = vsel %vm5148_vm8, %v7461_v10, %v7463_v33  ;;  %v7466_v22 = vsel %vm5148_vm8, %v7463_v33, %v7465_v48  ;;  %v12807_v33 = vld [vmem:[%s10117_s11 + $0xc0] sm:$0xff]  }
 0x2d2   : > { %v12785_v59 = vadd.f32 %v5979_v30, %v5888_v20  ;;  %v9423_v9 = vpop.f32.mrf.mxu0  ;;  %9606 = vmatmul.mubr.msk.bf16.gmra.mxu0 %vm400_vm3, %v7117_v7  ;;  %v9913_v7 = vld [vmem:[%s10117_s11 + $0xb8] sm:$0xff]  }
 0x2d3   : > { %v5894_v17 = vadd.f32 %v9423_v9, %v12543_v5  ;;  %v9462_v13 = vpop.f32.mrf.mxu1  ;;  %9609 = vmatprep.mubr.msk.bf16.mxu0 %vm400_vm3, %v7119_v57  ;;  %v7123_v57 = vsel %vm2115_vm7, %v7120_v29, %v7122_v26 }
 0x2d4   : > { %v12790_v51 = vadd.f32 %v9462_v13, %v5891_v35  ;;  %v5757_v63 = vpop.f32.mrf.mxu0  ;;  %v7121_v35 = vsel %vm2115_vm7, %v7118_v8, %v7120_v29 }
 0x2d5   : > { %v5892_v15 = vadd.f32 %v5757_v63, %v12548_v41  ;;  %v5982_v20 = vpop.f32.mrf.mxu1  ;;  %v7467_v41 = vrot.slane %v9911_v12, 2  ;;  %v7124_v12 = vrot.slane %v9913_v7, 1 }
 0x2d6   : > { %v12796_v55 = vadd.f32 %v5982_v20, %v5889_v52  ;;  %v9424_v5 = vpop.f32.mrf.mxu0 }
 0x2d7   : > { %v5895_v38 = vadd.f32 %v9424_v5, %v12555_v58  ;;  %v9465_v44 = vpop.f32.mrf.mxu1  ;;  %9648 = vmatmul.mubr.msk.bf16.gmra.mxu1 %vm400_vm3, %v7464_v21  ;;  %v7469_v58 = vrot.slane %v12781_v3, 2  ;;  %v7126_v21 = vrot.slane %v12807_v33, 1 }
 0x2d8   : > { %v12802_v10 = vadd.f32 %v9465_v44, %v5894_v17  ;;  %v5760_v50 = vpop.f32.mrf.mxu0  ;;  %9651 = vmatprep.mubr.msk.bf16.mxu1 %vm400_vm3, %v7466_v22 }
 0x2d9   : > { %v5893_v52 = vadd.f32 %v5760_v50, %v12562_v36  ;;  %v5995_v30 = vpop.f32.mrf.mxu1  ;;  %v7468_v36 = vsel %vm5148_vm8, %v7465_v48, %v7467_v41  ;;  %v7470_v20 = vsel %vm5148_vm8, %v7467_v41, %v7469_v58  ;;  %v7127_v41 = vsel %vm2115_vm7, %v7124_v12, %v7126_v21 }
 0x2da   : > { %v12811_v9 = vadd.f32 %v5995_v30, %v5892_v15  ;;  %v9427_v13 = vpop.f32.mrf.mxu0  ;;  %9610 = vmatmul.mubr.msk.bf16.gmra.mxu0 %vm400_vm3, %v7121_v35  ;;  %v9915_v35 = vld [vmem:[%s10117_s11 + $0xc8] ss:$0 sps:$4 sm:$0x11]  }
 0x2db   : > { %v5898_v8 = vadd.f32 %v9427_v13, %v12567_v49  ;;  %v9466_v17 = vpop.f32.mrf.mxu1  ;;  %9613 = vmatprep.mubr.msk.bf16.mxu0 %vm400_vm3, %v7123_v57 }
 0x2dc   : > { %v12816_v29 = vadd.f32 %v9466_v17, %v5895_v38  ;;  %v5773_v63 = vpop.f32.mrf.mxu0  ;;  %v7125_v38 = vsel %vm2115_vm7, %v7122_v26, %v7124_v12  ;;  %v7128_v17 = vrot.slane %v9915_v35, 1 }
 0x2dd   : > { %v5896_v3 = vadd.f32 %v5773_v63, %v12575_v1  ;;  %v5998_v15 = vpop.f32.mrf.mxu1  ;;  %v7471_v1 = vrot.slane %v9913_v7, 2 }
 0x2de   : > { %v12822_v22 = vadd.f32 %v5998_v15, %v5893_v52  ;;  %v9428_v49 = vpop.f32.mrf.mxu0 }
 0x2df   : > { %v5899_v5 = vadd.f32 %v9428_v49, %v12583_v54  ;;  %v9469_v44 = vpop.f32.mrf.mxu1  ;;  %9652 = vmatmul.mubr.msk.bf16.gmra.mxu1 %vm400_vm3, %v7468_v36  ;;  %v7473_v54 = vrot.slane %v12807_v33, 2  ;;  %v7472_v12 = vsel %vm5148_vm8, %v7469_v58, %v7471_v1 }
 0x2e0   : > { %v12828_v50 = vadd.f32 %v9469_v44, %v5898_v8  ;;  %v5776_v48 = vpop.f32.mrf.mxu0  ;;  %9655 = vmatprep.mubr.msk.bf16.mxu1 %vm400_vm3, %v7470_v20 }
 0x2e1   : > { %v5897_v57 = vadd.f32 %v5776_v48, %v12588_v28  ;;  %v6011_v52 = vpop.f32.mrf.mxu1  ;;  %v9916_v28 = vld [vmem:[%s10117_s11 + $0xc8] ss:$0 sps:$4 sm:$0x33]   ;;  %s194_s11 = sand.u32 1, %s9998_s13  }
 0x2e2   : > { %v12834_v30 = vadd.f32 %v6011_v52, %v5896_v3  ;;  %v9431_v13 = vpop.f32.mrf.mxu0  ;;  %9614 = vmatmul.mubr.msk.bf16.gmra.mxu0 %vm400_vm3, %v7125_v38  ;;  %v7474_v3 = vsel %vm5148_vm8, %v7471_v1, %v7473_v54  ;;  %v7475_v58 = vrot.slane %v9916_v28, 2  ;;  %s9681_s7 = smul.u32 320, %s194_s11  ;;  %s13184_s15 = scalar_lea.sflag [#allocation3], %s194_s11 }
 0x2e3   : > { %v5902_v26 = vadd.f32 %v9431_v13, %v12594_v56  ;;  %v9470_v8 = vpop.f32.mrf.mxu1  ;;  %9617 = vmatprep.mubr.msk.bf16.mxu0 %vm400_vm3, %v7127_v41 }
 0x2e4   : > { %v12839_v63 = vadd.f32 %v9470_v8, %v5899_v5  ;;  %v5789_v7 = vpop.f32.mrf.mxu0  ;;  %v7129_v5 = vsel %vm2115_vm7, %v7126_v21, %v7128_v17  ;;  %v7476_v52 = vsel %vm5148_vm8, %v7473_v54, %v7475_v58  ;;  %s13055_s10 = scalar_lea.vmem [#allocation2], %s9681_s7 }
 0x2e5   : > { %v5900_v36 = vadd.f32 %v5789_v7, %v12603_v24  ;;  %v6014_v33 = vpop.f32.mrf.mxu1  ;;  %s7874_s19 = sshll.u32 %s13055_s10, 4  ;;  %s13177_s19 = int_to_ptr.vmem [resolvable:$true] %s7874_s19 }
 0x2e6   : > { %v12845_v15 = vadd.f32 %v6014_v33, %v5897_v57  ;;  %v9432_v20 = vpop.f32.mrf.mxu0  ;;  %s9938_s27 = scalar_lea.vmem %s13177_s19, 5120  ;;  %p9945_p1 = scmp.lt.s32.totalorder %s13177_s19, %s9943_s29 }
 0x2e7   : > { %v5903_v56 = vadd.f32 %v9432_v20, %v12609_v61  ;;  %v9473_v49 = vpop.f32.mrf.mxu1  ;;  %9656 = vmatmul.mubr.msk.bf16.gmra.mxu1 %vm400_vm3, %v7472_v12  ;;  %p9939_p12 = scmp.ne.s32.totalorder %s13177_s19, %s9938_s27  ;;  %p9946_p2 = scmp.lt.s32.totalorder %s9944_s30, %s9938_s27 }
 0x2e8   : > { %v12850_v44 = vadd.f32 %v9473_v49, %v5902_v26  ;;  %v5792_v38 = vpop.f32.mrf.mxu0  ;;  %9659 = vmatprep.mubr.msk.bf16.mxu1 %vm400_vm3, %v7474_v3 }
 0x2e9   : > { %v5901_v24 = vadd.f32 %v5792_v38, %v12614_v53  ;;  %v6027_v35 = vpop.f32.mrf.mxu1  ;;  %p9940_p13 = pnand %p9939_p12, %p10079_p4  ;;  %p9947_p3 = por %p9946_p2, %p9945_p1 }
 0x2ea   : > { %v12854_v48 = vadd.f32 %v6027_v35, %v5900_v36  ;;  %v9435_v1 = vpop.f32.mrf.mxu0  ;;  %9618 = vmatmul.mubr.msk.bf16.gmra.mxu0 %vm400_vm3, %v7129_v5 }
 0x2eb   : > { %v5906_v61 = vadd.f32 %v9435_v1, %v12620_v2  ;;  %v9474_v41 = vpop.f32.mrf.mxu1  ;;  %p9941_p0 = pneg %p9940_p13 }
 0x2ec   : > { %v12858_v57 = vadd.f32 %v9474_v41, %v5903_v56  ;;  %v5805_v21 = vpop.f32.mrf.mxu0 }
 0x2ed   : > { %v5904_v13 = vadd.f32 %v5805_v21, %v12629_v32  ;;  %v6030_v26 = vpop.f32.mrf.mxu1  ;;  %p9948_p5 = pnand %p9947_p3, %p9941_p0 }
 0x2ee   : > { %v12862_v8 = vadd.f32 %v6030_v26, %v5901_v24  ;;  %v9436_v53 = vpop.f32.mrf.mxu0 }
 0x2ef   : > { %v5907_v17 = vadd.f32 %v9436_v53, %v12634_v14  ;;  %v9477_v7 = vpop.f32.mrf.mxu1  ;;  %9660 = vmatmul.mubr.msk.bf16.gmra.mxu1 %vm400_vm3, %v7476_v52 }
 0x2f0   : > { %v12866_v12 = vadd.f32 %v9477_v7, %v5906_v61  ;;  %v5808_v2 = vpop.f32.mrf.mxu0 }
 0x2f1   : > { %v5905_v28 = vadd.f32 %v5808_v2, %v12640_v42  ;;  %v6043_v36 = vpop.f32.mrf.mxu1 }
 0x2f2   : > { %v12869_v33 = vadd.f32 %v6043_v36, %v5904_v13  ;;  %v9439_v54 = vpop.f32.mrf.mxu0 }
 0x2f3   : > { %v5910_v32 = vadd.f32 %v9439_v54, %v12646_v40  ;;  %v9478_v3 = vpop.f32.mrf.mxu1 }
 0x2f4   : > { %v12872_v20 = vadd.f32 %v9478_v3, %v5907_v17  ;;  %v5821_v56 = vpop.f32.mrf.mxu0 }
 0x2f5   : > { %v5908_v14 = vadd.f32 %v5821_v56, %v12655_v47  ;;  %v6046_v49 = vpop.f32.mrf.mxu1 }
 0x2f6   : > { %v12875_v5 = vadd.f32 %v6046_v49, %v5905_v28  ;;  %v9440_v38 = vpop.f32.mrf.mxu0 }
 0x2f7   : > { %v5911_v58 = vadd.f32 %v9440_v38, %v12660_v0  ;;  %v9481_v24 = vpop.f32.mrf.mxu1 }
 0x2f8   : > { %v12878_v42 = vadd.f32 %v9481_v24, %v5910_v32  ;;  %v5824_v35 = vpop.f32.mrf.mxu0 }
 0x2f9   : > { %v5909_v1 = vadd.f32 %v5824_v35, %v12666_v25  ;;  %v6059_v61 = vpop.f32.mrf.mxu1 }
 0x2fa   : > { %v12881_v40 = vadd.f32 %v6059_v61, %v5908_v14  ;;  %v9443_v41 = vpop.f32.mrf.mxu0 }
 0x2fb   : > { %v5914_v21 = vadd.f32 %v9443_v41, %v12672_v11  ;;  %v9482_v52 = vpop.f32.mrf.mxu1 }
 0x2fc   : > { %v12884_v47 = vadd.f32 %v9482_v52, %v5911_v58  ;;  %v5837_v13 = vpop.f32.mrf.mxu0 }
 0x2fd   : > { %v5912_v26 = vadd.f32 %v5837_v13, %v12681_v27  ;;  %v6062_v53 = vpop.f32.mrf.mxu1 }
 0x2fe   : > { %v12887_v0 = vadd.f32 %v6062_v53, %v5909_v1  ;;  %v9444_v17 = vpop.f32.mrf.mxu0 }
 0x2ff   : > { %v5915_v7 = vadd.f32 %v9444_v17, %v12686_v34  ;;  %v9485_v2 = vpop.f32.mrf.mxu1 }
 0x300   : > { %v12890_v25 = vadd.f32 %v9485_v2, %v5914_v21  ;;  %v5840_v28 = vpop.f32.mrf.mxu0 }
 0x301   : > { %v5913_v36 = vadd.f32 %v5840_v28, %v12692_v60  ;;  %v6075_v54 = vpop.f32.mrf.mxu1 }
 0x302   : > { %v12893_v11 = vadd.f32 %v6075_v54, %v5912_v26  ;;  %v9447_v32 = vpop.f32.mrf.mxu0 }
 0x303   : > { %v5918_v3 = vadd.f32 %v9447_v32, %v12698_v45  ;;  %v9486_v56 = vpop.f32.mrf.mxu1 }
 0x304   : > { %v12896_v27 = vadd.f32 %v9486_v56, %v5915_v7  ;;  %v5853_v14 = vpop.f32.mrf.mxu0 }
 0x305   : > { %v5916_v49 = vadd.f32 %v5853_v14, %v12707_v4  ;;  %v6078_v38 = vpop.f32.mrf.mxu1 }
 0x306   : > { %v12899_v34 = vadd.f32 %v6078_v38, %v5913_v36  ;;  %v9448_v58 = vpop.f32.mrf.mxu0 }
 0x307   : > { %v5919_v24 = vadd.f32 %v9448_v58, %v12712_v23  ;;  %v9489_v35 = vpop.f32.mrf.mxu1 }
 0x308   : > { %v12902_v60 = vadd.f32 %v9489_v35, %v5918_v3  ;;  %v5856_v1 = vpop.f32.mrf.mxu0 }
 0x309   : > { %v5917_v61 = vadd.f32 %v5856_v1, %v12718_v19  ;;  %v6091_v41 = vpop.f32.mrf.mxu1 }
 0x30a   : > { %v12905_v45 = vadd.f32 %v6091_v41, %v5916_v49  ;;  %v9451_v21 = vpop.f32.mrf.mxu0 }
 0x30b   : > { %v5922_v52 = vadd.f32 %v9451_v21, %v12724_v43  ;;  %v9490_v13 = vpop.f32.mrf.mxu1 }
 0x30c   : > { %v12908_v4 = vadd.f32 %v9490_v13, %v5919_v24  ;;  %v5869_v26 = vpop.f32.mrf.mxu0 }
 0x30d   : > { %v5920_v53 = vadd.f32 %v5869_v26, %v12733_v31  ;;  %v6094_v17 = vpop.f32.mrf.mxu1 }
 0x30e   : > { %v12911_v23 = vadd.f32 %v6094_v17, %v5917_v61  ;;  %v9452_v7 = vpop.f32.mrf.mxu0 }
 0x30f   : > { %v5923_v2 = vadd.f32 %v9452_v7, %v12738_v46  ;;  %v9493_v28 = vpop.f32.mrf.mxu1 }
 0x310   : > { %v12914_v19 = vadd.f32 %v9493_v28, %v5922_v52  ;;  %v5872_v36 = vpop.f32.mrf.mxu0 }
 0x311   : > { %v5921_v54 = vadd.f32 %v5872_v36, %v12744_v39  ;;  %v6107_v32 = vpop.f32.mrf.mxu1 }
 0x312   : > { %v12917_v43 = vadd.f32 %v6107_v32, %v5920_v53  ;;  %v9499_v3 = vpop.f32.mrf.mxu0 }
 0x313   : > { %v9494_v56 = vpop.f32.mrf.mxu1  ;;  %v6467_v14 = vadd.f32 %v9499_v3, %v12750_v16 }
 0x314   : > { %v12920_v31 = vadd.f32 %v9494_v56, %v5923_v2  ;;  %v6306_v49 = vpop.f32.mrf.mxu0 }
 0x315   : > { %v6110_v38 = vpop.f32.mrf.mxu1  ;;  %v6465_v58 = vadd.f32 %v6306_v49, %v12759_v18 }
 0x316   : > { %v12923_v46 = vadd.f32 %v6110_v38, %v5921_v54  ;;  %v9500_v24 = vpop.f32.mrf.mxu0 }
 0x317   : > { %v6468_v35 = vadd.f32 %v9500_v24, %v12764_v62  ;;  %v9541_v1 = vpop.f32.mrf.mxu1 }
 0x318   : > { %v12926_v39 = vadd.f32 %v9541_v1, %v6467_v14  ;;  %v6309_v61 = vpop.f32.mrf.mxu0 }
 0x319   : > { %v6466_v41 = vadd.f32 %v6309_v61, %v12770_v6  ;;  %v6744_v21 = vpop.f32.mrf.mxu1 }
 0x31a   : > { %v12929_v52 = vadd.f32 %v6744_v21, %v6465_v58  ;;  %v9503_v16 = vpop.f32.mrf.mxu0 }
 0x31b   : > { %v6471_v13 = vadd.f32 %v9503_v16, %v12776_v37  ;;  %v9542_v26 = vpop.f32.mrf.mxu1 }
 0x31c   : > { %v12932_v53 = vadd.f32 %v9542_v26, %v6468_v35  ;;  %v6322_v18 = vpop.f32.mrf.mxu0 }
 0x31d   : > { %v6469_v17 = vadd.f32 %v6322_v18, %v12785_v59  ;;  %v6747_v7 = vpop.f32.mrf.mxu1 }
 0x31e   : > { %v12935_v62 = vadd.f32 %v6747_v7, %v6466_v41  ;;  %v9504_v2 = vpop.f32.mrf.mxu0 }
 0x31f   : > { %v6472_v28 = vadd.f32 %v9504_v2, %v12790_v51  ;;  %v9545_v36 = vpop.f32.mrf.mxu1 }
 0x320   : > { %v12938_v6 = vadd.f32 %v9545_v36, %v6471_v13  ;;  %v6325_v54 = vpop.f32.mrf.mxu0 }
 0x321   : > { %v6470_v32 = vadd.f32 %v6325_v54, %v12796_v55  ;;  %v6760_v3 = vpop.f32.mrf.mxu1 }
 0x322   : > { %v12941_v37 = vadd.f32 %v6760_v3, %v6469_v17  ;;  %v9507_v56 = vpop.f32.mrf.mxu0 }
 0x323   : > { %v6475_v14 = vadd.f32 %v9507_v56, %v12802_v10  ;;  %v9546_v49 = vpop.f32.mrf.mxu1 }
 0x324   : > { %v12944_v59 = vadd.f32 %v9546_v49, %v6472_v28  ;;  %v6338_v38 = vpop.f32.mrf.mxu0 }
 0x325   : > { %v6473_v58 = vadd.f32 %v6338_v38, %v12811_v9  ;;  %v6763_v24 = vpop.f32.mrf.mxu1 }
 0x326   : > { %v12947_v51 = vadd.f32 %v6763_v24, %v6470_v32  ;;  %v9508_v35 = vpop.f32.mrf.mxu0 }
 0x327   : > { %v6476_v1 = vadd.f32 %v9508_v35, %v12816_v29  ;;  %v9549_v61 = vpop.f32.mrf.mxu1 }
 0x328   : > { %v12950_v55 = vadd.f32 %v9549_v61, %v6475_v14  ;;  %v6341_v41 = vpop.f32.mrf.mxu0 }
 0x329   : > { %v6474_v21 = vadd.f32 %v6341_v41, %v12822_v22  ;;  %v6776_v16 = vpop.f32.mrf.mxu1 }
 0x32a   : > { %v12953_v10 = vadd.f32 %v6776_v16, %v6473_v58  ;;  %v9511_v13 = vpop.f32.mrf.mxu0 }
 0x32b   : > { %v6479_v26 = vadd.f32 %v9511_v13, %v12828_v50  ;;  %v9550_v18 = vpop.f32.mrf.mxu1 }
 0x32c   : > { %v12956_v9 = vadd.f32 %v9550_v18, %v6476_v1  ;;  %v6354_v17 = vpop.f32.mrf.mxu0 }
 0x32d   : > { %v6477_v7 = vadd.f32 %v6354_v17, %v12834_v30  ;;  %v6779_v2 = vpop.f32.mrf.mxu1 }
 0x32e   : > { %v12959_v29 = vadd.f32 %v6779_v2, %v6474_v21  ;;  %v9512_v28 = vpop.f32.mrf.mxu0 }
 0x32f   : > { %v6480_v36 = vadd.f32 %v9512_v28, %v12839_v63  ;;  %v9553_v54 = vpop.f32.mrf.mxu1 }
 0x330   : > { %v12962_v22 = vadd.f32 %v9553_v54, %v6479_v26  ;;  %v6357_v32 = vpop.f32.mrf.mxu0 }
 0x331   : > { %v6478_v3 = vadd.f32 %v6357_v32, %v12845_v15  ;;  %v6792_v56 = vpop.f32.mrf.mxu1 }
 0x332   : > { %v12965_v50 = vadd.f32 %v6792_v56, %v6477_v7  ;;  %v9515_v14 = vpop.f32.mrf.mxu0 }
 0x333   : > { %v6483_v49 = vadd.f32 %v9515_v14, %v12850_v44  ;;  %v9554_v38 = vpop.f32.mrf.mxu1 }
 0x334   : > { %v12968_v30 = vadd.f32 %v9554_v38, %v6480_v36  ;;  %v6370_v58 = vpop.f32.mrf.mxu0 }
 0x335   : > { %v6481_v24 = vadd.f32 %v6370_v58, %v12854_v48  ;;  %v6795_v35 = vpop.f32.mrf.mxu1 }
 0x336   : > { %v12971_v63 = vadd.f32 %v6795_v35, %v6478_v3  ;;  %v9516_v1 = vpop.f32.mrf.mxu0 }
 0x337   : > { %v6484_v61 = vadd.f32 %v9516_v1, %v12858_v57  ;;  %v9557_v41 = vpop.f32.mrf.mxu1 }
 0x338   : > { %v12974_v15 = vadd.f32 %v9557_v41, %v6483_v49  ;;  %v6373_v21 = vpop.f32.mrf.mxu0 }
 0x339   : > { %v6482_v16 = vadd.f32 %v6373_v21, %v12862_v8  ;;  %v6808_v13 = vpop.f32.mrf.mxu1 }
 0x33a   : > { %v12977_v44 = vadd.f32 %v6808_v13, %v6481_v24  ;;  %v9519_v26 = vpop.f32.mrf.mxu0 }
 0x33b   : > { %v6487_v18 = vadd.f32 %v9519_v26, %v12866_v12  ;;  %v9558_v17 = vpop.f32.mrf.mxu1 }
 0x33c   : > { %v12980_v48 = vadd.f32 %v9558_v17, %v6484_v61  ;;  %v6386_v7 = vpop.f32.mrf.mxu0 }
 0x33d   : > { %v6485_v2 = vadd.f32 %v6386_v7, %v12869_v33  ;;  %v6811_v28 = vpop.f32.mrf.mxu1 }
 0x33e   : > { %v12983_v57 = vadd.f32 %v6811_v28, %v6482_v16  ;;  %v9520_v36 = vpop.f32.mrf.mxu0 }
 0x33f   : > { %v6488_v54 = vadd.f32 %v9520_v36, %v12872_v20  ;;  %v9561_v32 = vpop.f32.mrf.mxu1 }
 0x340   : > { %v12986_v8 = vadd.f32 %v9561_v32, %v6487_v18  ;;  %v6389_v3 = vpop.f32.mrf.mxu0 }
 0x341   : > { %v6486_v56 = vadd.f32 %v6389_v3, %v12875_v5  ;;  %v6824_v14 = vpop.f32.mrf.mxu1 }
 0x342   : > { %v12989_v12 = vadd.f32 %v6824_v14, %v6485_v2  ;;  %v9523_v49 = vpop.f32.mrf.mxu0 }
 0x343   : > { %v6491_v38 = vadd.f32 %v9523_v49, %v12878_v42  ;;  %v9562_v58 = vpop.f32.mrf.mxu1 }
 0x344   : > { %v12992_v33 = vadd.f32 %v9562_v58, %v6488_v54  ;;  %v6402_v24 = vpop.f32.mrf.mxu0 }
 0x345   : > { %v6489_v35 = vadd.f32 %v6402_v24, %v12881_v40  ;;  %v6827_v1 = vpop.f32.mrf.mxu1 }
 0x346   : > { %v12995_v20 = vadd.f32 %v6827_v1, %v6486_v56  ;;  %v9524_v61 = vpop.f32.mrf.mxu0 }
 0x347   : > { %v6492_v41 = vadd.f32 %v9524_v61, %v12884_v47  ;;  %v9565_v21 = vpop.f32.mrf.mxu1 }
 0x348   : > { %v12998_v5 = vadd.f32 %v9565_v21, %v6491_v38  ;;  %v6405_v16 = vpop.f32.mrf.mxu0 }
 0x349   : > { %v6490_v13 = vadd.f32 %v6405_v16, %v12887_v0  ;;  %v6840_v26 = vpop.f32.mrf.mxu1 }
 0x34a   : > { %v13001_v42 = vadd.f32 %v6840_v26, %v6489_v35  ;;  %v9527_v18 = vpop.f32.mrf.mxu0 }
 0x34b   : > { %v6495_v17 = vadd.f32 %v9527_v18, %v12890_v25  ;;  %v9566_v7 = vpop.f32.mrf.mxu1 }
 0x34c   : > { %v13004_v40 = vadd.f32 %v9566_v7, %v6492_v41  ;;  %v6418_v2 = vpop.f32.mrf.mxu0 }
 0x34d   : > { %v6493_v28 = vadd.f32 %v6418_v2, %v12893_v11  ;;  %v6843_v36 = vpop.f32.mrf.mxu1 }
 0x34e   : > { %v13007_v47 = vadd.f32 %v6843_v36, %v6490_v13  ;;  %v9528_v54 = vpop.f32.mrf.mxu0 }
 0x34f   : > { %v6496_v32 = vadd.f32 %v9528_v54, %v12896_v27  ;;  %v9569_v3 = vpop.f32.mrf.mxu1 }
 0x350   : > { %v13010_v0 = vadd.f32 %v9569_v3, %v6495_v17  ;;  %v6421_v56 = vpop.f32.mrf.mxu0 }
 0x351   : > { %v6494_v14 = vadd.f32 %v6421_v56, %v12899_v34  ;;  %v6856_v49 = vpop.f32.mrf.mxu1 }
 0x352   : > { %v13013_v25 = vadd.f32 %v6856_v49, %v6493_v28  ;;  %v9531_v38 = vpop.f32.mrf.mxu0 }
 0x353   : > { %v6499_v58 = vadd.f32 %v9531_v38, %v12902_v60  ;;  %v9570_v24 = vpop.f32.mrf.mxu1 }
 0x354   : > { %v13016_v11 = vadd.f32 %v9570_v24, %v6496_v32  ;;  %v6434_v35 = vpop.f32.mrf.mxu0 }
 0x355   : > { %v6497_v1 = vadd.f32 %v6434_v35, %v12905_v45  ;;  %v6859_v61 = vpop.f32.mrf.mxu1 }
 0x356   : > { %v13019_v27 = vadd.f32 %v6859_v61, %v6494_v14  ;;  %v9532_v41 = vpop.f32.mrf.mxu0 }
 0x357   : > { %v6500_v21 = vadd.f32 %v9532_v41, %v12908_v4  ;;  %v9573_v16 = vpop.f32.mrf.mxu1 }
 0x358   : > { %v13022_v34 = vadd.f32 %v9573_v16, %v6499_v58  ;;  %v6437_v13 = vpop.f32.mrf.mxu0 }
 0x359   : > { %v6498_v26 = vadd.f32 %v6437_v13, %v12911_v23  ;;  %v6872_v18 = vpop.f32.mrf.mxu1 }
 0x35a   : > { %v13025_v60 = vadd.f32 %v6872_v18, %v6497_v1  ;;  %v9535_v17 = vpop.f32.mrf.mxu0 }
 0x35b   : > { %v6503_v7 = vadd.f32 %v9535_v17, %v12914_v19  ;;  %v9574_v45 = vpop.f32.mrf.mxu1 }
 0x35c   : > { %v13028_v2 = vadd.f32 %v9574_v45, %v6500_v21  ;;  %v6450_v28 = vpop.f32.mrf.mxu0 }
 0x35d   : > { %v6501_v36 = vadd.f32 %v6450_v28, %v12917_v43  ;;  %v6875_v4 = vpop.f32.mrf.mxu1 }
 0x35e   : > { %v13031_v54 = vadd.f32 %v6875_v4, %v6498_v26  ;;  %v9536_v32 = vpop.f32.mrf.mxu0 }
 0x35f   : > { %v6504_v23 = vadd.f32 %v9536_v32, %v12920_v31  ;;  %v9577_v3 = vpop.f32.mrf.mxu1 }
 0x360   : > { %v13034_v56 = vadd.f32 %v9577_v3, %v6503_v7  ;;  %v6453_v14 = vpop.f32.mrf.mxu0 }
 0x361   : > { %v6502_v19 = vadd.f32 %v6453_v14, %v12923_v46  ;;  %v6888_v49 = vpop.f32.mrf.mxu1  ;;  %v13050_v46 = vld [vmem:[%s13231_s2] ss:$0 sm:$0xff] }
 0x362   : > { %v13037_v38 = vadd.f32 %v6888_v49, %v6501_v36  ;;  %v9583_v58 = vpop.f32.mrf.mxu0 }
 0x363   : > { %v9578_v24 = vpop.f32.mrf.mxu1  ;;  %v7388_v31 = vadd.f32 %v9583_v58, %v12926_v39 }
 0x364   : > { %v13040_v43 = vadd.f32 %v9578_v24, %v6504_v23  ;;  %v7227_v35 = vpop.f32.mrf.mxu0 }
 0x365   : > { %v6891_v1 = vpop.f32.mrf.mxu1  ;;  %v7386_v16 = vadd.f32 %v7227_v35, %v12929_v52 }
 0x366   : > { %v13045_v61 = vadd.f32 %v6891_v1, %v6502_v19  ;;  %v9584_v41 = vpop.f32.mrf.mxu0 }
 0x367   : > { %v9625_v21 = vpop.f32.mrf.mxu1  ;;  %v7389_v17 = vadd.f32 %v9584_v41, %v12932_v53 }
 0x368   : > { %v7735_v13 = vadd.f32 %v9625_v21, %v7388_v31  ;;  %v7230_v26 = vpop.f32.mrf.mxu0 }
 0x369   : > { %v7574_v18 = vpop.f32.mrf.mxu1  ;;  %v7387_v36 = vadd.f32 %v7230_v26, %v12935_v62 }
 0x36a   : > { %v7782_v7 = vadd.f32 %v13050_v46, %v7735_v13  ;;  %v7733_v45 = vadd.f32 %v7574_v18, %v7386_v16  ;;  %v9587_v39 = vpop.f32.mrf.mxu0 }
 0x36b   : > { %v9626_v28 = vpop.f32.mrf.mxu1  ;;  %v7392_v53 = vadd.f32 %v9587_v39, %v12938_v6 }
 0x36c   : > { %7822 = vst [vmem:[%s13055_s10 + $0x10] sm:$0xff] %v7782_v7  ;;  %v7780_v52 = vadd.f32 %v13050_v46, %v7733_v45  ;;  %v7736_v4 = vadd.f32 %v9626_v28, %v7389_v17  ;;  %v7243_v32 = vpop.f32.mrf.mxu0 }
 0x36d   : > { %v7577_v23 = vpop.f32.mrf.mxu1  ;;  %v7390_v58 = vadd.f32 %v7243_v32, %v12941_v37 }
 0x36e   : > { %7820 = vst [vmem:[%s13055_s10] sm:$0xff] %v7780_v52  ;;  %v7783_v3 = vadd.f32 %v13050_v46, %v7736_v4  ;;  %v7734_v14 = vadd.f32 %v7577_v23, %v7387_v36  ;;  %v9588_v19 = vpop.f32.mrf.mxu0 }
 0x36f   : > { %v9629_v49 = vpop.f32.mrf.mxu1  ;;  %v7393_v31 = vadd.f32 %v9588_v19, %v12944_v59 }
 0x370   : > { %7823 = vst [vmem:[%s13055_s10 + $0x18] sm:$0xff] %v7783_v3  ;;  %v7781_v62 = vadd.f32 %v13050_v46, %v7734_v14  ;;  %v7739_v24 = vadd.f32 %v9629_v49, %v7392_v53  ;;  %v7246_v35 = vpop.f32.mrf.mxu0 }
 0x371   : > { %v7590_v1 = vpop.f32.mrf.mxu1  ;;  %v7391_v13 = vadd.f32 %v7246_v35, %v12947_v51 }
 0x372   : > { %7821 = vst [vmem:[%s13055_s10 + $0x8] sm:$0xff] %v7781_v62  ;;  %v7786_v6 = vadd.f32 %v13050_v46, %v7739_v24  ;;  %v7737_v41 = vadd.f32 %v7590_v1, %v7390_v58  ;;  %v9591_v21 = vpop.f32.mrf.mxu0 }
 0x373   : > { %v9630_v16 = vpop.f32.mrf.mxu1  ;;  %v7396_v7 = vadd.f32 %v9591_v21, %v12950_v55 }
 0x374   : > { %7826 = vst [vmem:[%s13055_s10 + $0x30] sm:$0xff] %v7786_v6  ;;  %v7784_v37 = vadd.f32 %v13050_v46, %v7737_v41  ;;  %v7740_v26 = vadd.f32 %v9630_v16, %v7393_v31  ;;  %v7259_v18 = vpop.f32.mrf.mxu0 }
 0x375   : > { %v7593_v17 = vpop.f32.mrf.mxu1  ;;  %v7394_v36 = vadd.f32 %v7259_v18, %v12953_v10 }
 0x376   : > { %7824 = vst [vmem:[%s13055_s10 + $0x20] sm:$0xff] %v7784_v37  ;;  %v7787_v59 = vadd.f32 %v13050_v46, %v7740_v26  ;;  %v7738_v45 = vadd.f32 %v7593_v17, %v7391_v13  ;;  %v9592_v39 = vpop.f32.mrf.mxu0 }
 0x377   : > { %v9633_v28 = vpop.f32.mrf.mxu1  ;;  %v7397_v23 = vadd.f32 %v9592_v39, %v12956_v9 }
 0x378   : > { %7827 = vst [vmem:[%s13055_s10 + $0x38] sm:$0xff] %v7787_v59  ;;  %v7785_v51 = vadd.f32 %v13050_v46, %v7738_v45  ;;  %v7743_v52 = vadd.f32 %v9633_v28, %v7396_v7  ;;  %v7262_v4 = vpop.f32.mrf.mxu0 }
 0x379   : > { %v7606_v32 = vpop.f32.mrf.mxu1  ;;  %v7395_v19 = vadd.f32 %v7262_v4, %v12959_v29 }
 0x37a   : > { %7825 = vst [vmem:[%s13055_s10 + $0x28] sm:$0xff] %v7785_v51  ;;  %v7790_v55 = vadd.f32 %v13050_v46, %v7743_v52  ;;  %v7741_v53 = vadd.f32 %v7606_v32, %v7394_v36  ;;  %v9595_v3 = vpop.f32.mrf.mxu0 }
 0x37b   : > { %v9634_v14 = vpop.f32.mrf.mxu1  ;;  %v7400_v24 = vadd.f32 %v9595_v3, %v12962_v22 }
 0x37c   : > { %7830 = vst [vmem:[%s13055_s10 + $0x50] sm:$0xff] %v7790_v55  ;;  %v7788_v10 = vadd.f32 %v13050_v46, %v7741_v53  ;;  %v7744_v49 = vadd.f32 %v9634_v14, %v7397_v23  ;;  %v7275_v58 = vpop.f32.mrf.mxu0 }
 0x37d   : > { %v7609_v62 = vpop.f32.mrf.mxu1  ;;  %v7398_v6 = vadd.f32 %v7275_v58, %v12965_v50 }
 0x37e   : > { %7828 = vst [vmem:[%s13055_s10 + $0x40] sm:$0xff] %v7788_v10  ;;  %v7791_v9 = vadd.f32 %v13050_v46, %v7744_v49  ;;  %v7742_v35 = vadd.f32 %v7609_v62, %v7395_v19  ;;  %v9596_v1 = vpop.f32.mrf.mxu0 }
 0x37f   : > { %v9637_v31 = vpop.f32.mrf.mxu1  ;;  %v7401_v13 = vadd.f32 %v9596_v1, %v12968_v30 }
 0x380   : > { %7831 = vst [vmem:[%s13055_s10 + $0x58] sm:$0xff] %v7791_v9  ;;  %v7789_v29 = vadd.f32 %v13050_v46, %v7742_v35  ;;  %v7747_v41 = vadd.f32 %v9637_v31, %v7400_v24  ;;  %v7278_v21 = vpop.f32.mrf.mxu0 }
 0x381   : > { %v7622_v16 = vpop.f32.mrf.mxu1  ;;  %v7399_v17 = vadd.f32 %v7278_v21, %v12971_v63 }
 0x382   : > { %7829 = vst [vmem:[%s13055_s10 + $0x48] sm:$0xff] %v7789_v29  ;;  %v7794_v22 = vadd.f32 %v13050_v46, %v7747_v41  ;;  %v7745_v37 = vadd.f32 %v7622_v16, %v7398_v6  ;;  %v9599_v26 = vpop.f32.mrf.mxu0 }
 0x383   : > { %v9638_v18 = vpop.f32.mrf.mxu1  ;;  %v7404_v39 = vadd.f32 %v9599_v26, %v12974_v15 }
 0x384   : > { %7834 = vst [vmem:[%s13055_s10 + $0x70] sm:$0xff] %v7794_v22  ;;  %v7792_v50 = vadd.f32 %v13050_v46, %v7745_v37  ;;  %v7748_v7 = vadd.f32 %v9638_v18, %v7401_v13  ;;  %v7291_v59 = vpop.f32.mrf.mxu0 }
 0x385   : > { %v7625_v45 = vpop.f32.mrf.mxu1  ;;  %v7402_v52 = vadd.f32 %v7291_v59, %v12977_v44 }
 0x386   : > { %7832 = vst [vmem:[%s13055_s10 + $0x60] sm:$0xff] %v7792_v50  ;;  %v7795_v30 = vadd.f32 %v13050_v46, %v7748_v7  ;;  %v7746_v28 = vadd.f32 %v7625_v45, %v7399_v17  ;;  %v9600_v36 = vpop.f32.mrf.mxu0 }
 0x387   : > { %v9641_v51 = vpop.f32.mrf.mxu1  ;;  %v7405_v55 = vadd.f32 %v9600_v36, %v12980_v48 }
 0x388   : > { %7835 = vst [vmem:[%s13055_s10 + $0x78] sm:$0xff] %v7795_v30  ;;  %v7793_v63 = vadd.f32 %v13050_v46, %v7746_v28  ;;  %v7751_v4 = vadd.f32 %v9641_v51, %v7404_v39  ;;  %v7294_v32 = vpop.f32.mrf.mxu0 }
 0x389   : > { %v7638_v23 = vpop.f32.mrf.mxu1  ;;  %v7403_v19 = vadd.f32 %v7294_v32, %v12983_v57 }
 0x38a   : > { %7833 = vst [vmem:[%s13055_s10 + $0x68] sm:$0xff] %v7793_v63  ;;  %v7798_v15 = vadd.f32 %v13050_v46, %v7751_v4  ;;  %v7749_v53 = vadd.f32 %v7638_v23, %v7402_v52  ;;  %v9603_v3 = vpop.f32.mrf.mxu0 }
 0x38b   : > { %v9642_v14 = vpop.f32.mrf.mxu1  ;;  %v7408_v62 = vadd.f32 %v9603_v3, %v12986_v8 }
 0x38c   : > { %7838 = vst [vmem:[%s13055_s10 + $0x90] sm:$0xff] %v7798_v15  ;;  %v7796_v44 = vadd.f32 %v13050_v46, %v7749_v53  ;;  %v7752_v10 = vadd.f32 %v9642_v14, %v7405_v55  ;;  %v7307_v49 = vpop.f32.mrf.mxu0 }
 0x38d   : > { %v7641_v58 = vpop.f32.mrf.mxu1  ;;  %v7406_v1 = vadd.f32 %v7307_v49, %v12989_v12 }
 0x38e   : > { %7836 = vst [vmem:[%s13055_s10 + $0x80] sm:$0xff] %v7796_v44  ;;  %v7799_v48 = vadd.f32 %v13050_v46, %v7752_v10  ;;  %v7750_v24 = vadd.f32 %v7641_v58, %v7403_v19  ;;  %v9604_v9 = vpop.f32.mrf.mxu0 }
 0x38f   : > { %v9645_v35 = vpop.f32.mrf.mxu1  ;;  %v7409_v41 = vadd.f32 %v9604_v9, %v12992_v33 }
 0x390   : > { %7839 = vst [vmem:[%s13055_s10 + $0x98] sm:$0xff] %v7799_v48  ;;  %v7797_v57 = vadd.f32 %v13050_v46, %v7750_v24  ;;  %v7755_v31 = vadd.f32 %v9645_v35, %v7408_v62  ;;  %v7310_v6 = vpop.f32.mrf.mxu0 }
 0x391   : > { %v7654_v29 = vpop.f32.mrf.mxu1  ;;  %v7407_v22 = vadd.f32 %v7310_v6, %v12995_v20 }
 0x392   : > { %7837 = vst [vmem:[%s13055_s10 + $0x88] sm:$0xff] %v7797_v57  ;;  %v7802_v8 = vadd.f32 %v13050_v46, %v7755_v31  ;;  %v7753_v21 = vadd.f32 %v7654_v29, %v7406_v1  ;;  %v9607_v16 = vpop.f32.mrf.mxu0 }
 0x393   : > { %v9646_v13 = vpop.f32.mrf.mxu1  ;;  %v7412_v17 = vadd.f32 %v9607_v16, %v12998_v5 }
 0x394   : > { %7842 = vst [vmem:[%s13055_s10 + $0xb0] sm:$0xff] %v7802_v8  ;;  %v7800_v12 = vadd.f32 %v13050_v46, %v7753_v21  ;;  %v7756_v37 = vadd.f32 %v9646_v13, %v7409_v41  ;;  %v7323_v26 = vpop.f32.mrf.mxu0 }
 0x395   : > { %v7657_v18 = vpop.f32.mrf.mxu1  ;;  %v7410_v45 = vadd.f32 %v7323_v26, %v13001_v42 }
 0x396   : > { %7840 = vst [vmem:[%s13055_s10 + $0xa0] sm:$0xff] %v7800_v12  ;;  %v7803_v33 = vadd.f32 %v13050_v46, %v7756_v37  ;;  %v7754_v50 = vadd.f32 %v7657_v18, %v7407_v22  ;;  %v9608_v7 = vpop.f32.mrf.mxu0 }
 0x397   : > { %v9649_v59 = vpop.f32.mrf.mxu1  ;;  %v7413_v36 = vadd.f32 %v9608_v7, %v13004_v40 }
 0x398   : > { %7843 = vst [vmem:[%s13055_s10 + $0xb8] sm:$0xff] %v7803_v33  ;;  %v7801_v20 = vadd.f32 %v13050_v46, %v7754_v50  ;;  %v7759_v39 = vadd.f32 %v9649_v59, %v7412_v17  ;;  %v7326_v30 = vpop.f32.mrf.mxu0 }
 0x399   : > { %v7670_v28 = vpop.f32.mrf.mxu1  ;;  %v7411_v4 = vadd.f32 %v7326_v30, %v13007_v47 }
 0x39a   : > { %7841 = vst [vmem:[%s13055_s10 + $0xa8] sm:$0xff] %v7801_v20  ;;  %v7806_v5 = vadd.f32 %v13050_v46, %v7759_v39  ;;  %v7757_v51 = vadd.f32 %v7670_v28, %v7410_v45  ;;  %v9611_v52 = vpop.f32.mrf.mxu0 }
 0x39b   : > { %v9650_v63 = vpop.f32.mrf.mxu1  ;;  %v7416_v15 = vadd.f32 %v9611_v52, %v13010_v0 }
 0x39c   : > { %7846 = vst [vmem:[%s13055_s10 + $0xd0] sm:$0xff] %v7806_v5  ;;  %v7804_v42 = vadd.f32 %v13050_v46, %v7757_v51  ;;  %v7760_v32 = vadd.f32 %v9650_v63, %v7413_v36  ;;  %v7339_v23 = vpop.f32.mrf.mxu0 }
 0x39d   : > { %v7673_v55 = vpop.f32.mrf.mxu1  ;;  %v7414_v19 = vadd.f32 %v7339_v23, %v13013_v25 }
 0x39e   : > { %7844 = vst [vmem:[%s13055_s10 + $0xc0] sm:$0xff] %v7804_v42  ;;  %v7807_v40 = vadd.f32 %v13050_v46, %v7760_v32  ;;  %v7758_v53 = vadd.f32 %v7673_v55, %v7411_v4  ;;  %v9612_v3 = vpop.f32.mrf.mxu0 }
 0x39f   : > { %v9653_v14 = vpop.f32.mrf.mxu1  ;;  %v7417_v58 = vadd.f32 %v9612_v3, %v13016_v11 }
 0x3a0   : > { %7847 = vst [vmem:[%s13055_s10 + $0xd8] sm:$0xff] %v7807_v40  ;;  %v7805_v47 = vadd.f32 %v13050_v46, %v7758_v53  ;;  %v7763_v44 = vadd.f32 %v9653_v14, %v7416_v15  ;;  %v7342_v10 = vpop.f32.mrf.mxu0 }
 0x3a1   : > { %v7686_v49 = vpop.f32.mrf.mxu1  ;;  %v7415_v9 = vadd.f32 %v7342_v10, %v13019_v27 }
 0x3a2   : > { %7845 = vst [vmem:[%s13055_s10 + $0xc8] sm:$0xff] %v7805_v47  ;;  %v7810_v0 = vadd.f32 %v13050_v46, %v7763_v44  ;;  %v7761_v62 = vadd.f32 %v7686_v49, %v7414_v19  ;;  %v9615_v48 = vpop.f32.mrf.mxu0 }
 0x3a3   : > { %v9654_v24 = vpop.f32.mrf.mxu1  ;;  %v7420_v31 = vadd.f32 %v9615_v48, %v13022_v34 }
 0x3a4   : > { %7850 = vst [vmem:[%s13055_s10 + $0xf0] sm:$0xff] %v7810_v0  ;;  %v7808_v25 = vadd.f32 %v13050_v46, %v7761_v62  ;;  %v7764_v35 = vadd.f32 %v9654_v24, %v7417_v58  ;;  %v7355_v1 = vpop.f32.mrf.mxu0 }
 0x3a5   : > { %v7689_v57 = vpop.f32.mrf.mxu1  ;;  %v7418_v8 = vadd.f32 %v7355_v1, %v13025_v60 }
 0x3a6   : > { %7848 = vst [vmem:[%s13055_s10 + $0xe0] sm:$0xff] %v7808_v25  ;;  %v7811_v11 = vadd.f32 %v13050_v46, %v7764_v35  ;;  %v7762_v6 = vadd.f32 %v7689_v57, %v7415_v9  ;;  %v9616_v29 = vpop.f32.mrf.mxu0 }
 0x3a7   : > { %v9657_v41 = vpop.f32.mrf.mxu1  ;;  %v7421_v22 = vadd.f32 %v9616_v29, %v13028_v2 }
 0x3a8   : > { %7851 = vst [vmem:[%s13055_s10 + $0xf8] sm:$0xff] %v7811_v11  ;;  %v7809_v27 = vadd.f32 %v13050_v46, %v7762_v6  ;;  %v7767_v21 = vadd.f32 %v9657_v41, %v7420_v31  ;;  %v7358_v16 = vpop.f32.mrf.mxu0 }
 0x3a9   : > { %v7702_v13 = vpop.f32.mrf.mxu1  ;;  %v7419_v18 = vadd.f32 %v7358_v16, %v13031_v54 }
 0x3aa   : > { %7849 = vst [vmem:[%s13055_s10 + $0xe8] sm:$0xff] %v7809_v27  ;;  %v7814_v34 = vadd.f32 %v13050_v46, %v7767_v21  ;;  %v7765_v12 = vadd.f32 %v7702_v13, %v7418_v8  ;;  %v9619_v37 = vpop.f32.mrf.mxu0 }
 0x3ab   : > { %v9658_v26 = vpop.f32.mrf.mxu1  ;;  %v7424_v7 = vadd.f32 %v9619_v37, %v13034_v56 }
 0x3ac   : > { %7854 = vst [vmem:[%s13055_s10 + $0x110] sm:$0xff] %v7814_v34  ;;  %v7812_v60 = vadd.f32 %v13050_v46, %v7765_v12  ;;  %v7768_v17 = vadd.f32 %v9658_v26, %v7421_v22  ;;  %v7371_v33 = vpop.f32.mrf.mxu0 }
 0x3ad   : > { %v7705_v50 = vpop.f32.mrf.mxu1  ;;  %v7422_v54 = vadd.f32 %v7371_v33, %v13037_v38 }
 0x3ae   : > { %7852 = vst [vmem:[%s13055_s10 + $0x100] sm:$0xff] %v7812_v60  ;;  %v7815_v2 = vadd.f32 %v13050_v46, %v7768_v17  ;;  %v7766_v59 = vadd.f32 %v7705_v50, %v7419_v18  ;;  %v9620_v45 = vpop.f32.mrf.mxu0 }
 0x3af   : > { %v9661_v20 = vpop.f32.mrf.mxu1  ;;  %v7425_v56 = vadd.f32 %v9620_v45, %v13040_v43 }
 0x3b0   : > { %7855 = vst [vmem:[%s13055_s10 + $0x118] sm:$0xff] %v7815_v2  ;;  %v7813_v39 = vadd.f32 %v13050_v46, %v7766_v59  ;;  %v7771_v30 = vadd.f32 %v9661_v20, %v7424_v7  ;;  %v7374_v28 = vpop.f32.mrf.mxu0 }
 0x3b1   : > { %v7718_v36 = vpop.f32.mrf.mxu1  ;;  %v7423_v38 = vadd.f32 %v7374_v28, %v13045_v61 }
 0x3b2   : > { %7853 = vst [vmem:[%s13055_s10 + $0x108] sm:$0xff] %v7813_v39  ;;  %v7818_v5 = vadd.f32 %v13050_v46, %v7771_v30  ;;  %v7769_v51 = vadd.f32 %v7718_v36, %v7422_v54 }
 0x3b3   : > { %v9662_v52 = vpop.f32.mrf.mxu1 }
 0x3b4   : > { %7858 = vst [vmem:[%s13055_s10 + $0x130] sm:$0xff] %v7818_v5  ;;  %v7816_v63 = vadd.f32 %v13050_v46, %v7769_v51  ;;  %v7772_v4 = vadd.f32 %v9662_v52, %v7425_v56 }
 0x3b5   : > { %v7721_v42 = vpop.f32.mrf.mxu1 }
 0x3b6   : > { %7856 = vst [vmem:[%s13055_s10 + $0x120] sm:$0xff] %v7816_v63  ;;  %v7819_v43 = vadd.f32 %v13050_v46, %v7772_v4  ;;  %v7770_v32 = vadd.f32 %v7721_v42, %v7423_v38 }
 0x3b8   : > { %7859 = vst [vmem:[%s13055_s10 + $0x138] sm:$0xff] %v7819_v43  ;;  %v7817_v61 = vadd.f32 %v13050_v46, %v7770_v32 }
 0x3ba   : > { %7857 = vst [vmem:[%s13055_s10 + $0x128] sm:$0xff] %v7817_v61 }
 0x3bb   : > { %9951 = shalt.err (!%p9948_p5)
}
 0x3bc   : > { %s9952_s4 = scalar_lea.hbm %s13175_s26, 5120  ;;  %s9956_s11 = scalar_lea.hbm %s13232_s3, 10240 }
 0x3bd   : > { %p9953_p6 = scmp.ne.s32.totalorder %s13175_s26, %s9952_s4  ;;  %p9957_p10 = scmp.lt.s32.totalorder %s13175_s26, %s13232_s3 }
 0x3be   : > { %p9958_p11 = scmp.lt.s32.totalorder %s9956_s11, %s9952_s4 }
 0x3bf   : > { %p9954_p7 = pnand %p9953_p6, %p10079_p4 }
 0x3c0   : > { %p9959_p12 = por %p9958_p11, %p9957_p10 }
 0x3c1   : > { %p9955_p9 = pneg %p9954_p7 }
 0x3c3   : > { %p9960_p13 = pnand %p9959_p12, %p9955_p9 }
 0x3c5   : > { %9963 = shalt.err (!%p9960_p13)
}
 0x3c6   : > { %s10017_s9 = smov 128   ;;  %s10018_s10 = smov 8  }
 0x3c7   : > { %9684 = dma.vmem_to_hbm [thread:$0]  (%p10079_p4), %s13177_s19, 5120, %s13175_s26, %s13184_s15, %s10017_s9, %s10017_s9, %s10018_s10  }
 0x3c8 PF: > { %p9690_p0 = scmp.ge.s32.totalorder %s10014_s17, 2  ;;  %s7889_s18 = sand.u32 1, %s9994_s12  }
 0x3c9   : > { %s7890_s21 = scalar_lea.sflag [#allocation3], %s7889_s18 }
 0x3ca   : > { %p9687_p1 = pnand %p9690_p0, %p10086_p8 }
 0x3cc   : > { %p9688_p2 = pneg %p9687_p1 }
 0x3ce   : > { %9989 = dma.done.wait (%p9688_p2), %s7890_s21, 5120  }
 0x3cf   : > { %9991 = vsyncadd (%p9688_p2), %s7890_s21, 4294962176  ;;  %s16_s17 = sadd.s32 1, %s10014_s17   ;;  %s13487_s12 = smov %s9998_s13 }
 0x3d0   : > { %p13_p3 = scmp.ge.s32.totalorder %s16_s17, 4   ;;  %s13488_s13 = smov %s10002_s14 }
 0x3d1   : > { %s13489_s14 = smov %s10092_s25  ;;  %s13490_s15 = smov %s10010_s16 }
 0x3d2   : > { %s13491_s16 = smov %s13493_s20  ;;  %15 = sbr.rel (!%p13_p3) target bundleno = 4 (0x4), region = 87 }
 0x3d7   :  { %7895 = vsyncpa [#allocation3], 1 }
 0x3d8   :  { %7897 = vsyncpa [#allocation3 + $0x1], 1 }

</bundles_post_ra>
